<compile_context>
chip_gen: v7x
topology: tpu7x:2x2x1
jax: 0.10.0
libtpu: 0.0.40
codegen_flags: <defaults>
</compile_context>

<pallas_src>
import functools

import jax
import jax.numpy as jnp
import numpy as np
from jax import lax
from jax.experimental import pallas as pl
from jax.experimental.pallas import tpu as pltpu

EPS = 1e-6
NEG_INF = -1e9  # stands in for -inf in the causal bias (same post-softmax)


# ----------------------------- kernel helpers ------------------------------
def _layer_norm(x, gamma, beta):
    # Repo's custom LayerNorm: unbiased std, eps added to std (not variance).
    h = x.shape[-1]
    mean = jnp.mean(x, axis=-1, keepdims=True)
    d = x - mean
    var = jnp.sum(d * d, axis=-1, keepdims=True) * (1.0 / (h - 1))
    inv = pl.reciprocal(jnp.sqrt(var) + EPS, approx=True)
    return gamma * d * inv + beta


def _project_kv(x, wkv_h):
    # x: (S, H) fp32; wkv_h: (NH, H, dhk+dhv) bf16 -> (NH, S, dhk+dhv) bf16
    nh = wkv_h.shape[0]
    s, h = x.shape
    xb = jnp.broadcast_to(x.astype(jnp.bfloat16)[None], (nh, s, h))
    kv = lax.dot_general(xb, wkv_h, (((2,), (1,)), ((0,), (0,))),
                         preferred_element_type=jnp.float32)
    return kv.astype(jnp.bfloat16)


def _mha(q_in, kv, wq_h, wo_h, bias=None):
    # q_in: (Tq, H) f32; kv: (NH, S, dhk+dhv) bf16 (cached K|V)
    # wq_h: (NH, H, dhk) bf16 (query scale folded in); wo_h: (NH, dhv, H) bf16
    nh, h, dhk = wq_h.shape
    tq = q_in.shape[0]

    kh = kv[:, :, :dhk]          # (NH, S, dhk)
    vh = kv[:, :, dhk:]          # (NH, S, dhv)

    qb = jnp.broadcast_to(q_in.astype(jnp.bfloat16)[None], (nh, tq, h))
    qh = lax.dot_general(qb, wq_h, (((2,), (1,)), ((0,), (0,))),
                         preferred_element_type=jnp.float32).astype(jnp.bfloat16)
    # logits: 'hqd,hkd->hqk'
    logits = lax.dot_general(qh, kh, (((2,), (2,)), ((0,), (0,))),
                             preferred_element_type=jnp.float32)
    if bias is not None:
        logits = logits + bias[None]
    m = jnp.max(logits, axis=-1, keepdims=True)
    e = jnp.exp(logits - m)
    p = e * pl.reciprocal(jnp.sum(e, axis=-1, keepdims=True), approx=True)
    # ctx: 'hqk,hkd->hqd'
    ctx = lax.dot_general(p.astype(jnp.bfloat16), vh, (((2,), (1,)), ((0,), (0,))),
                          preferred_element_type=jnp.float32)
    # per-head output projection, then sum over heads == output_linear(concat)
    outh = lax.dot_general(ctx.astype(jnp.bfloat16), wo_h,
                           (((2,), (1,)), ((0,), (0,))),
                           preferred_element_type=jnp.float32)
    return jnp.sum(outh, axis=0)  # (Tq, H) f32


def _causal_conv3(x, w_ref, bias):
    # x: (R, Cin) f32; w_ref: ref (3, Cin, Cout) bf16; bias: (1, Cout) f32
    # Conv1d(kernel=3) with left padding 2:
    #   y[t] = x[t-2] @ w[0] + x[t-1] @ w[1] + x[t] @ w[2] + b
    # Per-tap matmuls + shifted-row recombination (no (T,T) shift matmuls).
    xb = x.astype(jnp.bfloat16)
    y2 = jnp.dot(xb, w_ref[2], preferred_element_type=jnp.float32)
    y1 = jnp.dot(xb, w_ref[1], preferred_element_type=jnp.float32)
    y0 = jnp.dot(xb, w_ref[0], preferred_element_type=jnp.float32)
    r, cout = y2.shape
    z1 = jnp.zeros((1, cout), jnp.float32)
    z2 = jnp.zeros((2, cout), jnp.float32)
    y = (y2
         + jnp.concatenate([z1, y1[:r - 1]], axis=0)
         + jnp.concatenate([z2, y0[:r - 2]], axis=0))
    return y + bias


# --------------------------------- kernel ----------------------------------
def decoder_layer_kernel(dec_ref, word_ref, turn_ref,
                         gam_ref, bet_ref,
                         wq_ref, wkv_ref, wo_ref,
                         c1w_ref, c1b_ref, c2w_ref, c2b_ref,
                         out_ref,
                         self_kv, word_kv, turn_kv,
                         *, halo):
    qt = pl.program_id(1)
    tq = out_ref.shape[0]
    te = tq + halo                    # query tile + causal-conv halo rows
    t_full = dec_ref.shape[0]

    # ---- once per batch element: cache K|V for all three attentions -------
    @pl.when(qt == 0)
    def _():
        xnf = _layer_norm(dec_ref[...].astype(jnp.float32),
                          gam_ref[0:1], bet_ref[0:1])
        self_kv[...] = _project_kv(xnf, wkv_ref[0])
        word_kv[...] = _project_kv(word_ref[...].astype(jnp.float32), wkv_ref[1])
        turn_kv[...] = _project_kv(turn_ref[...].astype(jnp.float32), wkv_ref[2])

    # ---- per query tile (with left halo for the stacked causal convs) -----
    q0 = qt * tq
    start = jnp.maximum(q0 - halo, 0)           # halo clamps at sequence start
    x = dec_ref[pl.ds(start, te), :].astype(jnp.float32)   # (TE, H)

    # causal bias with absolute positions (only decoder self-attention)
    q_pos = start + lax.broadcasted_iota(jnp.int32, (te, t_full), 0)
    k_pos = lax.broadcasted_iota(jnp.int32, (te, t_full), 1)
    causal = jnp.where(k_pos > q_pos, jnp.float32(NEG_INF), jnp.float32(0.0))

    # 1) masked decoder self-attention (pre-LN, residual; dropout p=0)
    xn = _layer_norm(x, gam_ref[0:1], bet_ref[0:1])
    x = x + _mha(xn, self_kv[...], wq_ref[0], wo_ref[0], bias=causal)

    # 2) word-level encoder cross-attention (K/V = raw encoder outputs)
    xn = _layer_norm(x, gam_ref[1:2], bet_ref[1:2])
    x = x + _mha(xn, word_kv[...], wq_ref[1], wo_ref[1])

    # 3) turn-level encoder cross-attention
    xn = _layer_norm(x, gam_ref[2:3], bet_ref[2:3])
    x = x + _mha(xn, turn_kv[...], wq_ref[2], wo_ref[2])

    # 4) position-wise FFN ('cc'): causal conv -> ReLU -> causal conv -> ReLU
    xn = _layer_norm(x, gam_ref[3:4], bet_ref[3:4])
    h1 = jnp.maximum(_causal_conv3(xn, c1w_ref, c1b_ref[...]), 0.0)
    h2 = jnp.maximum(_causal_conv3(h1, c2w_ref, c2b_ref[...]), 0.0)
    x = x + h2

    # write only the TQ "real" query rows (halo rows lack full conv context)
    @pl.when(qt == 0)
    def _():
        out_ref[...] = x[0:tq].astype(out_ref.dtype)

    @pl.when(qt > 0)
    def _():
        out_ref[...] = x[halo:halo + tq].astype(out_ref.dtype)


# -------------------------------- wrapper -----------------------------------
def _pick_q_tile(t):
    # receptive field of two stacked causal k=3 convs needs a 4-row halo
    halo = 4
    for tqc in (512, 256, 128, 64, 32, 16, 8):   # multiples of 8 (sublane rule)
        if tqc >= halo and t % tqc == 0 and tqc + halo <= t:
            return tqc, halo
    return t, 0                                  # single tile, no halo needed


def decoder_layer(dec, word, turn, params, num_heads):
    B, T, H = dec.shape
    Sw = word.shape[1]
    St = turn.shape[1]
    gam, bet, wq, wk, wv, wo, c1w, c1b, c2w, c2b = params
    Dk = wq.shape[2]
    Dv = wv.shape[2]
    F = c1w.shape[2]
    dhk = Dk // num_heads
    dhv = Dv // num_heads
    bf16 = jnp.bfloat16

    # per-head weight layouts (head axis leading); query scale folded into Wq;
    # K and V projections fused into one weight. All matmul weights in bf16.
    scale = float(dhk) ** -0.5
    wq_h = (wq * scale).reshape(3, H, num_heads, dhk).transpose(0, 2, 1, 3)
    wk_h = wk.reshape(3, H, num_heads, dhk).transpose(0, 2, 1, 3)
    wv_h = wv.reshape(3, H, num_heads, dhv).transpose(0, 2, 1, 3)
    wq_h = wq_h.astype(bf16)
    wkv_h = jnp.concatenate([wk_h, wv_h], axis=-1).astype(bf16)  # (3,NH,H,dhk+dhv)
    wo_h = wo.reshape(3, num_heads, dhv, H).astype(bf16)
    c1w_b = c1w.astype(bf16)
    c2w_b = c2w.astype(bf16)

    TQ, HALO = _pick_q_tile(T)
    n_q = T // TQ

    def const_spec(shape):
        n = len(shape)
        return pl.BlockSpec(shape, lambda b, q, _n=n: (0,) * _n)

    # TODO(synk): for production sizes (H=512, F=2048) the constant-index
    # weight blocks should use pipeline_mode=pl.Buffered(1) and the FFN should
    # be tiled over F to stay within v7x's 64 MiB VMEM.
    kernel = functools.partial(decoder_layer_kernel, halo=HALO)
    y = pl.pallas_call(
        kernel,
        out_shape=jax.ShapeDtypeStruct((B, T, H), dec.dtype),
        grid_spec=pltpu.PrefetchScalarGridSpec(
            num_scalar_prefetch=0,
            grid=(B, n_q),
            in_specs=[
                pl.BlockSpec((None, T, H), lambda b, q: (b, 0, 0)),
                pl.BlockSpec((None, Sw, H), lambda b, q: (b, 0, 0)),
                pl.BlockSpec((None, St, H), lambda b, q: (b, 0, 0)),
                const_spec((4, H)), const_spec((4, H)),
                const_spec((3, num_heads, H, dhk)),
                const_spec((3, num_heads, H, dhk + dhv)),
                const_spec((3, num_heads, dhv, H)),
                const_spec((3, H, F)), const_spec((1, F)),
                const_spec((3, F, H)), const_spec((1, H)),
            ],
            out_specs=pl.BlockSpec((None, TQ, H), lambda b, q: (b, q, 0)),
            scratch_shapes=[
                pltpu.VMEM((num_heads, T, dhk + dhv), bf16),   # self-attn K|V
                pltpu.VMEM((num_heads, Sw, dhk + dhv), bf16),  # word-attn K|V
                pltpu.VMEM((num_heads, St, dhk + dhv), bf16),  # turn-attn K|V
            ],
        ),
        compiler_params=pltpu.CompilerParams(
            # q-tile axis must be "arbitrary": KV scratch is filled at qt==0
            # and reused by later tiles of the same batch element.
            dimension_semantics=("parallel", "arbitrary"),
            vmem_limit_bytes=64 * 1024 * 1024,
        ),
    )(dec, word, turn, gam, bet, wq_h, wkv_h, wo_h, c1w_b, c1b, c2w_b, c2b)
    # Module returns (y, word_encoder_outputs, turn_encoder_outputs)
    return y, word, turn


# --------------------------- pure-JAX reference ------------------------------
def reference(dec, word, turn, params, num_heads):
    gam, bet, wq, wk, wv, wo, c1w, c1b, c2w, c2b = params

    def ln(x, g, b):
        mean = x.mean(-1, keepdims=True)
        d = x - mean
        var = (d * d).sum(-1, keepdims=True) / (x.shape[-1] - 1)
        return g * d / (jnp.sqrt(var) + EPS) + b

    def mha(q_in, kv_in, i, causal):
        B, T, _ = q_in.shape
        S = kv_in.shape[1]
        q = q_in @ wq[i]
        k = kv_in @ wk[i]
        v = kv_in @ wv[i]
        dhk = q.shape[-1] // num_heads
        dhv = v.shape[-1] // num_heads
        q = q.reshape(B, T, num_heads, dhk).transpose(0, 2, 1, 3) * dhk ** -0.5
        k = k.reshape(B, S, num_heads, dhk).transpose(0, 2, 1, 3)
        v = v.reshape(B, S, num_heads, dhv).transpose(0, 2, 1, 3)
        logits = jnp.einsum('bhtd,bhsd->bhts', q, k)
        if causal:
            m = jnp.where(np.triu(np.ones((T, S)), 1) > 0, NEG_INF, 0.0)
            logits = logits + m
        w = jax.nn.softmax(logits, axis=-1)
        ctx = jnp.einsum('bhts,bhsd->bhtd', w, v)
        ctx = ctx.transpose(0, 2, 1, 3).reshape(B, T, num_heads * dhv)
        return ctx @ wo[i]

    def conv(x, w, b):
        T = x.shape[1]
        xp = jnp.pad(x, ((0, 0), (2, 0), (0, 0)))
        return xp[:, 0:T] @ w[0] + xp[:, 1:T + 1] @ w[1] + xp[:, 2:T + 2] @ w[2] + b

    x = dec
    xn = ln(x, gam[0], bet[0]); x = x + mha(xn, xn, 0, True)
    xn = ln(x, gam[1], bet[1]); x = x + mha(xn, word, 1, False)
    xn = ln(x, gam[2], bet[2]); x = x + mha(xn, turn, 2, False)
    xn = ln(x, gam[3], bet[3])
    h1 = jax.nn.relu(conv(xn, c1w, c1b))
    h2 = jax.nn.relu(conv(h1, c2w, c2b))
    return x + h2


# ----------------------------------- main ------------------------------------
if __name__ == "__main__":
    # Small, module-consistent shapes (T=32 so the query-tile+halo path runs).
    B, T, Sw, St = 2, 32, 16, 8
    H, Dk, Dv, F, NH = 32, 32, 32, 64, 4

    key = jax.random.PRNGKey(0)
    ks = jax.random.split(key, 16)
    f32 = jnp.float32

    dec = jax.random.normal(ks[0], (B, T, H), f32)
    word = jax.random.normal(ks[1], (B, Sw, H), f32)
    turn = jax.random.normal(ks[2], (B, St, H), f32)

    s = 0.1
    params = (
        1.0 + s * jax.random.normal(ks[3], (4, H), f32),       # LN gammas
        s * jax.random.normal(ks[4], (4, H), f32),              # LN betas
        s * jax.random.normal(ks[5], (3, H, Dk), f32),           # Wq (3 attentions)
        s * jax.random.normal(ks[6], (3, H, Dk), f32),           # Wk
        s * jax.random.normal(ks[7], (3, H, Dv), f32),           # Wv
        s * jax.random.normal(ks[8], (3, Dv, H), f32),           # Wo
        s * jax.random.normal(ks[9], (3, H, F), f32),            # conv1 w (k,Cin,Cout)
        s * jax.random.normal(ks[10], (1, F), f32),              # conv1 bias
        s * jax.random.normal(ks[11], (3, F, H), f32),           # conv2 weight
        s * jax.random.normal(ks[12], (1, H), f32),              # conv2 bias
    )

    # TODO(synk): layer_cache (incremental decoding) path is not implemented;
    # this matches the forward with layer_cache=None and dropout p=0.0.
    # TODO(synk): for very long sequences, the self/cross attention should
    # stream KV (online softmax) instead of keeping all keys in VMEM.

    y, w_out, t_out = decoder_layer(dec, word, turn, params, NH)
    y = jax.block_until_ready(y)

    y_ref = reference(dec, word, turn, params, NH)
    # bf16 matmul operands (f32 accumulation) -> slightly looser tolerance.
    np.testing.assert_allclose(np.asarray(y), np.asarray(y_ref),
                               rtol=3e-2, atol=3e-2)
    assert w_out.shape == word.shape and t_out.shape == turn.shape

    print("KERNEL_OK")
</pallas_src>

<mosaic_0001>
module attributes {stable_mosaic.version = 11 : i64} {
  func.func @decoder_layer_kernel(%arg0: i32, %arg1: i32, %arg2: memref<1x32x32xf32, #tpu.memory_space<vmem>>, %arg3: memref<1x16x32xf32, #tpu.memory_space<vmem>>, %arg4: memref<1x8x32xf32, #tpu.memory_space<vmem>>, %arg5: memref<4x32xf32, #tpu.memory_space<vmem>>, %arg6: memref<4x32xf32, #tpu.memory_space<vmem>>, %arg7: memref<3x4x32x8xbf16, #tpu.memory_space<vmem>>, %arg8: memref<3x4x32x16xbf16, #tpu.memory_space<vmem>>, %arg9: memref<3x4x8x32xbf16, #tpu.memory_space<vmem>>, %arg10: memref<3x32x64xbf16, #tpu.memory_space<vmem>>, %arg11: memref<1x64xf32, #tpu.memory_space<vmem>>, %arg12: memref<3x64x32xbf16, #tpu.memory_space<vmem>>, %arg13: memref<1x32xf32, #tpu.memory_space<vmem>>, %arg14: memref<1x16x32xf32, #tpu.memory_space<vmem>>, %arg15: memref<4x32x16xbf16, #tpu.memory_space<vmem>>, %arg16: memref<4x16x16xbf16, #tpu.memory_space<vmem>>, %arg17: memref<4x8x16xbf16, #tpu.memory_space<vmem>>) attributes {dimension_semantics = [#tpu.dimension_semantics<parallel>, #tpu.dimension_semantics<arbitrary>], iteration_bounds = array<i64: 2, 2>, scalar_prefetch = 0 : i64, scratch_operands = 3 : i64, tpu.core_type = #tpu.core_type<tc>, window_params = [{transform_indices = @transform_0, window_bounds = array<i64: 1, 32, 32>}, {transform_indices = @transform_1, window_bounds = array<i64: 1, 16, 32>}, {transform_indices = @transform_2, window_bounds = array<i64: 1, 8, 32>}, {pipeline_mode = #tpu.pipeline_mode<synchronous>, transform_indices = @transform_3, window_bounds = array<i64: 4, 32>}, {pipeline_mode = #tpu.pipeline_mode<synchronous>, transform_indices = @transform_4, window_bounds = array<i64: 4, 32>}, {pipeline_mode = #tpu.pipeline_mode<synchronous>, transform_indices = @transform_5, window_bounds = array<i64: 3, 4, 32, 8>}, {pipeline_mode = #tpu.pipeline_mode<synchronous>, transform_indices = @transform_6, window_bounds = array<i64: 3, 4, 32, 16>}, {pipeline_mode = #tpu.pipeline_mode<synchronous>, transform_indices = @transform_7, window_bounds = array<i64: 3, 4, 8, 32>}, {pipeline_mode = #tpu.pipeline_mode<synchronous>, transform_indices = @transform_8, window_bounds = array<i64: 3, 32, 64>}, {pipeline_mode = #tpu.pipeline_mode<synchronous>, transform_indices = @transform_9, window_bounds = array<i64: 1, 64>}, {pipeline_mode = #tpu.pipeline_mode<synchronous>, transform_indices = @transform_10, window_bounds = array<i64: 3, 64, 32>}, {pipeline_mode = #tpu.pipeline_mode<synchronous>, transform_indices = @transform_11, window_bounds = array<i64: 1, 32>}, {transform_indices = @transform_12, window_bounds = array<i64: 1, 16, 32>}]} {
    %c0_i32 = arith.constant 0 : i32
    %0 = arith.cmpi eq, %arg1, %c0_i32 : i32
    %1 = arith.extui %0 : i1 to i32
    %c0_i32_0 = arith.constant 0 : i32
    %2 = arith.cmpi ne, %1, %c0_i32_0 : i32
    scf.if %2 {
      %c0_129 = arith.constant 0 : index
      %c0_130 = arith.constant 0 : index
      %c0_131 = arith.constant 0 : index
      %255 = vector.load %arg2[%c0_129, %c0_130, %c0_131] : memref<1x32x32xf32, #tpu.memory_space<vmem>>, vector<1x32x32xf32>
      %256 = vector.shape_cast %255 : vector<1x32x32xf32> to vector<32x32xf32>
      %c0_132 = arith.constant 0 : index
      %c0_133 = arith.constant 0 : index
      %257 = vector.load %arg5[%c0_132, %c0_133] : memref<4x32xf32, #tpu.memory_space<vmem>>, vector<1x32xf32>
      %c0_134 = arith.constant 0 : index
      %c0_135 = arith.constant 0 : index
      %258 = vector.load %arg6[%c0_134, %c0_135] : memref<4x32xf32, #tpu.memory_space<vmem>>, vector<1x32xf32>
      %cst_136 = arith.constant dense<0.000000e+00> : vector<32xf32>
      %259 = vector.multi_reduction <add>, %256, %cst_136 [1] : vector<32x32xf32> to vector<32xf32>
      %260 = vector.shape_cast %259 : vector<32xf32> to vector<32x1xf32>
      %cst_137 = arith.constant 3.200000e+01 : f32
      %261 = vector.broadcast %cst_137 : f32 to vector<32x1xf32>
      %262 = arith.divf %260, %261 : vector<32x1xf32>
      %263 = vector.broadcast %262 : vector<32x1xf32> to vector<32x32xf32>
      %264 = arith.subf %256, %263 : vector<32x32xf32>
      %265 = arith.mulf %264, %264 : vector<32x32xf32>
      %cst_138 = arith.constant dense<0.000000e+00> : vector<32xf32>
      %266 = vector.multi_reduction <add>, %265, %cst_138 [1] : vector<32x32xf32> to vector<32xf32>
      %267 = vector.shape_cast %266 : vector<32xf32> to vector<32x1xf32>
      %cst_139 = arith.constant 0.0322580636 : f32
      %268 = vector.broadcast %cst_139 : f32 to vector<32x1xf32>
      %269 = arith.mulf %267, %268 : vector<32x1xf32>
      %270 = math.sqrt %269 : vector<32x1xf32>
      %cst_140 = arith.constant 9.99999997E-7 : f32
      %271 = vector.broadcast %cst_140 : f32 to vector<32x1xf32>
      %272 = arith.addf %270, %271 : vector<32x1xf32>
      %273 = tpu.reciprocal %272 {approx = true} : vector<32x1xf32> -> vector<32x1xf32>
      %274 = vector.broadcast %257 : vector<1x32xf32> to vector<32x32xf32>
      %275 = arith.mulf %274, %264 : vector<32x32xf32>
      %276 = vector.broadcast %273 : vector<32x1xf32> to vector<32x32xf32>
      %277 = arith.mulf %275, %276 : vector<32x32xf32>
      %278 = vector.broadcast %258 : vector<1x32xf32> to vector<32x32xf32>
      %279 = arith.addf %277, %278 : vector<32x32xf32>
      %c0_141 = arith.constant 0 : index
      %c0_142 = arith.constant 0 : index
      %c0_143 = arith.constant 0 : index
      %c0_144 = arith.constant 0 : index
      %280 = vector.load %arg8[%c0_141, %c0_142, %c0_143, %c0_144] : memref<3x4x32x16xbf16, #tpu.memory_space<vmem>>, vector<1x4x32x16xbf16>
      %281 = vector.shape_cast %280 : vector<1x4x32x16xbf16> to vector<4x32x16xbf16>
      %282 = arith.truncf %279 : vector<32x32xf32> to vector<32x32xbf16>
      %283 = vector.shape_cast %282 : vector<32x32xbf16> to vector<1x32x32xbf16>
      %284 = vector.shape_cast %283 : vector<1x32x32xbf16> to vector<1x32x32xbf16>
      %285 = vector.broadcast %284 : vector<1x32x32xbf16> to vector<4x32x32xbf16>
      %cst_145 = arith.constant dense<0.000000e+00> : vector<4x32x16xf32>
      %286 = tpu.matmul %285, %281, %cst_145 {dimension_numbers = #tpu.dot_dimension_numbers<[2], [1], [1], [2], [0, 0, 0, 1, 1, 2], [0], [0]>} : vector<4x32x32xbf16>, vector<4x32x16xbf16>, vector<4x32x16xf32> -> vector<4x32x16xf32>
      %287 = arith.truncf %286 : vector<4x32x16xf32> to vector<4x32x16xbf16>
      %c0_146 = arith.constant 0 : index
      %c0_147 = arith.constant 0 : index
      %c0_148 = arith.constant 0 : index
      %288 = vector.load %arg15[%c0_146, %c0_147, %c0_148] : memref<4x32x16xbf16, #tpu.memory_space<vmem>>, vector<4x32x16xbf16>
      tpu.vector_store %arg15[%c0_146, %c0_147, %c0_148], %287 {strides = array<i32>} : memref<4x32x16xbf16, #tpu.memory_space<vmem>>, vector<4x32x16xbf16>,
      %c0_149 = arith.constant 0 : index
      %c0_150 = arith.constant 0 : index
      %c0_151 = arith.constant 0 : index
      %289 = vector.load %arg3[%c0_149, %c0_150, %c0_151] : memref<1x16x32xf32, #tpu.memory_space<vmem>>, vector<1x16x32xf32>
      %290 = vector.shape_cast %289 : vector<1x16x32xf32> to vector<16x32xf32>
      %c1_152 = arith.constant 1 : index
      %c0_153 = arith.constant 0 : index
      %c0_154 = arith.constant 0 : index
      %c0_155 = arith.constant 0 : index
      %291 = vector.load %arg8[%c1_152, %c0_153, %c0_154, %c0_155] : memref<3x4x32x16xbf16, #tpu.memory_space<vmem>>, vector<1x4x32x16xbf16>
      %292 = vector.shape_cast %291 : vector<1x4x32x16xbf16> to vector<4x32x16xbf16>
      %293 = arith.truncf %290 : vector<16x32xf32> to vector<16x32xbf16>
      %294 = vector.shape_cast %293 : vector<16x32xbf16> to vector<1x16x32xbf16>
      %295 = vector.shape_cast %294 : vector<1x16x32xbf16> to vector<1x16x32xbf16>
      %296 = vector.broadcast %295 : vector<1x16x32xbf16> to vector<4x16x32xbf16>
      %cst_156 = arith.constant dense<0.000000e+00> : vector<4x16x16xf32>
      %297 = tpu.matmul %296, %292, %cst_156 {dimension_numbers = #tpu.dot_dimension_numbers<[2], [1], [1], [2], [0, 0, 0, 1, 1, 2], [0], [0]>} : vector<4x16x32xbf16>, vector<4x32x16xbf16>, vector<4x16x16xf32> -> vector<4x16x16xf32>
      %298 = arith.truncf %297 : vector<4x16x16xf32> to vector<4x16x16xbf16>
      %c0_157 = arith.constant 0 : index
      %c0_158 = arith.constant 0 : index
      %c0_159 = arith.constant 0 : index
      %299 = vector.load %arg16[%c0_157, %c0_158, %c0_159] : memref<4x16x16xbf16, #tpu.memory_space<vmem>>, vector<4x16x16xbf16>
      tpu.vector_store %arg16[%c0_157, %c0_158, %c0_159], %298 {strides = array<i32>} : memref<4x16x16xbf16, #tpu.memory_space<vmem>>, vector<4x16x16xbf16>,
      %c0_160 = arith.constant 0 : index
      %c0_161 = arith.constant 0 : index
      %c0_162 = arith.constant 0 : index
      %300 = vector.load %arg4[%c0_160, %c0_161, %c0_162] : memref<1x8x32xf32, #tpu.memory_space<vmem>>, vector<1x8x32xf32>
      %301 = vector.shape_cast %300 : vector<1x8x32xf32> to vector<8x32xf32>
      %c2_163 = arith.constant 2 : index
      %c0_164 = arith.constant 0 : index
      %c0_165 = arith.constant 0 : index
      %c0_166 = arith.constant 0 : index
      %302 = vector.load %arg8[%c2_163, %c0_164, %c0_165, %c0_166] : memref<3x4x32x16xbf16, #tpu.memory_space<vmem>>, vector<1x4x32x16xbf16>
      %303 = vector.shape_cast %302 : vector<1x4x32x16xbf16> to vector<4x32x16xbf16>
      %304 = arith.truncf %301 : vector<8x32xf32> to vector<8x32xbf16>
      %305 = vector.shape_cast %304 : vector<8x32xbf16> to vector<1x8x32xbf16>
      %306 = vector.shape_cast %305 : vector<1x8x32xbf16> to vector<1x8x32xbf16>
      %307 = vector.broadcast %306 : vector<1x8x32xbf16> to vector<4x8x32xbf16>
      %cst_167 = arith.constant dense<0.000000e+00> : vector<4x8x16xf32>
      %308 = tpu.matmul %307, %303, %cst_167 {dimension_numbers = #tpu.dot_dimension_numbers<[2], [1], [1], [2], [0, 0, 0, 1, 1, 2], [0], [0]>} : vector<4x8x32xbf16>, vector<4x32x16xbf16>, vector<4x8x16xf32> -> vector<4x8x16xf32>
      %309 = arith.truncf %308 : vector<4x8x16xf32> to vector<4x8x16xbf16>
      %c0_168 = arith.constant 0 : index
      %c0_169 = arith.constant 0 : index
      %c0_170 = arith.constant 0 : index
      %310 = vector.load %arg17[%c0_168, %c0_169, %c0_170] : memref<4x8x16xbf16, #tpu.memory_space<vmem>>, vector<4x8x16xbf16>
      tpu.vector_store %arg17[%c0_168, %c0_169, %c0_170], %309 {strides = array<i32>} : memref<4x8x16xbf16, #tpu.memory_space<vmem>>, vector<4x8x16xbf16>,
    } else {
    }
    %c16_i32 = arith.constant 16 : i32
    %3 = arith.muli %arg1, %c16_i32 : i32
    %c4_i32 = arith.constant 4 : i32
    %4 = arith.subi %3, %c4_i32 : i32
    %c0_i32_1 = arith.constant 0 : i32
    %5 = arith.maxsi %4, %c0_i32_1 : i32
    %c0 = arith.constant 0 : index
    %6 = arith.index_cast %5 : i32 to index
    %c0_2 = arith.constant 0 : index
    %7 = vector.load %arg2[%c0, %6, %c0_2] : memref<1x32x32xf32, #tpu.memory_space<vmem>>, vector<1x20x32xf32>
    %8 = vector.shape_cast %7 : vector<1x20x32xf32> to vector<20x32xf32>
    %9 = tpu.iota {dimensions = array<i32: 0>} : vector<20x32xi32>
    %10 = vector.broadcast %5 : i32 to vector<20x32xi32>
    %11 = arith.addi %10, %9 : vector<20x32xi32>
    %12 = tpu.iota {dimensions = array<i32: 1>} : vector<20x32xi32>
    %13 = arith.cmpi sgt, %12, %11 : vector<20x32xi32>
    %cst = arith.constant -1.000000e+09 : f32
    %cst_3 = arith.constant 0.000000e+00 : f32
    %14 = vector.broadcast %cst : f32 to vector<20x32xf32>
    %15 = vector.broadcast %cst_3 : f32 to vector<20x32xf32>
    %16 = arith.select %13, %14, %15 : vector<20x32xi1>, vector<20x32xf32>
    %c0_4 = arith.constant 0 : index
    %c0_5 = arith.constant 0 : index
    %17 = vector.load %arg5[%c0_4, %c0_5] : memref<4x32xf32, #tpu.memory_space<vmem>>, vector<1x32xf32>
    %c0_6 = arith.constant 0 : index
    %c0_7 = arith.constant 0 : index
    %18 = vector.load %arg6[%c0_6, %c0_7] : memref<4x32xf32, #tpu.memory_space<vmem>>, vector<1x32xf32>
    %cst_8 = arith.constant dense<0.000000e+00> : vector<20xf32>
    %19 = vector.multi_reduction <add>, %8, %cst_8 [1] : vector<20x32xf32> to vector<20xf32>
    %20 = vector.shape_cast %19 : vector<20xf32> to vector<20x1xf32>
    %cst_9 = arith.constant 3.200000e+01 : f32
    %21 = vector.broadcast %cst_9 : f32 to vector<20x1xf32>
    %22 = arith.divf %20, %21 : vector<20x1xf32>
    %23 = vector.broadcast %22 : vector<20x1xf32> to vector<20x32xf32>
    %24 = arith.subf %8, %23 : vector<20x32xf32>
    %25 = arith.mulf %24, %24 : vector<20x32xf32>
    %cst_10 = arith.constant dense<0.000000e+00> : vector<20xf32>
    %26 = vector.multi_reduction <add>, %25, %cst_10 [1] : vector<20x32xf32> to vector<20xf32>
    %27 = vector.shape_cast %26 : vector<20xf32> to vector<20x1xf32>
    %cst_11 = arith.constant 0.0322580636 : f32
    %28 = vector.broadcast %cst_11 : f32 to vector<20x1xf32>
    %29 = arith.mulf %27, %28 : vector<20x1xf32>
    %30 = math.sqrt %29 : vector<20x1xf32>
    %cst_12 = arith.constant 9.99999997E-7 : f32
    %31 = vector.broadcast %cst_12 : f32 to vector<20x1xf32>
    %32 = arith.addf %30, %31 : vector<20x1xf32>
    %33 = tpu.reciprocal %32 {approx = true} : vector<20x1xf32> -> vector<20x1xf32>
    %34 = vector.broadcast %17 : vector<1x32xf32> to vector<20x32xf32>
    %35 = arith.mulf %34, %24 : vector<20x32xf32>
    %36 = vector.broadcast %33 : vector<20x1xf32> to vector<20x32xf32>
    %37 = arith.mulf %35, %36 : vector<20x32xf32>
    %38 = vector.broadcast %18 : vector<1x32xf32> to vector<20x32xf32>
    %39 = arith.addf %37, %38 : vector<20x32xf32>
    %c0_13 = arith.constant 0 : index
    %c0_14 = arith.constant 0 : index
    %c0_15 = arith.constant 0 : index
    %40 = vector.load %arg15[%c0_13, %c0_14, %c0_15] : memref<4x32x16xbf16, #tpu.memory_space<vmem>>, vector<4x32x16xbf16>
    %c0_16 = arith.constant 0 : index
    %c0_17 = arith.constant 0 : index
    %c0_18 = arith.constant 0 : index
    %c0_19 = arith.constant 0 : index
    %41 = vector.load %arg7[%c0_16, %c0_17, %c0_18, %c0_19] : memref<3x4x32x8xbf16, #tpu.memory_space<vmem>>, vector<1x4x32x8xbf16>
    %42 = vector.shape_cast %41 : vector<1x4x32x8xbf16> to vector<4x32x8xbf16>
    %c0_20 = arith.constant 0 : index
    %c0_21 = arith.constant 0 : index
    %c0_22 = arith.constant 0 : index
    %c0_23 = arith.constant 0 : index
    %43 = vector.load %arg9[%c0_20, %c0_21, %c0_22, %c0_23] : memref<3x4x8x32xbf16, #tpu.memory_space<vmem>>, vector<1x4x8x32xbf16>
    %44 = vector.shape_cast %43 : vector<1x4x8x32xbf16> to vector<4x8x32xbf16>
    %45 = vector.extract_strided_slice %40 {offsets = [0, 0, 0], sizes = [4, 32, 8], strides = [1, 1, 1]} : vector<4x32x16xbf16> to vector<4x32x8xbf16>
    %46 = vector.extract_strided_slice %40 {offsets = [0, 0, 8], sizes = [4, 32, 8], strides = [1, 1, 1]} : vector<4x32x16xbf16> to vector<4x32x8xbf16>
    %47 = arith.truncf %39 : vector<20x32xf32> to vector<20x32xbf16>
    %48 = vector.shape_cast %47 : vector<20x32xbf16> to vector<1x20x32xbf16>
    %49 = vector.shape_cast %48 : vector<1x20x32xbf16> to vector<1x20x32xbf16>
    %50 = vector.broadcast %49 : vector<1x20x32xbf16> to vector<4x20x32xbf16>
    %cst_24 = arith.constant dense<0.000000e+00> : vector<4x20x8xf32>
    %51 = tpu.matmul %50, %42, %cst_24 {dimension_numbers = #tpu.dot_dimension_numbers<[2], [1], [1], [2], [0, 0, 0, 1, 1, 2], [0], [0]>} : vector<4x20x32xbf16>, vector<4x32x8xbf16>, vector<4x20x8xf32> -> vector<4x20x8xf32>
    %52 = arith.truncf %51 : vector<4x20x8xf32> to vector<4x20x8xbf16>
    %cst_25 = arith.constant dense<0.000000e+00> : vector<4x20x32xf32>
    %53 = tpu.matmul %52, %45, %cst_25 {dimension_numbers = #tpu.dot_dimension_numbers<[2], [2], [1], [1], [0, 0, 0, 1, 1, 1], [0], [0]>} : vector<4x20x8xbf16>, vector<4x32x8xbf16>, vector<4x20x32xf32> -> vector<4x20x32xf32>
    %54 = vector.shape_cast %16 : vector<20x32xf32> to vector<1x20x32xf32>
    %55 = vector.broadcast %54 : vector<1x20x32xf32> to vector<4x20x32xf32>
    %56 = arith.addf %53, %55 : vector<4x20x32xf32>
    %cst_26 = arith.constant dense<0xFF800000> : vector<4x20xf32>
    %57 = vector.multi_reduction <maximumf>, %56, %cst_26 [2] : vector<4x20x32xf32> to vector<4x20xf32>
    %58 = vector.shape_cast %57 : vector<4x20xf32> to vector<4x20x1xf32>
    %59 = vector.broadcast %58 : vector<4x20x1xf32> to vector<4x20x32xf32>
    %60 = arith.subf %56, %59 : vector<4x20x32xf32>
    %61 = math.exp %60 : vector<4x20x32xf32>
    %cst_27 = arith.constant dense<0.000000e+00> : vector<4x20xf32>
    %62 = vector.multi_reduction <add>, %61, %cst_27 [2] : vector<4x20x32xf32> to vector<4x20xf32>
    %63 = vector.shape_cast %62 : vector<4x20xf32> to vector<4x20x1xf32>
    %64 = tpu.reciprocal %63 {approx = true} : vector<4x20x1xf32> -> vector<4x20x1xf32>
    %65 = vector.broadcast %64 : vector<4x20x1xf32> to vector<4x20x32xf32>
    %66 = arith.mulf %61, %65 : vector<4x20x32xf32>
    %67 = arith.truncf %66 : vector<4x20x32xf32> to vector<4x20x32xbf16>
    %cst_28 = arith.constant dense<0.000000e+00> : vector<4x20x8xf32>
    %68 = tpu.matmul %67, %46, %cst_28 {dimension_numbers = #tpu.dot_dimension_numbers<[2], [1], [1], [2], [0, 0, 0, 1, 1, 2], [0], [0]>} : vector<4x20x32xbf16>, vector<4x32x8xbf16>, vector<4x20x8xf32> -> vector<4x20x8xf32>
    %69 = arith.truncf %68 : vector<4x20x8xf32> to vector<4x20x8xbf16>
    %cst_29 = arith.constant dense<0.000000e+00> : vector<4x20x32xf32>
    %70 = tpu.matmul %69, %44, %cst_29 {dimension_numbers = #tpu.dot_dimension_numbers<[2], [1], [1], [2], [0, 0, 0, 1, 1, 2], [0], [0]>} : vector<4x20x8xbf16>, vector<4x8x32xbf16>, vector<4x20x32xf32> -> vector<4x20x32xf32>
    %cst_30 = arith.constant dense<0.000000e+00> : vector<20x32xf32>
    %71 = vector.multi_reduction <add>, %70, %cst_30 [0] : vector<4x20x32xf32> to vector<20x32xf32>
    %72 = arith.addf %8, %71 : vector<20x32xf32>
    %c1 = arith.constant 1 : index
    %c0_31 = arith.constant 0 : index
    %73 = vector.load %arg5[%c1, %c0_31] : memref<4x32xf32, #tpu.memory_space<vmem>>, vector<1x32xf32>
    %c1_32 = arith.constant 1 : index
    %c0_33 = arith.constant 0 : index
    %74 = vector.load %arg6[%c1_32, %c0_33] : memref<4x32xf32, #tpu.memory_space<vmem>>, vector<1x32xf32>
    %cst_34 = arith.constant dense<0.000000e+00> : vector<20xf32>
    %75 = vector.multi_reduction <add>, %72, %cst_34 [1] : vector<20x32xf32> to vector<20xf32>
    %76 = vector.shape_cast %75 : vector<20xf32> to vector<20x1xf32>
    %cst_35 = arith.constant 3.200000e+01 : f32
    %77 = vector.broadcast %cst_35 : f32 to vector<20x1xf32>
    %78 = arith.divf %76, %77 : vector<20x1xf32>
    %79 = vector.broadcast %78 : vector<20x1xf32> to vector<20x32xf32>
    %80 = arith.subf %72, %79 : vector<20x32xf32>
    %81 = arith.mulf %80, %80 : vector<20x32xf32>
    %cst_36 = arith.constant dense<0.000000e+00> : vector<20xf32>
    %82 = vector.multi_reduction <add>, %81, %cst_36 [1] : vector<20x32xf32> to vector<20xf32>
    %83 = vector.shape_cast %82 : vector<20xf32> to vector<20x1xf32>
    %cst_37 = arith.constant 0.0322580636 : f32
    %84 = vector.broadcast %cst_37 : f32 to vector<20x1xf32>
    %85 = arith.mulf %83, %84 : vector<20x1xf32>
    %86 = math.sqrt %85 : vector<20x1xf32>
    %cst_38 = arith.constant 9.99999997E-7 : f32
    %87 = vector.broadcast %cst_38 : f32 to vector<20x1xf32>
    %88 = arith.addf %86, %87 : vector<20x1xf32>
    %89 = tpu.reciprocal %88 {approx = true} : vector<20x1xf32> -> vector<20x1xf32>
    %90 = vector.broadcast %73 : vector<1x32xf32> to vector<20x32xf32>
    %91 = arith.mulf %90, %80 : vector<20x32xf32>
    %92 = vector.broadcast %89 : vector<20x1xf32> to vector<20x32xf32>
    %93 = arith.mulf %91, %92 : vector<20x32xf32>
    %94 = vector.broadcast %74 : vector<1x32xf32> to vector<20x32xf32>
    %95 = arith.addf %93, %94 : vector<20x32xf32>
    %c0_39 = arith.constant 0 : index
    %c0_40 = arith.constant 0 : index
    %c0_41 = arith.constant 0 : index
    %96 = vector.load %arg16[%c0_39, %c0_40, %c0_41] : memref<4x16x16xbf16, #tpu.memory_space<vmem>>, vector<4x16x16xbf16>
    %c1_42 = arith.constant 1 : index
    %c0_43 = arith.constant 0 : index
    %c0_44 = arith.constant 0 : index
    %c0_45 = arith.constant 0 : index
    %97 = vector.load %arg7[%c1_42, %c0_43, %c0_44, %c0_45] : memref<3x4x32x8xbf16, #tpu.memory_space<vmem>>, vector<1x4x32x8xbf16>
    %98 = vector.shape_cast %97 : vector<1x4x32x8xbf16> to vector<4x32x8xbf16>
    %c1_46 = arith.constant 1 : index
    %c0_47 = arith.constant 0 : index
    %c0_48 = arith.constant 0 : index
    %c0_49 = arith.constant 0 : index
    %99 = vector.load %arg9[%c1_46, %c0_47, %c0_48, %c0_49] : memref<3x4x8x32xbf16, #tpu.memory_space<vmem>>, vector<1x4x8x32xbf16>
    %100 = vector.shape_cast %99 : vector<1x4x8x32xbf16> to vector<4x8x32xbf16>
    %101 = vector.extract_strided_slice %96 {offsets = [0, 0, 0], sizes = [4, 16, 8], strides = [1, 1, 1]} : vector<4x16x16xbf16> to vector<4x16x8xbf16>
    %102 = vector.extract_strided_slice %96 {offsets = [0, 0, 8], sizes = [4, 16, 8], strides = [1, 1, 1]} : vector<4x16x16xbf16> to vector<4x16x8xbf16>
    %103 = arith.truncf %95 : vector<20x32xf32> to vector<20x32xbf16>
    %104 = vector.shape_cast %103 : vector<20x32xbf16> to vector<1x20x32xbf16>
    %105 = vector.shape_cast %104 : vector<1x20x32xbf16> to vector<1x20x32xbf16>
    %106 = vector.broadcast %105 : vector<1x20x32xbf16> to vector<4x20x32xbf16>
    %cst_50 = arith.constant dense<0.000000e+00> : vector<4x20x8xf32>
    %107 = tpu.matmul %106, %98, %cst_50 {dimension_numbers = #tpu.dot_dimension_numbers<[2], [1], [1], [2], [0, 0, 0, 1, 1, 2], [0], [0]>} : vector<4x20x32xbf16>, vector<4x32x8xbf16>, vector<4x20x8xf32> -> vector<4x20x8xf32>
    %108 = arith.truncf %107 : vector<4x20x8xf32> to vector<4x20x8xbf16>
    %cst_51 = arith.constant dense<0.000000e+00> : vector<4x20x16xf32>
    %109 = tpu.matmul %108, %101, %cst_51 {dimension_numbers = #tpu.dot_dimension_numbers<[2], [2], [1], [1], [0, 0, 0, 1, 1, 1], [0], [0]>} : vector<4x20x8xbf16>, vector<4x16x8xbf16>, vector<4x20x16xf32> -> vector<4x20x16xf32>
    %cst_52 = arith.constant dense<0xFF800000> : vector<4x20xf32>
    %110 = vector.multi_reduction <maximumf>, %109, %cst_52 [2] : vector<4x20x16xf32> to vector<4x20xf32>
    %111 = vector.shape_cast %110 : vector<4x20xf32> to vector<4x20x1xf32>
    %112 = vector.broadcast %111 : vector<4x20x1xf32> to vector<4x20x16xf32>
    %113 = arith.subf %109, %112 : vector<4x20x16xf32>
    %114 = math.exp %113 : vector<4x20x16xf32>
    %cst_53 = arith.constant dense<0.000000e+00> : vector<4x20xf32>
    %115 = vector.multi_reduction <add>, %114, %cst_53 [2] : vector<4x20x16xf32> to vector<4x20xf32>
    %116 = vector.shape_cast %115 : vector<4x20xf32> to vector<4x20x1xf32>
    %117 = tpu.reciprocal %116 {approx = true} : vector<4x20x1xf32> -> vector<4x20x1xf32>
    %118 = vector.broadcast %117 : vector<4x20x1xf32> to vector<4x20x16xf32>
    %119 = arith.mulf %114, %118 : vector<4x20x16xf32>
    %120 = arith.truncf %119 : vector<4x20x16xf32> to vector<4x20x16xbf16>
    %cst_54 = arith.constant dense<0.000000e+00> : vector<4x20x8xf32>
    %121 = tpu.matmul %120, %102, %cst_54 {dimension_numbers = #tpu.dot_dimension_numbers<[2], [1], [1], [2], [0, 0, 0, 1, 1, 2], [0], [0]>} : vector<4x20x16xbf16>, vector<4x16x8xbf16>, vector<4x20x8xf32> -> vector<4x20x8xf32>
    %122 = arith.truncf %121 : vector<4x20x8xf32> to vector<4x20x8xbf16>
    %cst_55 = arith.constant dense<0.000000e+00> : vector<4x20x32xf32>
    %123 = tpu.matmul %122, %100, %cst_55 {dimension_numbers = #tpu.dot_dimension_numbers<[2], [1], [1], [2], [0, 0, 0, 1, 1, 2], [0], [0]>} : vector<4x20x8xbf16>, vector<4x8x32xbf16>, vector<4x20x32xf32> -> vector<4x20x32xf32>
    %cst_56 = arith.constant dense<0.000000e+00> : vector<20x32xf32>
    %124 = vector.multi_reduction <add>, %123, %cst_56 [0] : vector<4x20x32xf32> to vector<20x32xf32>
    %125 = arith.addf %72, %124 : vector<20x32xf32>
    %c2 = arith.constant 2 : index
    %c0_57 = arith.constant 0 : index
    %126 = vector.load %arg5[%c2, %c0_57] : memref<4x32xf32, #tpu.memory_space<vmem>>, vector<1x32xf32>
    %c2_58 = arith.constant 2 : index
    %c0_59 = arith.constant 0 : index
    %127 = vector.load %arg6[%c2_58, %c0_59] : memref<4x32xf32, #tpu.memory_space<vmem>>, vector<1x32xf32>
    %cst_60 = arith.constant dense<0.000000e+00> : vector<20xf32>
    %128 = vector.multi_reduction <add>, %125, %cst_60 [1] : vector<20x32xf32> to vector<20xf32>
    %129 = vector.shape_cast %128 : vector<20xf32> to vector<20x1xf32>
    %cst_61 = arith.constant 3.200000e+01 : f32
    %130 = vector.broadcast %cst_61 : f32 to vector<20x1xf32>
    %131 = arith.divf %129, %130 : vector<20x1xf32>
    %132 = vector.broadcast %131 : vector<20x1xf32> to vector<20x32xf32>
    %133 = arith.subf %125, %132 : vector<20x32xf32>
    %134 = arith.mulf %133, %133 : vector<20x32xf32>
    %cst_62 = arith.constant dense<0.000000e+00> : vector<20xf32>
    %135 = vector.multi_reduction <add>, %134, %cst_62 [1] : vector<20x32xf32> to vector<20xf32>
    %136 = vector.shape_cast %135 : vector<20xf32> to vector<20x1xf32>
    %cst_63 = arith.constant 0.0322580636 : f32
    %137 = vector.broadcast %cst_63 : f32 to vector<20x1xf32>
    %138 = arith.mulf %136, %137 : vector<20x1xf32>
    %139 = math.sqrt %138 : vector<20x1xf32>
    %cst_64 = arith.constant 9.99999997E-7 : f32
    %140 = vector.broadcast %cst_64 : f32 to vector<20x1xf32>
    %141 = arith.addf %139, %140 : vector<20x1xf32>
    %142 = tpu.reciprocal %141 {approx = true} : vector<20x1xf32> -> vector<20x1xf32>
    %143 = vector.broadcast %126 : vector<1x32xf32> to vector<20x32xf32>
    %144 = arith.mulf %143, %133 : vector<20x32xf32>
    %145 = vector.broadcast %142 : vector<20x1xf32> to vector<20x32xf32>
    %146 = arith.mulf %144, %145 : vector<20x32xf32>
    %147 = vector.broadcast %127 : vector<1x32xf32> to vector<20x32xf32>
    %148 = arith.addf %146, %147 : vector<20x32xf32>
    %c0_65 = arith.constant 0 : index
    %c0_66 = arith.constant 0 : index
    %c0_67 = arith.constant 0 : index
    %149 = vector.load %arg17[%c0_65, %c0_66, %c0_67] : memref<4x8x16xbf16, #tpu.memory_space<vmem>>, vector<4x8x16xbf16>
    %c2_68 = arith.constant 2 : index
    %c0_69 = arith.constant 0 : index
    %c0_70 = arith.constant 0 : index
    %c0_71 = arith.constant 0 : index
    %150 = vector.load %arg7[%c2_68, %c0_69, %c0_70, %c0_71] : memref<3x4x32x8xbf16, #tpu.memory_space<vmem>>, vector<1x4x32x8xbf16>
    %151 = vector.shape_cast %150 : vector<1x4x32x8xbf16> to vector<4x32x8xbf16>
    %c2_72 = arith.constant 2 : index
    %c0_73 = arith.constant 0 : index
    %c0_74 = arith.constant 0 : index
    %c0_75 = arith.constant 0 : index
    %152 = vector.load %arg9[%c2_72, %c0_73, %c0_74, %c0_75] : memref<3x4x8x32xbf16, #tpu.memory_space<vmem>>, vector<1x4x8x32xbf16>
    %153 = vector.shape_cast %152 : vector<1x4x8x32xbf16> to vector<4x8x32xbf16>
    %154 = vector.extract_strided_slice %149 {offsets = [0, 0, 0], sizes = [4, 8, 8], strides = [1, 1, 1]} : vector<4x8x16xbf16> to vector<4x8x8xbf16>
    %155 = vector.extract_strided_slice %149 {offsets = [0, 0, 8], sizes = [4, 8, 8], strides = [1, 1, 1]} : vector<4x8x16xbf16> to vector<4x8x8xbf16>
    %156 = arith.truncf %148 : vector<20x32xf32> to vector<20x32xbf16>
    %157 = vector.shape_cast %156 : vector<20x32xbf16> to vector<1x20x32xbf16>
    %158 = vector.shape_cast %157 : vector<1x20x32xbf16> to vector<1x20x32xbf16>
    %159 = vector.broadcast %158 : vector<1x20x32xbf16> to vector<4x20x32xbf16>
    %cst_76 = arith.constant dense<0.000000e+00> : vector<4x20x8xf32>
    %160 = tpu.matmul %159, %151, %cst_76 {dimension_numbers = #tpu.dot_dimension_numbers<[2], [1], [1], [2], [0, 0, 0, 1, 1, 2], [0], [0]>} : vector<4x20x32xbf16>, vector<4x32x8xbf16>, vector<4x20x8xf32> -> vector<4x20x8xf32>
    %161 = arith.truncf %160 : vector<4x20x8xf32> to vector<4x20x8xbf16>
    %cst_77 = arith.constant dense<0.000000e+00> : vector<4x20x8xf32>
    %162 = tpu.matmul %161, %154, %cst_77 {dimension_numbers = #tpu.dot_dimension_numbers<[2], [2], [1], [1], [0, 0, 0, 1, 1, 1], [0], [0]>} : vector<4x20x8xbf16>, vector<4x8x8xbf16>, vector<4x20x8xf32> -> vector<4x20x8xf32>
    %cst_78 = arith.constant dense<0xFF800000> : vector<4x20xf32>
    %163 = vector.multi_reduction <maximumf>, %162, %cst_78 [2] : vector<4x20x8xf32> to vector<4x20xf32>
    %164 = vector.shape_cast %163 : vector<4x20xf32> to vector<4x20x1xf32>
    %165 = vector.broadcast %164 : vector<4x20x1xf32> to vector<4x20x8xf32>
    %166 = arith.subf %162, %165 : vector<4x20x8xf32>
    %167 = math.exp %166 : vector<4x20x8xf32>
    %cst_79 = arith.constant dense<0.000000e+00> : vector<4x20xf32>
    %168 = vector.multi_reduction <add>, %167, %cst_79 [2] : vector<4x20x8xf32> to vector<4x20xf32>
    %169 = vector.shape_cast %168 : vector<4x20xf32> to vector<4x20x1xf32>
    %170 = tpu.reciprocal %169 {approx = true} : vector<4x20x1xf32> -> vector<4x20x1xf32>
    %171 = vector.broadcast %170 : vector<4x20x1xf32> to vector<4x20x8xf32>
    %172 = arith.mulf %167, %171 : vector<4x20x8xf32>
    %173 = arith.truncf %172 : vector<4x20x8xf32> to vector<4x20x8xbf16>
    %cst_80 = arith.constant dense<0.000000e+00> : vector<4x20x8xf32>
    %174 = tpu.matmul %173, %155, %cst_80 {dimension_numbers = #tpu.dot_dimension_numbers<[2], [1], [1], [2], [0, 0, 0, 1, 1, 2], [0], [0]>} : vector<4x20x8xbf16>, vector<4x8x8xbf16>, vector<4x20x8xf32> -> vector<4x20x8xf32>
    %175 = arith.truncf %174 : vector<4x20x8xf32> to vector<4x20x8xbf16>
    %cst_81 = arith.constant dense<0.000000e+00> : vector<4x20x32xf32>
    %176 = tpu.matmul %175, %153, %cst_81 {dimension_numbers = #tpu.dot_dimension_numbers<[2], [1], [1], [2], [0, 0, 0, 1, 1, 2], [0], [0]>} : vector<4x20x8xbf16>, vector<4x8x32xbf16>, vector<4x20x32xf32> -> vector<4x20x32xf32>
    %cst_82 = arith.constant dense<0.000000e+00> : vector<20x32xf32>
    %177 = vector.multi_reduction <add>, %176, %cst_82 [0] : vector<4x20x32xf32> to vector<20x32xf32>
    %178 = arith.addf %125, %177 : vector<20x32xf32>
    %c3 = arith.constant 3 : index
    %c0_83 = arith.constant 0 : index
    %179 = vector.load %arg5[%c3, %c0_83] : memref<4x32xf32, #tpu.memory_space<vmem>>, vector<1x32xf32>
    %c3_84 = arith.constant 3 : index
    %c0_85 = arith.constant 0 : index
    %180 = vector.load %arg6[%c3_84, %c0_85] : memref<4x32xf32, #tpu.memory_space<vmem>>, vector<1x32xf32>
    %cst_86 = arith.constant dense<0.000000e+00> : vector<20xf32>
    %181 = vector.multi_reduction <add>, %178, %cst_86 [1] : vector<20x32xf32> to vector<20xf32>
    %182 = vector.shape_cast %181 : vector<20xf32> to vector<20x1xf32>
    %cst_87 = arith.constant 3.200000e+01 : f32
    %183 = vector.broadcast %cst_87 : f32 to vector<20x1xf32>
    %184 = arith.divf %182, %183 : vector<20x1xf32>
    %185 = vector.broadcast %184 : vector<20x1xf32> to vector<20x32xf32>
    %186 = arith.subf %178, %185 : vector<20x32xf32>
    %187 = arith.mulf %186, %186 : vector<20x32xf32>
    %cst_88 = arith.constant dense<0.000000e+00> : vector<20xf32>
    %188 = vector.multi_reduction <add>, %187, %cst_88 [1] : vector<20x32xf32> to vector<20xf32>
    %189 = vector.shape_cast %188 : vector<20xf32> to vector<20x1xf32>
    %cst_89 = arith.constant 0.0322580636 : f32
    %190 = vector.broadcast %cst_89 : f32 to vector<20x1xf32>
    %191 = arith.mulf %189, %190 : vector<20x1xf32>
    %192 = math.sqrt %191 : vector<20x1xf32>
    %cst_90 = arith.constant 9.99999997E-7 : f32
    %193 = vector.broadcast %cst_90 : f32 to vector<20x1xf32>
    %194 = arith.addf %192, %193 : vector<20x1xf32>
    %195 = tpu.reciprocal %194 {approx = true} : vector<20x1xf32> -> vector<20x1xf32>
    %196 = vector.broadcast %179 : vector<1x32xf32> to vector<20x32xf32>
    %197 = arith.mulf %196, %186 : vector<20x32xf32>
    %198 = vector.broadcast %195 : vector<20x1xf32> to vector<20x32xf32>
    %199 = arith.mulf %197, %198 : vector<20x32xf32>
    %200 = vector.broadcast %180 : vector<1x32xf32> to vector<20x32xf32>
    %201 = arith.addf %199, %200 : vector<20x32xf32>
    %c0_91 = arith.constant 0 : index
    %c0_92 = arith.constant 0 : index
    %202 = vector.load %arg11[%c0_91, %c0_92] : memref<1x64xf32, #tpu.memory_space<vmem>>, vector<1x64xf32>
    %203 = arith.truncf %201 : vector<20x32xf32> to vector<20x32xbf16>
    %c2_93 = arith.constant 2 : index
    %c0_94 = arith.constant 0 : index
    %c0_95 = arith.constant 0 : index
    %204 = vector.load %arg10[%c2_93, %c0_94, %c0_95] : memref<3x32x64xbf16, #tpu.memory_space<vmem>>, vector<1x32x64xbf16>
    %205 = vector.shape_cast %204 : vector<1x32x64xbf16> to vector<32x64xbf16>
    %cst_96 = arith.constant dense<0.000000e+00> : vector<20x64xf32>
    %206 = tpu.matmul %203, %205, %cst_96 {dimension_numbers = #tpu.dot_dimension_numbers<[1], [0], [0], [1], [0, 0, 1, 1], [], []>} : vector<20x32xbf16>, vector<32x64xbf16>, vector<20x64xf32> -> vector<20x64xf32>
    %c1_97 = arith.constant 1 : index
    %c0_98 = arith.constant 0 : index
    %c0_99 = arith.constant 0 : index
    %207 = vector.load %arg10[%c1_97, %c0_98, %c0_99] : memref<3x32x64xbf16, #tpu.memory_space<vmem>>, vector<1x32x64xbf16>
    %208 = vector.shape_cast %207 : vector<1x32x64xbf16> to vector<32x64xbf16>
    %cst_100 = arith.constant dense<0.000000e+00> : vector<20x64xf32>
    %209 = tpu.matmul %203, %208, %cst_100 {dimension_numbers = #tpu.dot_dimension_numbers<[1], [0], [0], [1], [0, 0, 1, 1], [], []>} : vector<20x32xbf16>, vector<32x64xbf16>, vector<20x64xf32> -> vector<20x64xf32>
    %c0_101 = arith.constant 0 : index
    %c0_102 = arith.constant 0 : index
    %c0_103 = arith.constant 0 : index
    %210 = vector.load %arg10[%c0_101, %c0_102, %c0_103] : memref<3x32x64xbf16, #tpu.memory_space<vmem>>, vector<1x32x64xbf16>
    %211 = vector.shape_cast %210 : vector<1x32x64xbf16> to vector<32x64xbf16>
    %cst_104 = arith.constant dense<0.000000e+00> : vector<20x64xf32>
    %212 = tpu.matmul %203, %211, %cst_104 {dimension_numbers = #tpu.dot_dimension_numbers<[1], [0], [0], [1], [0, 0, 1, 1], [], []>} : vector<20x32xbf16>, vector<32x64xbf16>, vector<20x64xf32> -> vector<20x64xf32>
    %cst_105 = arith.constant 0.000000e+00 : f32
    %213 = vector.broadcast %cst_105 : f32 to vector<1x64xf32>
    %cst_106 = arith.constant 0.000000e+00 : f32
    %214 = vector.broadcast %cst_106 : f32 to vector<2x64xf32>
    %215 = vector.extract_strided_slice %209 {offsets = [0, 0], sizes = [19, 64], strides = [1, 1]} : vector<20x64xf32> to vector<19x64xf32>
    %216 = tpu.concatenate %213, %215 in 0 : vector<1x64xf32>, vector<19x64xf32> -> vector<20x64xf32>
    %217 = arith.addf %206, %216 : vector<20x64xf32>
    %218 = vector.extract_strided_slice %212 {offsets = [0, 0], sizes = [18, 64], strides = [1, 1]} : vector<20x64xf32> to vector<18x64xf32>
    %219 = tpu.concatenate %214, %218 in 0 : vector<2x64xf32>, vector<18x64xf32> -> vector<20x64xf32>
    %220 = arith.addf %217, %219 : vector<20x64xf32>
    %221 = vector.broadcast %202 : vector<1x64xf32> to vector<20x64xf32>
    %222 = arith.addf %220, %221 : vector<20x64xf32>
    %cst_107 = arith.constant 0.000000e+00 : f32
    %223 = vector.broadcast %cst_107 : f32 to vector<20x64xf32>
    %224 = arith.maximumf %222, %223 : vector<20x64xf32>
    %c0_108 = arith.constant 0 : index
    %c0_109 = arith.constant 0 : index
    %225 = vector.load %arg13[%c0_108, %c0_109] : memref<1x32xf32, #tpu.memory_space<vmem>>, vector<1x32xf32>
    %226 = arith.truncf %224 : vector<20x64xf32> to vector<20x64xbf16>
    %c2_110 = arith.constant 2 : index
    %c0_111 = arith.constant 0 : index
    %c0_112 = arith.constant 0 : index
    %227 = vector.load %arg12[%c2_110, %c0_111, %c0_112] : memref<3x64x32xbf16, #tpu.memory_space<vmem>>, vector<1x64x32xbf16>
    %228 = vector.shape_cast %227 : vector<1x64x32xbf16> to vector<64x32xbf16>
    %cst_113 = arith.constant dense<0.000000e+00> : vector<20x32xf32>
    %229 = tpu.matmul %226, %228, %cst_113 {dimension_numbers = #tpu.dot_dimension_numbers<[1], [0], [0], [1], [0, 0, 1, 1], [], []>} : vector<20x64xbf16>, vector<64x32xbf16>, vector<20x32xf32> -> vector<20x32xf32>
    %c1_114 = arith.constant 1 : index
    %c0_115 = arith.constant 0 : index
    %c0_116 = arith.constant 0 : index
    %230 = vector.load %arg12[%c1_114, %c0_115, %c0_116] : memref<3x64x32xbf16, #tpu.memory_space<vmem>>, vector<1x64x32xbf16>
    %231 = vector.shape_cast %230 : vector<1x64x32xbf16> to vector<64x32xbf16>
    %cst_117 = arith.constant dense<0.000000e+00> : vector<20x32xf32>
    %232 = tpu.matmul %226, %231, %cst_117 {dimension_numbers = #tpu.dot_dimension_numbers<[1], [0], [0], [1], [0, 0, 1, 1], [], []>} : vector<20x64xbf16>, vector<64x32xbf16>, vector<20x32xf32> -> vector<20x32xf32>
    %c0_118 = arith.constant 0 : index
    %c0_119 = arith.constant 0 : index
    %c0_120 = arith.constant 0 : index
    %233 = vector.load %arg12[%c0_118, %c0_119, %c0_120] : memref<3x64x32xbf16, #tpu.memory_space<vmem>>, vector<1x64x32xbf16>
    %234 = vector.shape_cast %233 : vector<1x64x32xbf16> to vector<64x32xbf16>
    %cst_121 = arith.constant dense<0.000000e+00> : vector<20x32xf32>
    %235 = tpu.matmul %226, %234, %cst_121 {dimension_numbers = #tpu.dot_dimension_numbers<[1], [0], [0], [1], [0, 0, 1, 1], [], []>} : vector<20x64xbf16>, vector<64x32xbf16>, vector<20x32xf32> -> vector<20x32xf32>
    %cst_122 = arith.constant 0.000000e+00 : f32
    %236 = vector.broadcast %cst_122 : f32 to vector<1x32xf32>
    %cst_123 = arith.constant 0.000000e+00 : f32
    %237 = vector.broadcast %cst_123 : f32 to vector<2x32xf32>
    %238 = vector.extract_strided_slice %232 {offsets = [0, 0], sizes = [19, 32], strides = [1, 1]} : vector<20x32xf32> to vector<19x32xf32>
    %239 = tpu.concatenate %236, %238 in 0 : vector<1x32xf32>, vector<19x32xf32> -> vector<20x32xf32>
    %240 = arith.addf %229, %239 : vector<20x32xf32>
    %241 = vector.extract_strided_slice %235 {offsets = [0, 0], sizes = [18, 32], strides = [1, 1]} : vector<20x32xf32> to vector<18x32xf32>
    %242 = tpu.concatenate %237, %241 in 0 : vector<2x32xf32>, vector<18x32xf32> -> vector<20x32xf32>
    %243 = arith.addf %240, %242 : vector<20x32xf32>
    %244 = vector.broadcast %225 : vector<1x32xf32> to vector<20x32xf32>
    %245 = arith.addf %243, %244 : vector<20x32xf32>
    %cst_124 = arith.constant 0.000000e+00 : f32
    %246 = vector.broadcast %cst_124 : f32 to vector<20x32xf32>
    %247 = arith.maximumf %245, %246 : vector<20x32xf32>
    %248 = arith.addf %178, %247 : vector<20x32xf32>
    %c0_i32_125 = arith.constant 0 : i32
    %249 = arith.cmpi eq, %arg1, %c0_i32_125 : i32
    %250 = arith.extui %249 : i1 to i32
    %c0_i32_126 = arith.constant 0 : i32
    %251 = arith.cmpi ne, %250, %c0_i32_126 : i32
    scf.if %251 {
      %255 = vector.extract_strided_slice %248 {offsets = [0, 0], sizes = [16, 32], strides = [1, 1]} : vector<20x32xf32> to vector<16x32xf32>
      %c0_129 = arith.constant 0 : index
      %c0_130 = arith.constant 0 : index
      %c0_131 = arith.constant 0 : index
      %256 = vector.load %arg14[%c0_129, %c0_130, %c0_131] : memref<1x16x32xf32, #tpu.memory_space<vmem>>, vector<1x16x32xf32>
      %257 = vector.shape_cast %256 : vector<1x16x32xf32> to vector<16x32xf32>
      %258 = vector.shape_cast %255 : vector<16x32xf32> to vector<1x16x32xf32>
      tpu.vector_store %arg14[%c0_129, %c0_130, %c0_131], %258 {strides = array<i32>} : memref<1x16x32xf32, #tpu.memory_space<vmem>>, vector<1x16x32xf32>,
    } else {
    }
    %c0_i32_127 = arith.constant 0 : i32
    %252 = arith.cmpi sgt, %arg1, %c0_i32_127 : i32
    %253 = arith.extui %252 : i1 to i32
    %c0_i32_128 = arith.constant 0 : i32
    %254 = arith.cmpi ne, %253, %c0_i32_128 : i32
    scf.if %254 {
      %255 = vector.extract_strided_slice %248 {offsets = [4, 0], sizes = [16, 32], strides = [1, 1]} : vector<20x32xf32> to vector<16x32xf32>
      %c0_129 = arith.constant 0 : index
      %c0_130 = arith.constant 0 : index
      %c0_131 = arith.constant 0 : index
      %256 = vector.load %arg14[%c0_129, %c0_130, %c0_131] : memref<1x16x32xf32, #tpu.memory_space<vmem>>, vector<1x16x32xf32>
      %257 = vector.shape_cast %256 : vector<1x16x32xf32> to vector<16x32xf32>
      %258 = vector.shape_cast %255 : vector<16x32xf32> to vector<1x16x32xf32>
      tpu.vector_store %arg14[%c0_129, %c0_130, %c0_131], %258 {strides = array<i32>} : memref<1x16x32xf32, #tpu.memory_space<vmem>>, vector<1x16x32xf32>,
    } else {
    }
    return
  }
  func.func @transform_0(%arg0: i32, %arg1: i32) -> (i32, i32, i32) {
    %c0_i32 = arith.constant 0 : i32
    %c0_i32_0 = arith.constant 0 : i32
    %c0_i32_1 = arith.constant 0 : i32
    return %arg0, %c0_i32, %c0_i32_0 : i32, i32, i32
  }
  func.func @transform_1(%arg0: i32, %arg1: i32) -> (i32, i32, i32) {
    %c0_i32 = arith.constant 0 : i32
    %c0_i32_0 = arith.constant 0 : i32
    %c0_i32_1 = arith.constant 0 : i32
    return %arg0, %c0_i32, %c0_i32_0 : i32, i32, i32
  }
  func.func @transform_2(%arg0: i32, %arg1: i32) -> (i32, i32, i32) {
    %c0_i32 = arith.constant 0 : i32
    %c0_i32_0 = arith.constant 0 : i32
    %c0_i32_1 = arith.constant 0 : i32
    return %arg0, %c0_i32, %c0_i32_0 : i32, i32, i32
  }
  func.func @transform_3(%arg0: i32, %arg1: i32) -> (i32, i32) {
    %c0_i32 = arith.constant 0 : i32
    %c0_i32_0 = arith.constant 0 : i32
    %c0_i32_1 = arith.constant 0 : i32
    return %c0_i32, %c0_i32_0 : i32, i32
  }
  func.func @transform_4(%arg0: i32, %arg1: i32) -> (i32, i32) {
    %c0_i32 = arith.constant 0 : i32
    %c0_i32_0 = arith.constant 0 : i32
    %c0_i32_1 = arith.constant 0 : i32
    return %c0_i32, %c0_i32_0 : i32, i32
  }
  func.func @transform_5(%arg0: i32, %arg1: i32) -> (i32, i32, i32, i32) {
    %c0_i32 = arith.constant 0 : i32
    %c0_i32_0 = arith.constant 0 : i32
    %c0_i32_1 = arith.constant 0 : i32
    %c0_i32_2 = arith.constant 0 : i32
    %c0_i32_3 = arith.constant 0 : i32
    return %c0_i32, %c0_i32_0, %c0_i32_1, %c0_i32_2 : i32, i32, i32, i32
  }
  func.func @transform_6(%arg0: i32, %arg1: i32) -> (i32, i32, i32, i32) {
    %c0_i32 = arith.constant 0 : i32
    %c0_i32_0 = arith.constant 0 : i32
    %c0_i32_1 = arith.constant 0 : i32
    %c0_i32_2 = arith.constant 0 : i32
    %c0_i32_3 = arith.constant 0 : i32
    return %c0_i32, %c0_i32_0, %c0_i32_1, %c0_i32_2 : i32, i32, i32, i32
  }
  func.func @transform_7(%arg0: i32, %arg1: i32) -> (i32, i32, i32, i32) {
    %c0_i32 = arith.constant 0 : i32
    %c0_i32_0 = arith.constant 0 : i32
    %c0_i32_1 = arith.constant 0 : i32
    %c0_i32_2 = arith.constant 0 : i32
    %c0_i32_3 = arith.constant 0 : i32
    return %c0_i32, %c0_i32_0, %c0_i32_1, %c0_i32_2 : i32, i32, i32, i32
  }
  func.func @transform_8(%arg0: i32, %arg1: i32) -> (i32, i32, i32) {
    %c0_i32 = arith.constant 0 : i32
    %c0_i32_0 = arith.constant 0 : i32
    %c0_i32_1 = arith.constant 0 : i32
    %c0_i32_2 = arith.constant 0 : i32
    return %c0_i32, %c0_i32_0, %c0_i32_1 : i32, i32, i32
  }
  func.func @transform_9(%arg0: i32, %arg1: i32) -> (i32, i32) {
    %c0_i32 = arith.constant 0 : i32
    %c0_i32_0 = arith.constant 0 : i32
    %c0_i32_1 = arith.constant 0 : i32
    return %c0_i32, %c0_i32_0 : i32, i32
  }
  func.func @transform_10(%arg0: i32, %arg1: i32) -> (i32, i32, i32) {
    %c0_i32 = arith.constant 0 : i32
    %c0_i32_0 = arith.constant 0 : i32
    %c0_i32_1 = arith.constant 0 : i32
    %c0_i32_2 = arith.constant 0 : i32
    return %c0_i32, %c0_i32_0, %c0_i32_1 : i32, i32, i32
  }
  func.func @transform_11(%arg0: i32, %arg1: i32) -> (i32, i32) {
    %c0_i32 = arith.constant 0 : i32
    %c0_i32_0 = arith.constant 0 : i32
    %c0_i32_1 = arith.constant 0 : i32
    return %c0_i32, %c0_i32_0 : i32, i32
  }
  func.func @transform_12(%arg0: i32, %arg1: i32) -> (i32, i32, i32) {
    %c0_i32 = arith.constant 0 : i32
    %c0_i32_0 = arith.constant 0 : i32
    return %arg0, %arg1, %c0_i32 : i32, i32, i32
  }
}

</mosaic_0001>

<bundles_post_ra>
// kernel: tpu_custom_call.1
= control target key start
LH: loop header
LB: loop body
LE: loop exit
PB: predicated region body
PF: predicated region fallthrough
CT: control target
= control target key end

     0   :  { %s9615_s0 = inlined_call_operand.hbm [shape: f32[2,32,32], index: 0, kind: input, shape index: {}]   ;;  %s9616_s1 = inlined_call_operand.hbm [shape: f32[2,16,32], index: 1, kind: input, shape index: {}]   ;;  %s9617_s2 = inlined_call_operand.hbm [shape: f32[2,8,32], index: 2, kind: input, shape index: {}]   ;;  %s9618_s3 = inlined_call_operand.hbm [shape: f32[4,32], index: 3, kind: input, shape index: {}]   ;;  %s9619_s4 = inlined_call_operand.hbm [shape: f32[4,32], index: 4, kind: input, shape index: {}]   ;;  %s9620_s5 = inlined_call_operand.hbm [shape: bf16[3,4,32,8], index: 5, kind: input, shape index: {}]   ;;  %s9621_s6 = inlined_call_operand.hbm [shape: bf16[3,4,32,16], index: 6, kind: input, shape index: {}]   ;;  %s9622_s7 = inlined_call_operand.hbm [shape: bf16[3,4,8,32], index: 7, kind: input, shape index: {}]   ;;  %s9623_s8 = inlined_call_operand.hbm [shape: bf16[3,32,64], index: 8, kind: input, shape index: {}]   ;;  %s9624_s9 = inlined_call_operand.hbm [shape: f32[1,64], index: 9, kind: input, shape index: {}]   ;;  %s9625_s10 = inlined_call_operand.hbm [shape: bf16[3,64,32], index: 10, kind: input, shape index: {}]   ;;  %s9626_s11 = inlined_call_operand.hbm [shape: f32[1,32], index: 11, kind: input, shape index: {}]   ;;  %s9627_s12 = inlined_call_operand.hbm [shape: f32[2,32,32], index: 12, kind: output, shape index: {}]  }
   0x1   :  { %9662 = sst [smem:[#allocation46_spill]] %s9615_s0 }
   0x2   :  { %9663 = sst [smem:[#allocation47_spill]] %s9616_s1 }
   0x3   :  { %9664 = sst [smem:[#allocation48_spill]] %s9617_s2 }
   0x4   :  { %9665 = sst [smem:[#allocation49_spill]] %s9618_s3 }
   0x5   :  { %9666 = sst [smem:[#allocation50_spill]] %s9619_s4 }
   0x6   :  { %9667 = sst [smem:[#allocation51_spill]] %s9620_s5 }
   0x7   :  { %9668 = sst [smem:[#allocation52_spill]] %s9622_s7 }
   0x8   :  { %9669 = sst [smem:[#allocation53_spill]] %s9623_s8 }
   0x9   :  { %9670 = sst [smem:[#allocation54_spill]] %s9624_s9 }
   0xa   :  { %9671 = sst [smem:[#allocation55_spill]] %s9625_s10 }
   0xb   :  { %9672 = sst [smem:[#allocation56_spill]] %s9626_s11 }
   0xc   :  { %9673 = sst [smem:[#allocation57_spill]] %s9627_s12 }
   0xd   :  { %17 = vsyncpa [#allocation6], 0 }
   0xe   :  { %19 = vsyncpa [#allocation6 + $0x1], 0 }
   0xf   :  { %20 = vsyncpa [#allocation9], 0 }
  0x10   :  { %22 = vsyncpa [#allocation9 + $0x1], 0 }
  0x11   :  { %23 = vsyncpa [#allocation12], 0 }
  0x12   :  { %24 = vsyncpa [#allocation15], 0 }
  0x13   :  { %25 = vsyncpa [#allocation18], 0 }
  0x14   :  { %26 = vsyncpa [#allocation21], 0 }
  0x15   :  { %27 = vsyncpa [#allocation24], 0 }
  0x16   :  { %28 = vsyncpa [#allocation7], 0 }
  0x17   :  { %30 = vsyncpa [#allocation7 + $0x1], 0  ;;  %s8188_s21 = smov 0   ;;  %s8190_s22 = smov 0  }
  0x18   :  { %s8192_s23 = smov 0   ;;  %s8194_s24 = smov 0  }
  0x19   :  { %s8196_s25 = smov 0   ;;  %s8198_s26 = smov 0  }
  0x1a   :  { %s8200_s27 = smov 0   ;;  %s8202_s28 = smov 0  }
  0x1b   :  { %s8204_s29 = smov 0   ;;  %s8206_s30 = smov 0  }
  0x1c   :  { %s8208_s13 = smov 0  }
  0x1d LB: > { %9674 = sst [smem:[#allocation34_spill]] %s8058_s21  ;;  %s8244_s14 = sadd.s32 4294967295, %s8098_s13   ;;  %s8098_s13 = sphi %s8208_s13, %s36_s13   ;;  %s8094_s30 = sphi %s8206_s30, %s9754_s30   ;;  %s8090_s29 = sphi %s8204_s29, %s9747_s29   ;;  %s8086_s28 = sphi %s8202_s28, %s9753_s28   ;;  %s8082_s27 = sphi %s8200_s27, %s9746_s27   ;;  %s8078_s26 = sphi %s8198_s26, %s9745_s26   ;;  %s8074_s25 = sphi %s8196_s25, %s9752_s25   ;;  %s8070_s24 = sphi %s8194_s24, %s9751_s24   ;;  %s8066_s23 = sphi %s8192_s23, %s9743_s23   ;;  %s8062_s22 = sphi %s8190_s22, %s9750_s22   ;;  %s8058_s21 = sphi %s8188_s21, %s9749_s21  }
  0x1e   : > { %9675 = sst [smem:[#allocation35_spill]] %s8066_s23  ;;  %p6114_p0 = scmp.ge.s32.totalorder %s8098_s13, 1 }
  0x1f   : > { %9676 = sst [smem:[#allocation36_spill]] %s8078_s26  ;;  %p9635_p1 = scmp.eq.s32.totalorder %s8244_s14, 0 }
  0x20   : > { %9677 = sst [smem:[#allocation37_spill]] %s8082_s27  ;;  %p348_p2 = scmp.lt.s32.totalorder %s8098_s13, 5 }
  0x21   : > { %9678 = sst [smem:[#allocation38_spill]] %s8086_s28  ;;  %s8100_s16 = smov [#allocation11]  }
  0x22   : > { %9679 = sst [smem:[#allocation39_spill]] %s8090_s29  ;;  %p8249_p3 = pnand %p6114_p0, %p348_p2 }
  0x23   : > { %s361_s17 = sshll.u32 %s8100_s16, 4  ;;  %s8101_s18 = smov [#allocation14]   ;;  %s362_s17 = int_to_ptr.vmem [resolvable:$true] %s361_s17 }
  0x24   : > { %s9680_s15 = scalar_select %p8249_p3, 1, 0 }
  0x25   : > { %p7160_p4 = pneg %p8249_p3  ;;  %s382_s19 = sshll.u32 %s8101_s18, 4  ;;  %s8261_s19 = int_to_ptr.vmem [resolvable:$true] %s382_s19 }
  0x26   : > { %9681 = sst [smem:[#allocation40_spill]] %s9680_s15  ;;  %s8102_s12 = smov [#allocation17]  }
  0x27   : > { %p8257_p5 = pnand %p7160_p4, %p9635_p1  ;;  %s8263_s28 = sshll.u32 %s8102_s12, 4  ;;  %s409_s28 = int_to_ptr.vmem [resolvable:$true] %s8263_s28 }
  0x28   : > { %s9683_s3 = sld [smem:[#allocation49_spill]] }
  0x29   : > { %s9682_s20 = scalar_select %p8257_p5, 1, 0 }
  0x2a   : > { %p8273_p7 = pneg %p8257_p5 }
  0x2c   : > { %s9684_s18 = scalar_select %p8273_p7, 1, 0 }
  0x2e   : > { %s7610_s16 = scalar_lea.hbm %s9683_s3, 64 }
  0x2f   : > { %p7611_p6 = scmp.ne.s32.totalorder %s9683_s3, %s7610_s16  ;;  %p7617_p10 = scmp.lt.u32.totalorder %s7610_s16, %s9683_s3 }
  0x31   : > { %p7613_p8 = pnand %p8273_p7, %p7611_p6 }
  0x33   : > { %p7614_p9 = pneg %p7613_p8 }
  0x35   : > { %p7619_p11 = pnand %p7617_p10, %p7614_p9 }
  0x37   : > { %7622 = shalt.err (!%p7619_p11)
}
  0x38   : > { %s7623_s2 = scalar_lea.vmem %s362_s17, 64  ;;  %p7631_p2 = scmp.lt.s32.totalorder %s362_s17, %s362_s17 }
  0x39   : > { %p7624_p12 = scmp.ne.s32.totalorder %s362_s17, %s7623_s2  ;;  %p7632_p4 = scmp.lt.s32.totalorder %s7623_s2, %s7623_s2 }
  0x3b   : > { %p7626_p13 = pnand %p7624_p12, %p8273_p7  ;;  %p7633_p1 = por %p7632_p4, %p7631_p2 }
  0x3d   : > { %p7627_p0 = pneg %p7626_p13 }
  0x3f   : > { %p7634_p3 = pnand %p7633_p1, %p7627_p0 }
  0x41   : > { %7637 = shalt.err (!%p7634_p3)
}
  0x42   : > { %7163 = dma.hbm_to_vmem [thread:$0]  (!%p8257_p5), %s9683_s3, 64, %s362_s17, [#allocation12]  }
  0x43   : > { %s9685_s5 = sld [smem:[#allocation51_spill]] }
  0x49   : > { %s7638_s16 = scalar_lea.hbm %s9685_s5, 3072 }
  0x4a   : > { %p7639_p6 = scmp.ne.s32.totalorder %s9685_s5, %s7638_s16  ;;  %p7645_p1 = scmp.lt.u32.totalorder %s7638_s16, %s9685_s5 }
  0x4c   : > { %p7641_p8 = pnand %p7639_p6, %p8273_p7 }
  0x4e   : > { %p7642_p9 = pneg %p7641_p8 }
  0x50   : > { %p7647_p3 = pnand %p7645_p1, %p7642_p9 }
  0x52   : > { %7650 = shalt.err (!%p7647_p3)
}
  0x53   : > { %s7651_s17 = scalar_lea.vmem %s8261_s19, 3072  ;;  %p7659_p13 = scmp.lt.s32.totalorder %s8261_s19, %s8261_s19 }
  0x54   : > { %p7652_p10 = scmp.ne.s32.totalorder %s8261_s19, %s7651_s17  ;;  %p7660_p0 = scmp.lt.s32.totalorder %s7651_s17, %s7651_s17 }
  0x56   : > { %p7654_p11 = pnand %p7652_p10, %p8273_p7  ;;  %p7661_p2 = por %p7660_p0, %p7659_p13 }
  0x58   : > { %p7655_p12 = pneg %p7654_p11 }
  0x5a   : > { %p7662_p4 = pnand %p7661_p2, %p7655_p12 }
  0x5c   : > { %7665 = shalt.err (!%p7662_p4)
}
  0x5d   : > { %s9639_s10 = smov 64   ;;  %s9641_s8 = smov 4  }
  0x5e   : > { %7169 = dma.hbm_to_vmem [thread:$0]  (!%p8257_p5), %s9685_s5, 3072, %s8261_s19, [#allocation15], %s9639_s10, %s9639_s10, %s9641_s8  }
  0x5f   : > { %s9686_s7 = sld [smem:[#allocation52_spill]] }
  0x65   : > { %s7666_s16 = scalar_lea.hbm %s9686_s7, 768 }
  0x66   : > { %p7667_p6 = scmp.ne.s32.totalorder %s9686_s7, %s7666_s16  ;;  %p7673_p1 = scmp.lt.u32.totalorder %s7666_s16, %s9686_s7 }
  0x68   : > { %p7669_p8 = pnand %p7667_p6, %p8273_p7 }
  0x6a   : > { %p7670_p9 = pneg %p7669_p8 }
  0x6c   : > { %p7675_p3 = pnand %p7673_p1, %p7670_p9 }
  0x6e   : > { %7678 = shalt.err (!%p7675_p3)
}
  0x6f   : > { %s7679_s0 = scalar_lea.vmem %s409_s28, 768  ;;  %p7687_p13 = scmp.lt.s32.totalorder %s409_s28, %s409_s28 }
  0x70   : > { %p7680_p10 = scmp.ne.s32.totalorder %s409_s28, %s7679_s0  ;;  %p7688_p0 = scmp.lt.s32.totalorder %s7679_s0, %s7679_s0 }
  0x72   : > { %p7682_p11 = pnand %p7680_p10, %p8273_p7  ;;  %p7689_p2 = por %p7688_p0, %p7687_p13 }
  0x74   : > { %p7683_p12 = pneg %p7682_p11 }
  0x76   : > { %p7690_p4 = pnand %p7689_p2, %p7683_p12 }
  0x78   : > { %7693 = shalt.err (!%p7690_p4)
}
  0x79   : > { %7175 = dma.hbm_to_vmem [thread:$0]  (!%p8257_p5), %s9686_s7, 768, %s409_s28, [#allocation18], %s9639_s10, %s9639_s10, %s9641_s8  }
  0x7a   : > { %s8105_s27 = smov [#allocation20]   ;;  %s9687_s9 = sld [smem:[#allocation54_spill]] }
  0x7b   : > { %s435_s11 = sshll.u32 %s8105_s27, 4  ;;  %s436_s11 = int_to_ptr.vmem [resolvable:$true] %s435_s11 }
  0x80   : > { %s7694_s12 = scalar_lea.hbm %s9687_s9, 16 }
  0x81   : > { %p7695_p6 = scmp.ne.s32.totalorder %s9687_s9, %s7694_s12  ;;  %p7701_p1 = scmp.lt.u32.totalorder %s7694_s12, %s9687_s9 }
  0x83   : > { %p7697_p8 = pnand %p7695_p6, %p8273_p7 }
  0x85   : > { %p7698_p9 = pneg %p7697_p8 }
  0x87   : > { %p7703_p3 = pnand %p7701_p1, %p7698_p9 }
  0x89   : > { %7706 = shalt.err (!%p7703_p3)
}
  0x8a   : > { %s7707_s28 = scalar_lea.vmem %s436_s11, 16  ;;  %s7714_s3 = scalar_lea.vmem %s436_s11, 32 }
  0x8b   : > { %p7708_p10 = scmp.ne.s32.totalorder %s436_s11, %s7707_s28  ;;  %p7715_p13 = scmp.lt.s32.totalorder %s436_s11, %s436_s11 }
  0x8c   : > { %p7716_p0 = scmp.lt.s32.totalorder %s7714_s3, %s7707_s28 }
  0x8d   : > { %p7710_p11 = pnand %p7708_p10, %p8273_p7 }
  0x8e   : > { %p7717_p2 = por %p7716_p0, %p7715_p13 }
  0x8f   : > { %p7711_p12 = pneg %p7710_p11 }
  0x91   : > { %p7718_p4 = pnand %p7717_p2, %p7711_p12 }
  0x93   : > { %7721 = shalt.err (!%p7718_p4)
}
  0x94   : > { %7181 = dma.hbm_to_vmem [thread:$0]  (!%p8257_p5), %s9687_s9, 16, %s436_s11, [#allocation21]  }
  0x95   : > { %s6113_s5 = sadd.s32 4294967294, %s8098_s13   ;;  %s45_s15 = sadd.s32 1, %s8090_s29 }
  0x96   : > { %p46_p6 = scmp.ge.s32.totalorder %s45_s15, 2  ;;  %s48_s16 = sadd.s32 1, %s8094_s30 }
  0x97   : > { %s55_s12 = sadd.s32 1, %s8078_s26  ;;  %p62_p8 = scmp.ne.s32.totalorder %s8078_s26, %s8074_s25 }
  0x98   : > { %s9756_s15 = smov (%p46_p6, %s45_s15), 0  ;;  %s9758_s16 = smov (!%p46_p6, %s48_s16), %s8094_s30 }
  0x99   : > { %9688 = sst [smem:[#allocation41_spill]] %s9756_s15  ;;  %p63_p9 = scmp.eq.s32.totalorder %s8098_s13, 0 }
  0x9a   : > { %p68_p1 = scmp.ne.s32.totalorder %s8074_s25, %s8070_s24  ;;  %p50_p3 = scmp.ge.s32.totalorder %s9758_s16, 2 }
  0x9b   : > { %s320_s11 = ssub.s32 %s8090_s29, %s9756_s15  ;;  %p8369_p10 = por %p63_p9, %p62_p8 }
  0x9c   : > { %p9690_p11 = scmp.eq.s32.totalorder %s8244_s14, 0  ;;  %s9760_s16 = smov (%p50_p3, %s9758_s16), 0 }
  0x9d   : > { %9692 = sst [smem:[#allocation42_spill]] %s9760_s16  ;;  %s324_s24 = sadd.s32 1, %s8066_s23 }
  0x9e   : > { %p8375_p12 = por %p9690_p11, %p68_p1  ;;  %p334_p13 = scmp.ne.s32.totalorder %s8066_s23, %s8062_s22 }
  0x9f   : > { %s52_s0 = ssub.s32 %s8094_s30, %s9760_s16  ;;  %p335_p0 = scmp.eq.s32.totalorder %s8244_s14, 3 }
  0xa0   : > { %s9691_s17 = scalar_select %p8375_p12, 1, 0 }
  0xa1   : > { %p53_p2 = scmp.eq.s32.totalorder %s52_s0, 0  ;;  %s321_s28 = sor.u32 %s320_s11, %s52_s0 }
  0xa2   : > { %p322_p4 = scmp.eq.s32.totalorder %s321_s28, 0  ;;  %p8387_p6 = por %p335_p0, %p334_p13 }
  0xa3   : > { %s8392_s19 = scalar_select %p53_p2, %s8078_s26, %s55_s12  }
  0xa4   : > { %s9693_s3 = scalar_select %p8387_p6, 1, 0 }
  0xa5   : > { %9694 = sst [smem:[#allocation43_spill]] %s8392_s19  ;;  %p340_p8 = scmp.ne.s32.totalorder %s8062_s22, %s8058_s21 }
  0xa6   : > { %s8395_s27 = scalar_select %p322_p4, %s8066_s23, %s324_s24  }
  0xa7   : > { %p341_p9 = scmp.eq.s32.totalorder %s6113_s5, 3  ;;  %p7211_p1 = scmp.lt.s32.totalorder %s8098_s13, 4 }
  0xa8   : > { %9695 = sst [smem:[#allocation44_spill]] %s8395_s27  ;;  %s8401_s10 = sand.u32 1, %s8078_s26  }
  0xa9   : > { %p8403_p3 = por %p341_p9, %p340_p8  ;;  %p8409_p11 = pnand %p7211_p1, %p8369_p10 }
  0xaa   : > { %s491_s12 = sand.u32 1, %s8098_s13   ;;  %s6128_s0 = sshll.u32 %s8401_s10, 4 }
  0xab   : > { %s9696_s8 = scalar_select %p8403_p3, 1, 0 }
  0xac   : > { %s9698_s11 = scalar_select %p8409_p11, 1, 0 }
  0xad   : > { %9697 = sst [smem:[#allocation45_spill]] %s9696_s8  ;;  %s6365_s24 = sshll.u32 %s8094_s30, 8 }
  0xae   : > { %s9699_s1 = sld [smem:[#allocation47_spill]]  ;;  %s495_s9 = scalar_lea.vmem [#allocation8], %s6128_s0 }
  0xaf   : > { %s502_s16 = sshll.u32 %s495_s9, 4  ;;  %s8423_s2 = scalar_lea.sflag [#allocation9], %s491_s12  ;;  %s8421_s16 = int_to_ptr.vmem [resolvable:$true] %s502_s16 }
  0xb0   : > { %p8429_p13 = pneg %p8409_p11 }
  0xb2   : > { %s9700_s29 = scalar_select %p8429_p13, 1, 0 }
  0xb4   : > { %s8419_s5 = scalar_lea.hbm %s9699_s1, %s6365_s24  ;;  %s7727_s0 = scalar_lea.hbm %s9699_s1, 512 }
  0xb5   : > { %s7722_s15 = scalar_lea.hbm %s8419_s5, 256  ;;  %p7728_p4 = scmp.lt.u32.totalorder %s8419_s5, %s9699_s1 }
  0xb6   : > { %p7723_p10 = scmp.ne.s32.totalorder %s8419_s5, %s7722_s15  ;;  %p7729_p8 = scmp.lt.u32.totalorder %s7727_s0, %s7722_s15 }
  0xb7   : > { %p7731_p1 = scmp.lt.u32.totalorder %s7722_s15, %s8419_s5 }
  0xb8   : > { %p7725_p0 = pnand %p8429_p13, %p7723_p10  ;;  %p7730_p9 = por %p7729_p8, %p7728_p4 }
  0xba   : > { %p7726_p2 = pneg %p7725_p0  ;;  %p7732_p3 = por %p7731_p1, %p7730_p9 }
  0xbc   : > { %p7733_p6 = pnand %p7732_p3, %p7726_p2 }
  0xbe   : > { %7736 = shalt.err (!%p7733_p6)
}
  0xbf   : > { %s7737_s12 = scalar_lea.vmem %s8421_s16, 256  ;;  %s8106_s7 = smov [#allocation8]  }
  0xc0   : > { %p7738_p10 = scmp.ne.s32.totalorder %s8421_s16, %s7737_s12  ;;  %s7742_s24 = sshll.u32 %s8106_s7, 4  ;;  %s7743_s24 = int_to_ptr.vmem [resolvable:$false] %s7742_s24 }
  0xc1   : > { %s7744_s9 = scalar_lea.vmem %s7743_s24, 512  ;;  %p7745_p5 = scmp.lt.s32.totalorder %s8421_s16, %s7743_s24 }
  0xc2   : > { %p7740_p0 = pnand %p7738_p10, %p8429_p13  ;;  %p7746_p7 = scmp.lt.s32.totalorder %s7744_s9, %s7737_s12 }
  0xc4   : > { %p7741_p12 = pneg %p7740_p0  ;;  %p7747_p4 = por %p7746_p7, %p7745_p5 }
  0xc6   : > { %p7748_p8 = pnand %p7747_p4, %p7741_p12 }
  0xc8   : > { %7751 = shalt.err (!%p7748_p8)
}
  0xc9   : > { %s9659_s15 = smov 128   ;;  %s9660_s0 = smov 8  }
  0xca   : > { %7194 = dma.hbm_to_vmem [thread:$0]  (!%p8409_p11), %s8419_s5, 256, %s8421_s16, %s8423_s2, %s9659_s15, %s9659_s15, %s9660_s0  }
  0xcb   : > { %s8109_s28 = smov [#allocation13]   ;;  %s8110_s24 = smov [#allocation16]  }
  0xcc   : > { %s372_s7 = sshll.u32 %s8109_s28, 4  ;;  %s395_s12 = sshll.u32 %s8110_s24, 4  ;;  %s373_s7 = int_to_ptr.vmem [resolvable:$true] %s372_s7  ;;  %s396_s12 = int_to_ptr.vmem [resolvable:$true] %s395_s12 }
  0xcd   : > { %s9701_s4 = sld [smem:[#allocation50_spill]]  ;;  %p9702_p7 = scmp.ne.s32.totalorder %s9684_s18, 0 }
  0xd3   : > { %s7752_s19 = scalar_lea.hbm %s9701_s4, 64 }
  0xd4   : > { %p7753_p5 = scmp.ne.s32.totalorder %s9701_s4, %s7752_s19  ;;  %p7759_p3 = scmp.lt.u32.totalorder %s7752_s19, %s9701_s4 }
  0xd6   : > { %p7755_p12 = pnand %p7753_p5, %p9702_p7 }
  0xd8   : > { %p7756_p6 = pneg %p7755_p12 }
  0xda   : > { %p7761_p2 = pnand %p7759_p3, %p7756_p6 }
  0xdc   : > { %7764 = shalt.err (!%p7761_p2)
}
  0xdd   : > { %s7765_s16 = scalar_lea.vmem %s373_s7, 64  ;;  %p7773_p0 = scmp.lt.s32.totalorder %s373_s7, %s373_s7 }
  0xde   : > { %p7766_p9 = scmp.ne.s32.totalorder %s373_s7, %s7765_s16  ;;  %p7774_p4 = scmp.lt.s32.totalorder %s7765_s16, %s7765_s16 }
  0xe0   : > { %p7768_p1 = pnand %p7766_p9, %p9702_p7  ;;  %p7775_p8 = por %p7774_p4, %p7773_p0 }
  0xe2   : > { %p7769_p10 = pneg %p7768_p1 }
  0xe4   : > { %p7776_p11 = pnand %p7775_p8, %p7769_p10 }
  0xe6   : > { %7779 = shalt.err (!%p7776_p11)
}
  0xe7   : > { %p9703_p5 = scmp.ne.s32.totalorder %s9682_s20, 0  ;;  %s7780_s19 = scalar_lea.hbm %s9621_s6, 3072 }
  0xe8   : > { %p7781_p12 = scmp.ne.s32.totalorder %s9621_s6, %s7780_s19  ;;  %p7787_p11 = scmp.lt.u32.totalorder %s7780_s19, %s9621_s6 }
  0xe9   : > { %7166 = dma.hbm_to_vmem [thread:$0]  (!%p9703_p5), %s9701_s4, 64, %s373_s7, [#allocation12]  }
  0xea   : > { %p7783_p6 = pnand %p7781_p12, %p9702_p7 }
  0xec   : > { %p7784_p3 = pneg %p7783_p6 }
  0xee   : > { %p7789_p2 = pnand %p7787_p11, %p7784_p3 }
  0xf0   : > { %7792 = shalt.err (!%p7789_p2)
}
  0xf1   : > { %s7793_s9 = scalar_lea.vmem %s396_s12, 3072  ;;  %p7801_p0 = scmp.lt.s32.totalorder %s396_s12, %s396_s12 }
  0xf2   : > { %p7794_p9 = scmp.ne.s32.totalorder %s396_s12, %s7793_s9  ;;  %p7802_p4 = scmp.lt.s32.totalorder %s7793_s9, %s7793_s9 }
  0xf4   : > { %p7796_p1 = pnand %p7794_p9, %p9702_p7  ;;  %p7803_p8 = por %p7802_p4, %p7801_p0 }
  0xf6   : > { %p7797_p10 = pneg %p7796_p1 }
  0xf8   : > { %p7804_p13 = pnand %p7803_p8, %p7797_p10 }
  0xfa   : > { %7807 = shalt.err (!%p7804_p13)
}
  0xfb   : > { %s9704_s7 = smov 4   ;;  %s9705_s16 = smov 64  }
  0xfc   : > { %7172 = dma.hbm_to_vmem [thread:$0]  (!%p9703_p5), %s9621_s6, 3072, %s396_s12, [#allocation15], %s9705_s16, %s9705_s16, %s9704_s7  }
  0xfd   : > { %s8111_s23 = smov [#allocation19]   ;;  %s8112_s19 = smov [#allocation22]  }
  0xfe   : > { %s421_s8 = sshll.u32 %s8111_s23, 4  ;;  %s445_s27 = sshll.u32 %s8112_s19, 4  ;;  %s422_s8 = int_to_ptr.vmem [resolvable:$true] %s421_s8  ;;  %s446_s27 = int_to_ptr.vmem [resolvable:$true] %s445_s27 }
  0xff   : > { %s9706_s24 = sld [smem:[#allocation53_spill]] }
 0x105   : > { %s9707_s9 = smov %s9706_s24  ;;  %s7808_s15 = scalar_lea.hbm %s9706_s24, 768 }
 0x106   : > { %p7809_p13 = scmp.ne.s32.totalorder %s9707_s9, %s7808_s15  ;;  %p7815_p3 = scmp.lt.u32.totalorder %s7808_s15, %s9707_s9 }
 0x108   : > { %p7811_p12 = pnand %p7809_p13, %p9702_p7 }
 0x10a   : > { %p7812_p6 = pneg %p7811_p12 }
 0x10c   : > { %p7817_p11 = pnand %p7815_p3, %p7812_p6 }
 0x10e   : > { %7820 = shalt.err (!%p7817_p11)
}
 0x10f   : > { %s7821_s12 = scalar_lea.vmem %s422_s8, 768  ;;  %p7829_p10 = scmp.lt.s32.totalorder %s422_s8, %s422_s8 }
 0x110   : > { %p7822_p2 = scmp.ne.s32.totalorder %s422_s8, %s7821_s12  ;;  %p7830_p0 = scmp.lt.s32.totalorder %s7821_s12, %s7821_s12 }
 0x112   : > { %p7824_p9 = pnand %p7822_p2, %p9702_p7  ;;  %p7831_p4 = por %p7830_p0, %p7829_p10 }
 0x114   : > { %p7825_p1 = pneg %p7824_p9 }
 0x116   : > { %p7832_p8 = pnand %p7831_p4, %p7825_p1 }
 0x118   : > { %7835 = shalt.err (!%p7832_p8)
}
 0x119   : > { %7178 = dma.hbm_to_vmem [thread:$0]  (!%p9703_p5), %s9707_s9, 768, %s422_s8, [#allocation18], %s9705_s16, %s9705_s16, %s9704_s7  }
 0x11a   : > { %s9708_s26 = sld [smem:[#allocation55_spill]] }
 0x120   : > { %s9709_s19 = smov %s9708_s26  ;;  %s7836_s23 = scalar_lea.hbm %s9708_s26, 1536 }
 0x121   : > { %p7837_p13 = scmp.ne.s32.totalorder %s9709_s19, %s7836_s23  ;;  %p7843_p3 = scmp.lt.u32.totalorder %s7836_s23, %s9709_s19 }
 0x123   : > { %p7839_p12 = pnand %p7837_p13, %p9702_p7 }
 0x125   : > { %p7840_p6 = pneg %p7839_p12 }
 0x127   : > { %p7845_p11 = pnand %p7843_p3, %p7840_p6 }
 0x129   : > { %7848 = shalt.err (!%p7845_p11)
}
 0x12a   : > { %s7849_s12 = scalar_lea.vmem %s446_s27, 1536  ;;  %p7857_p10 = scmp.lt.s32.totalorder %s446_s27, %s446_s27 }
 0x12b   : > { %p7850_p2 = scmp.ne.s32.totalorder %s446_s27, %s7849_s12  ;;  %p7858_p0 = scmp.lt.s32.totalorder %s7849_s12, %s7849_s12 }
 0x12d   : > { %p7852_p9 = pnand %p7850_p2, %p9702_p7  ;;  %p7859_p4 = por %p7858_p0, %p7857_p10 }
 0x12f   : > { %p7853_p1 = pneg %p7852_p9 }
 0x131   : > { %p7860_p8 = pnand %p7859_p4, %p7853_p1 }
 0x133   : > { %7863 = shalt.err (!%p7860_p8)
}
 0x134   : > { %7184 = dma.hbm_to_vmem [thread:$0]  (!%p9703_p5), %s9709_s19, 1536, %s446_s27, [#allocation21], %s9705_s16, %s9705_s16, %s9704_s7  }
 0x135   : > { %s8113_s21 = smov [#allocation23]   ;;  %s6125_s0 = sshll.u32 %s8401_s10, 5 }
 0x136   : > { %s459_s15 = sshll.u32 %s8113_s21, 4  ;;  %s9710_s5 = sld [smem:[#allocation56_spill]]  ;;  %s460_s15 = int_to_ptr.vmem [resolvable:$true] %s459_s15 }
 0x13c   : > { %s7864_s28 = scalar_lea.hbm %s9710_s5, 16 }
 0x13d   : > { %p7865_p13 = scmp.ne.s32.totalorder %s9710_s5, %s7864_s28  ;;  %p7871_p3 = scmp.lt.u32.totalorder %s7864_s28, %s9710_s5 }
 0x13f   : > { %p7867_p12 = pnand %p7865_p13, %p9702_p7 }
 0x141   : > { %p7868_p6 = pneg %p7867_p12 }
 0x143   : > { %p7873_p11 = pnand %p7871_p3, %p7868_p6 }
 0x145   : > { %7876 = shalt.err (!%p7873_p11)
}
 0x146   : > { %s7877_s7 = scalar_lea.vmem %s460_s15, 16  ;;  %s7884_s16 = scalar_lea.vmem %s460_s15, 32 }
 0x147   : > { %p7878_p2 = scmp.ne.s32.totalorder %s460_s15, %s7877_s7  ;;  %p7885_p10 = scmp.lt.s32.totalorder %s460_s15, %s460_s15 }
 0x148   : > { %p7886_p0 = scmp.lt.s32.totalorder %s7884_s16, %s7877_s7 }
 0x149   : > { %p7880_p9 = pnand %p7878_p2, %p9702_p7 }
 0x14a   : > { %p7887_p4 = por %p7886_p0, %p7885_p10 }
 0x14b   : > { %p7881_p1 = pneg %p7880_p9 }
 0x14d   : > { %p7888_p8 = pnand %p7887_p4, %p7881_p1 }
 0x14f   : > { %7891 = shalt.err (!%p7888_p8)
}
 0x150   : > { %7187 = dma.hbm_to_vmem [thread:$0]  (!%p9703_p5), %s9710_s5, 16, %s460_s15, [#allocation24]  }
 0x151   : > { %s6364_s21 = sshll.u32 %s8094_s30, 9  ;;  %s9711_s23 = sld [smem:[#allocation46_spill]] }
 0x152   : > { %s474_s24 = scalar_lea.vmem [#allocation5], %s6125_s0  ;;  %s6131_s12 = sshll.u32 %s8401_s10, 3 }
 0x153   : > { %s481_s20 = sshll.u32 %s474_s24, 4  ;;  %s471_s8 = scalar_lea.sflag [#allocation6], %s8401_s10  ;;  %s8562_s20 = int_to_ptr.vmem [resolvable:$true] %s481_s20 }
 0x154   : > { %p9713_p13 = scmp.ne.s32.totalorder %s9700_s29, 0 }
 0x157   : > { %s9712_s1 = smov %s9711_s23  ;;  %s8560_s28 = scalar_lea.hbm %s9711_s23, %s6364_s21 }
 0x158   : > { %s7892_s7 = scalar_lea.hbm %s8560_s28, 512  ;;  %s7897_s27 = scalar_lea.hbm %s9712_s1, 1024 }
 0x159   : > { %p7893_p7 = scmp.ne.s32.totalorder %s8560_s28, %s7892_s7  ;;  %p7898_p6 = scmp.lt.u32.totalorder %s8560_s28, %s9712_s1 }
 0x15a   : > { %p7899_p3 = scmp.lt.u32.totalorder %s7897_s27, %s7892_s7  ;;  %p7901_p2 = scmp.lt.u32.totalorder %s7892_s7, %s8560_s28 }
 0x15b   : > { %p7895_p5 = pnand %p7893_p7, %p9713_p13 }
 0x15c   : > { %p7900_p11 = por %p7899_p3, %p7898_p6 }
 0x15d   : > { %p7896_p12 = pneg %p7895_p5 }
 0x15e   : > { %p7902_p9 = por %p7901_p2, %p7900_p11 }
 0x160   : > { %p7903_p1 = pnand %p7902_p9, %p7896_p12 }
 0x162   : > { %7906 = shalt.err (!%p7903_p1)
}
 0x163   : > { %s7907_s0 = scalar_lea.vmem %s8562_s20, 512  ;;  %s8114_s18 = smov [#allocation5]  }
 0x164   : > { %p7908_p10 = scmp.ne.s32.totalorder %s8562_s20, %s7907_s0  ;;  %s7912_s26 = sshll.u32 %s8114_s18, 4  ;;  %s7913_s26 = int_to_ptr.vmem [resolvable:$false] %s7912_s26 }
 0x165   : > { %s7914_s23 = scalar_lea.vmem %s7913_s26, 1024  ;;  %p7915_p8 = scmp.lt.s32.totalorder %s8562_s20, %s7913_s26 }
 0x166   : > { %p7910_p0 = pnand %p7908_p10, %p9713_p13  ;;  %p7916_p7 = scmp.lt.s32.totalorder %s7914_s23, %s7907_s0 }
 0x168   : > { %p7911_p4 = pneg %p7910_p0  ;;  %p7917_p5 = por %p7916_p7, %p7915_p8 }
 0x16a   : > { %p7918_p6 = pnand %p7917_p5, %p7911_p4 }
 0x16c   : > { %7921 = shalt.err (!%p7918_p6)
}
 0x16d   : > { %p9714_p12 = scmp.ne.s32.totalorder %s9698_s11, 0  ;;  %s9715_s24 = smov 8  }
 0x16e   : > { %s9716_s7 = smov 128   ;;  %s6132_s15 = sshll.u32 %s8094_s30, 7 }
 0x16f   : > { %7191 = dma.hbm_to_vmem [thread:$0]  (!%p9714_p12), %s8560_s28, 512, %s8562_s20, %s471_s8, %s9716_s7, %s9716_s7, %s9715_s24  }
 0x170   : > { %s9717_s4 = sld [smem:[#allocation48_spill]]  ;;  %s516_s0 = scalar_lea.vmem [#allocation10], %s6131_s12 }
 0x171   : > { %s523_s18 = sshll.u32 %s516_s0, 4  ;;  %s524_s18 = int_to_ptr.vmem [resolvable:$true] %s523_s18 }
 0x176   : > { %s8596_s21 = scalar_lea.hbm %s9717_s4, %s6132_s15  ;;  %s7927_s8 = scalar_lea.hbm %s9717_s4, 256 }
 0x177   : > { %s7922_s26 = scalar_lea.hbm %s8596_s21, 128  ;;  %p7928_p9 = scmp.lt.u32.totalorder %s8596_s21, %s9717_s4 }
 0x178   : > { %p7923_p3 = scmp.ne.s32.totalorder %s8596_s21, %s7922_s26  ;;  %p7929_p1 = scmp.lt.u32.totalorder %s7927_s8, %s7922_s26 }
 0x179   : > { %p7931_p0 = scmp.lt.u32.totalorder %s7922_s26, %s8596_s21 }
 0x17a   : > { %p7925_p11 = pnand %p7923_p3, %p9713_p13  ;;  %p7930_p10 = por %p7929_p1, %p7928_p9 }
 0x17c   : > { %p7926_p2 = pneg %p7925_p11  ;;  %p7932_p4 = por %p7931_p0, %p7930_p10 }
 0x17e   : > { %p7933_p8 = pnand %p7932_p4, %p7926_p2 }
 0x180   : > { %7936 = shalt.err (!%p7933_p8)
}
 0x181   : > { %s7937_s10 = scalar_lea.vmem %s524_s18, 128  ;;  %s8115_s12 = smov [#allocation10]  }
 0x182   : > { %p7938_p7 = scmp.ne.s32.totalorder %s524_s18, %s7937_s10  ;;  %s7942_s7 = sshll.u32 %s8115_s12, 4  ;;  %s7943_s7 = int_to_ptr.vmem [resolvable:$false] %s7942_s7 }
 0x183   : > { %s7944_s15 = scalar_lea.vmem %s7943_s7, 256  ;;  %p7945_p3 = scmp.lt.s32.totalorder %s524_s18, %s7943_s7 }
 0x184   : > { %p7940_p5 = pnand %p7938_p7, %p9713_p13  ;;  %p7946_p11 = scmp.lt.s32.totalorder %s7944_s15, %s7937_s10 }
 0x186   : > { %p7941_p6 = pneg %p7940_p5  ;;  %p7947_p12 = por %p7946_p11, %p7945_p3 }
 0x188   : > { %p7948_p1 = pnand %p7947_p12, %p7941_p6 }
 0x18a   : > { %7951 = shalt.err (!%p7948_p1)
}
 0x18b   : > { %p9718_p9 = scmp.ne.s32.totalorder %s9698_s11, 0  ;;  %s9719_s16 = sld [smem:[#allocation40_spill]] }
 0x18d   : > { %7197 = dma.hbm_to_vmem [thread:$0]  (!%p9718_p9), %s8596_s21, 128, %s524_s18, %s8423_s2  }
 0x191   : > { %p9720_p2 = scmp.ne.s32.totalorder %s9719_s16, 0 }
 0x192   : > { %s534_s29 = sand.u32 (!%p9720_p2), 1, %s8074_s25   ;;  %p9721_p13 = scmp.ne.s32.totalorder (!%p9720_p2), %s9691_s17, 0 }
 0x193   : > { %532 = sbr.rel (%p9720_p2) target bundleno = 6546 (0x1992), region = 68  ;;  %s6134_s27 = sshll.u32 (!%p9720_p2), %s534_s29, 5 }
 0x194   : > { %s535_s0 = scalar_lea.sflag (!%p9720_p2), [#allocation6], %s534_s29  ;;  %s8621_s26 = scalar_lea.vmem (!%p9720_p2), [#allocation5], %s6134_s27 }
 0x19a   : > { %8025 = dma.done.wait (%p9721_p13), %s535_s0, 512  }
 0x19b   : > { %8027 = vsyncadd (%p9721_p13), %s535_s0, 4294966784  ;;  %s543_s11 = sand.u32 1, %s8244_s14   ;;  %s6135_s28 = sshll.u32 %s534_s29, 4 }
 0x19c   : > { %s544_s2 = scalar_lea.sflag [#allocation9], %s543_s11  ;;  %s8628_s21 = scalar_lea.vmem [#allocation8], %s6135_s28 }
 0x19d   : > { %8029 = dma.done.wait (%p9721_p13), %s544_s2, 384  }
 0x19e   : > { %8031 = vsyncadd (%p9721_p13), %s544_s2, 4294966912  ;;  %s6136_s18 = sshll.u32 %s534_s29, 3  ;;  %p9722_p12 = scmp.eq.s32.totalorder %s8244_s14, 0 }
 0x19f   : > { %s8634_s20 = scalar_lea.vmem [#allocation10], %s6136_s18 }
 0x1a0   : > { %8033 = dma.done.wait (%p9722_p12), [#allocation12], 128   ;;  %p9723_p10 = pmov %p9722_p12 }
 0x1a2   : > { %8035 = vsyncadd (%p9723_p10), [#allocation12], 4294967168  ;;  %p9724_p0 = pmov %p9723_p10 }
 0x1a4   : > { %8037 = dma.done.wait (%p9724_p0), [#allocation15], 6144   ;;  %p9725_p4 = pmov %p9724_p0 }
 0x1a5   : > { %p9726_p8 = pmov %p9724_p0 }
 0x1a6   : > { %8039 = vsyncadd (%p9725_p4), [#allocation15], 4294961152 }
 0x1a7   : > { %8041 = dma.done.wait (%p9726_p8), [#allocation18], 1536   ;;  %p9727_p7 = pmov %p9724_p0 }
 0x1a8   : > { %p9728_p5 = pmov %p9724_p0 }
 0x1a9   : > { %8043 = vsyncadd (%p9727_p7), [#allocation18], 4294965760 }
 0x1aa   : > { %8045 = dma.done.wait (%p9728_p5), [#allocation21], 1552   ;;  %p9729_p6 = pmov %p9724_p0 }
 0x1ab   : > { %p9730_p3 = pmov %p9724_p0 }
 0x1ac   : > { %8047 = vsyncadd (%p9729_p6), [#allocation21], 4294965744 }
 0x1ad   : > { %8049 = dma.done.wait (%p9730_p3), [#allocation24], 16   ;;  %p9731_p11 = pmov %p9724_p0 }
 0x1ae   : > { %s640_s17 = sand.u32 1, %s8062_s22   ;;  %s9732_s24 = sld [smem:[#allocation37_spill]] }
 0x1af   : > { %8051 = vsyncadd (%p9731_p11), [#allocation24], 4294967280  ;;  %s6146_s8 = sshll.u32 %s640_s17, 4 }
 0x1b0   : > { %s8659_s23 = scalar_lea.vmem [#allocation25], %s6146_s8 }
 0x1b4   : > { %p6147_p1 = scmp.ne.s32.totalorder %s9732_s24, 0 }
 0x1b5   : > { %v649_v0 = vld [vmem:[%s8621_s26] sm:$0xff] (!%p6147_p1)  ;;  %vm655_vm0 = vcmask (!%p6147_p1), 261120   ;;  %v651_v1 = vld [vmem:[%s8621_s26 + $0x10] sm:$0xff] (!%p6147_p1)  ;;  %v650_v2 = vld [vmem:[%s8621_s26 + $0x8] sm:$0xff] (!%p6147_p1)  ;;  %vm8117_vm9 = vmmov (!%p6147_p1), 0   ;;  %vm1029_vm10 = vcmask (!%p6147_p1), 130048  }
 0x1b6   : > { %648 = sbr.rel (%p6147_p1) target bundleno = 1029 (0x405), region = 120  ;;  %v656_v3 = vsel (!%p6147_p1), %vm655_vm0, %v649_v0, 0.0  ;;  %v662_v4 = vsel (!%p6147_p1), %vm655_vm0, %v651_v1, 0.0  ;;  %v652_v5 = vld [vmem:[%s8621_s26 + $0x18] sm:$0xff] (!%p6147_p1)  ;;  %v659_v6 = vsel (!%p6147_p1), %vm655_vm0, %v650_v2, 0.0  ;;  %v7330_v29 = vld [vmem:[#allocation16 + $0x10] sm:$0xff] (!%p6147_p1)  }
 0x1b7   : > { %657 = vadd.xlane.f32.xlu0 (!%p6147_p1), %v656_v3  ;;  %663 = vadd.xlane.f32.xlu1 (!%p6147_p1), %v662_v4  ;;  %v665_v7 = vsel (!%p6147_p1), %vm655_vm0, %v652_v5, 0.0  ;;  %v7329_v28 = vld [vmem:[#allocation16] sm:$0xff] (!%p6147_p1)   ;;  %v7331_v30 = vld [vmem:[#allocation16 + $0x8] sm:$0xff] (!%p6147_p1)   ;;  %v7332_v31 = vld [vmem:[#allocation16 + $0x18] sm:$0xff] (!%p6147_p1)   ;;  %vm1515_vm11 = vcmask (!%p6147_p1), 125952  }
 0x1b8   : > { %6600 = vmatprep.subr.bf16.mxu0 (!%p6147_p1), %v7329_v28  ;;  %6608 = vmatprep.subr.bf16.mxu1 (!%p6147_p1), %v7330_v29  ;;  %v8692_v32 = vld [vmem:[#allocation16 + $0x20] sm:$0xff] (!%p6147_p1)   ;;  %v8694_v33 = vld [vmem:[#allocation16 + $0x30] sm:$0xff] (!%p6147_p1)  }
 0x1b9   : > { %6601 = vmatpush3.bf16.msra.mxu0 (!%p6147_p1), %v7329_v28  ;;  %6609 = vmatpush3.bf16.msra.mxu1 (!%p6147_p1), %v7330_v29  ;;  %v7340_v28 = vld [vmem:[#allocation16 + $0x58] sm:$0xff] (!%p6147_p1)  }
 0x1ba   : > { %6602 = vmatprep.subr.bf16.mxu0 (!%p6147_p1), %v7331_v30  ;;  %6610 = vmatprep.subr.bf16.mxu1 (!%p6147_p1), %v7332_v31  ;;  %v1038_v29 = vld [vmem:[%s8628_s21] sm:$0xff] (!%p6147_p1) }
 0x1bb   : > { %660 = vadd.xlane.f32.xlu0 (!%p6147_p1), %v659_v6  ;;  %666 = vadd.xlane.f32.xlu1 (!%p6147_p1), %v665_v7 }
 0x1bd   : > { %6603 = vmatpush3.bf16.msra.mxu0 %v7331_v30  ;;  %6611 = vmatpush3.bf16.msra.mxu1 %v7332_v31  ;;  %v1039_v30 = vld [vmem:[%s8628_s21 + $0x8] sm:$0xff] }
 0x1be   : > { %6616 = vmatprep.subr.bf16.mxu0 %v8692_v32  ;;  %6624 = vmatprep.subr.bf16.mxu1 %v8694_v33  ;;  %v1057_v31 = vpack.c.bf16 %v1039_v30, %v1038_v29 }
 0x244   : > { %v658_v8 = vpop.xlane.xlu0 %657  ;;  %v664_v9 = vpop.xlane.xlu1 %663 }
 0x245   : > { %v669_v10 = vmul.f32 0.03125, %v658_v8  ;;  %v671_v11 = vmul.f32 0.03125, %v664_v9  ;;  %v6149_v8 = vld [vmem:[#allocation13] ss:$0 sm:$0xff] }
 0x247   : > { %v8672_v12 = vsub.f32 %v649_v0, %v669_v10  ;;  %v8674_v13 = vsub.f32 %v651_v1, %v671_v11 }
 0x248   : > { %v661_v14 = vpop.xlane.xlu0 %660  ;;  %v667_v15 = vpop.xlane.xlu1 %666 }
 0x249   : > { %v670_v16 = vmul.f32 0.03125, %v661_v14  ;;  %v672_v17 = vmul.f32 0.03125, %v667_v15  ;;  %v677_v18 = vmul.f32 %v8672_v12, %v8672_v12  ;;  %v679_v19 = vmul.f32 %v8674_v13, %v8674_v13 }
 0x24b   : > { %v8680_v20 = vsub.f32 %v650_v2, %v670_v16  ;;  %v8682_v21 = vsub.f32 %v652_v5, %v672_v17  ;;  %v681_v22 = vsel %vm655_vm0, %v677_v18, 0.0  ;;  %v687_v25 = vsel %vm655_vm0, %v679_v19, 0.0  ;;  %v6148_v2 = vld [vmem:[#allocation11] ss:$0 sm:$0xff] }
 0x24c   : > { %682 = vadd.xlane.f32.xlu0 %v681_v22  ;;  %v737_v4 = vmul.f32 %v6148_v2, %v8672_v12  ;;  %v739_v10 = vmul.f32 %v6148_v2, %v8674_v13  ;;  %v7337_v13 = vld [vmem:[#allocation16 + $0x40] sm:$0xff]  }
 0x24d   : > { %v678_v23 = vmul.f32 %v8680_v20, %v8680_v20  ;;  %v680_v24 = vmul.f32 %v8682_v21, %v8682_v21  ;;  %v738_v5 = vmul.f32 %v6148_v2, %v8680_v20  ;;  %v740_v14 = vmul.f32 %v6148_v2, %v8682_v21  ;;  %v7338_v21 = vld [vmem:[#allocation16 + $0x50] sm:$0xff]  }
 0x24f   : > { %v684_v26 = vsel %vm655_vm0, %v678_v23, 0.0  ;;  %v690_v27 = vsel %vm655_vm0, %v680_v24, 0.0  ;;  %v7335_v24 = vld [vmem:[#allocation16 + $0x28] sm:$0xff]  }
 0x250   : > { %685 = vadd.xlane.f32.xlu1 %v684_v26  ;;  %688 = vadd.xlane.f32.xlu0 %v687_v25  ;;  %v7336_v25 = vld [vmem:[#allocation16 + $0x38] sm:$0xff]   ;;  %v8116_v26 = vmov 0.0  }
 0x254   : > { %691 = vadd.xlane.f32.xlu1 %v690_v27  ;;  %v7339_v27 = vld [vmem:[#allocation16 + $0x48] sm:$0xff]  }
 0x2d9   : > { %v683_v34 = vpop.xlane.xlu0 %682 }
 0x2da   : > { %v693_v35 = vmul.f32 0.032258064, %v683_v34  ;;  %v7343_v34 = vld [vmem:[#allocation16 + $0x68] sm:$0xff]  }
 0x2dc   : > { %7353 = vrsqrt.f32 %v693_v35  ;;  %vm699_vm1 = vcmp.eq.f32.partialorder %v693_v35, inf  ;;  %v702_v44 = vand.u32 2147483648, %v693_v35  ;;  %vm701_vm2 = vcmp.eq.f32.partialorder %v693_v35, 0.0 }
 0x2dd   : > { %v686_v36 = vpop.xlane.xlu1 %685  ;;  %v689_v38 = vpop.xlane.xlu0 %688 }
 0x2de   : > { %v694_v37 = vmul.f32 0.032258064, %v686_v36  ;;  %v695_v39 = vmul.f32 0.032258064, %v689_v38  ;;  %v7345_v36 = vld [vmem:[#allocation16 + $0x80] sm:$0xff]   ;;  %v7347_v38 = vld [vmem:[#allocation16 + $0x88] sm:$0xff]  }
 0x2e0   : > { %7355 = vrsqrt.f32 %v694_v37  ;;  %vm706_vm3 = vcmp.eq.f32.partialorder %v694_v37, inf  ;;  %v709_v51 = vand.u32 2147483648, %v694_v37  ;;  %vm708_vm4 = vcmp.eq.f32.partialorder %v694_v37, 0.0 }
 0x2e1   : > { %7357 = vrsqrt.f32 %v695_v39  ;;  %v692_v40 = vpop.xlane.xlu1 %691  ;;  %vm713_vm5 = vcmp.eq.f32.partialorder %v695_v39, inf  ;;  %v716_v54 = vand.u32 2147483648, %v695_v39  ;;  %vm715_vm6 = vcmp.eq.f32.partialorder %v695_v39, 0.0 }
 0x2e2   : > { %v696_v41 = vmul.f32 0.032258064, %v692_v40  ;;  %v1281_v40 = vld [vmem:[%s8634_s20] sm:$0xff] }
 0x2e4   : > { %7359 = vrsqrt.f32 %v696_v41  ;;  %vm720_vm7 = vcmp.eq.f32.partialorder %v696_v41, inf  ;;  %v723_v62 = vand.u32 2147483648, %v696_v41  ;;  %vm722_vm8 = vcmp.eq.f32.partialorder %v696_v41, 0.0 }
 0x2e6   : > { %v7354_v42 = vpop.eup %7353 }
 0x2e7   : > { %v698_v43 = vmul.f32 %v7354_v42, %v693_v35  ;;  %v7349_v42 = vld [vmem:[#allocation16 + $0xa0] sm:$0xff]  }
 0x2e9   : > { %v700_v46 = vsel %vm699_vm1, %v693_v35, %v698_v43  ;;  %v7344_v35 = vld [vmem:[#allocation16 + $0x78] sm:$0xff]   ;;  %v7350_v43 = vld [vmem:[#allocation16 + $0xb0] sm:$0xff]  }
 0x2ea   : > { %v7356_v45 = vpop.eup %7355  ;;  %v703_v48 = vsel %vm701_vm2, %v702_v44, %v700_v46  ;;  %v7351_v44 = vld [vmem:[#allocation16 + $0xa8] sm:$0xff]  }
 0x2eb   : > { %v7358_v47 = vpop.eup %7357  ;;  %v705_v49 = vmul.f32 %v7356_v45, %v694_v37  ;;  %v725_v50 = vadd.f32 1e-06, %v703_v48  ;;  %v7352_v45 = vld [vmem:[#allocation16 + $0xb8] sm:$0xff]  }
 0x2ec   : > { %v712_v52 = vmul.f32 %v7358_v47, %v695_v39 }
 0x2ed   : > { %v707_v53 = vsel %vm706_vm3, %v694_v37, %v705_v49  ;;  %7361 = vrcp.f32 %v725_v50  ;;  %v7346_v37 = vld [vmem:[#allocation16 + $0x90] sm:$0xff]  }
 0x2ee   : > { %v7360_v55 = vpop.eup %7359  ;;  %v710_v56 = vsel %vm708_vm4, %v709_v51, %v707_v53  ;;  %v714_v57 = vsel %vm713_vm5, %v695_v39, %v712_v52  ;;  %v7348_v39 = vld [vmem:[#allocation16 + $0x98] sm:$0xff]  }
 0x2ef   : > { %v726_v58 = vadd.f32 1e-06, %v710_v56  ;;  %v717_v59 = vsel %vm715_vm6, %v716_v54, %v714_v57  ;;  %v719_v60 = vmul.f32 %v7360_v55, %v696_v41 }
 0x2f0   : > { %v727_v61 = vadd.f32 1e-06, %v717_v59 }
 0x2f1   : > { %7363 = vrcp.f32 %v726_v58  ;;  %v721_v63 = vsel %vm720_vm7, %v696_v41, %v719_v60  ;;  %v1299_v41 = vpack.c.bf16 %v1281_v40, %v1281_v40 }
 0x2f2   : > { %7365 = vrcp.f32 %v727_v61  ;;  %v724_v0 = vsel %vm722_vm8, %v723_v62, %v721_v63 }
 0x2f3   : > { %v728_v1 = vadd.f32 1e-06, %v724_v0 }
 0x2f5   : > { %7367 = vrcp.f32 %v728_v1 }
 0x2f7   : > { %v7362_v3 = vpop.eup %7361 }
 0x2f8   : > { %v741_v6 = vmul.f32 %v7362_v3, %v737_v4 }
 0x2fa   : > { %v749_v15 = vadd.f32 %v6149_v8, %v741_v6 }
 0x2fb   : > { %v7364_v7 = vpop.eup %7363 }
 0x2fc   : > { %v7366_v9 = vpop.eup %7365  ;;  %v742_v11 = vmul.f32 %v7364_v7, %v738_v5 }
 0x2fd   : > { %v743_v17 = vmul.f32 %v7366_v9, %v739_v10 }
 0x2fe   : > { %v750_v16 = vadd.f32 %v6149_v8, %v742_v11 }
 0x2ff   : > { %v7368_v18 = vpop.eup %7367  ;;  %v751_v12 = vadd.f32 %v6149_v8, %v743_v17 }
 0x300   : > { %v769_v19 = vpack.c.bf16 %v750_v16, %v749_v15  ;;  %v744_v22 = vmul.f32 %v7368_v18, %v740_v14 }
 0x302   : > { %6604 = vmatprep.mubr.msk.bf16.mxu0 %vm655_vm0, %v769_v19  ;;  %6612 = vmatprep.mubr.msk.bf16.mxu1 %vm655_vm0, %v769_v19  ;;  %v752_v20 = vadd.f32 %v6149_v8, %v744_v22 }
 0x304   : > { %v770_v23 = vpack.c.bf16 %v752_v20, %v751_v12 }
 0x306   : > { %6605 = vmatmul.mubr.msk.bf16.vlgmr.msra.gmra.mrb[0].mxu0 %vm655_vm0, %v770_v23  ;;  %6613 = vmatmul.mubr.msk.bf16.vlgmr.msra.gmra.mrb[0].mxu1 %vm655_vm0, %v770_v23 }
 0x307   : > { %6617 = vmatpush3.bf16.msra.mxu0 %v8692_v32  ;;  %6625 = vmatpush3.bf16.msra.mxu1 %v8694_v33  ;;  %v7341_v32 = vld [vmem:[#allocation16 + $0x60] sm:$0xff]   ;;  %v7342_v33 = vld [vmem:[#allocation16 + $0x70] sm:$0xff]  }
 0x308   : > { %6620 = vmatprep.mubr.msk.bf16.mxu0 %vm655_vm0, %v769_v19  ;;  %6628 = vmatprep.mubr.msk.bf16.mxu1 %vm655_vm0, %v769_v19 }
 0x309   : > { %6618 = vmatprep.subr.bf16.mxu0 %v7335_v24  ;;  %6626 = vmatprep.subr.bf16.mxu1 %v7336_v25 }
 0x30b   : > { %6619 = vmatpush3.bf16.msra.mxu0 %v7335_v24  ;;  %6627 = vmatpush3.bf16.msra.mxu1 %v7336_v25 }
 0x30c   : > { %6632 = vmatprep.subr.bf16.mxu0 %v8116_v26  ;;  %6640 = vmatprep.subr.bf16.mxu1 %v8116_v26 }
 0x30e   : > { %6621 = vmatmul.mubr.msk.bf16.vlgmr.msra.gmra.mrb[4].mxu0 %vm655_vm0, %v770_v23  ;;  %6629 = vmatmul.mubr.msk.bf16.vlgmr.msra.gmra.mrb[4].mxu1 %vm655_vm0, %v770_v23 }
 0x30f   : > { %6633 = vmatpush3.bf16.msra.mxu0 %v7337_v13  ;;  %6641 = vmatpush3.bf16.msra.mxu1 %v7338_v21 }
 0x310   : > { %6634 = vmatprep.subr.bf16.mxu0 %v8116_v26  ;;  %6642 = vmatprep.subr.bf16.mxu1 %v8116_v26 }
 0x311   : > { %6636 = vmatprep.mubr.msk.bf16.mxu0 %vm8117_vm9, %v8116_v26  ;;  %6644 = vmatprep.mubr.msk.bf16.mxu1 %vm8117_vm9, %v8116_v26 }
 0x313   : > { %6635 = vmatpush3.bf16.msra.mxu0 %v7339_v27  ;;  %6643 = vmatpush3.bf16.msra.mxu1 %v7340_v28 }
 0x314   : > { %6648 = vmatprep.subr.bf16.mxu0 %v8116_v26  ;;  %6656 = vmatprep.subr.bf16.mxu1 %v8116_v26 }
 0x316   : > { %6637 = vmatmul.mubr.msk.bf16.vlgmr.msra.gmra.mrb[8].mxu0 %vm655_vm0, %v1057_v31  ;;  %6645 = vmatmul.mubr.msk.bf16.vlgmr.msra.gmra.mrb[8].mxu1 %vm655_vm0, %v1057_v31 }
 0x317   : > { %6649 = vmatpush3.bf16.msra.mxu0 %v7341_v32  ;;  %6657 = vmatpush3.bf16.msra.mxu1 %v7342_v33 }
 0x318   : > { %6650 = vmatprep.subr.bf16.mxu0 %v8116_v26  ;;  %6658 = vmatprep.subr.bf16.mxu1 %v8116_v26 }
 0x319   : > { %6652 = vmatprep.mubr.msk.bf16.mxu0 %vm8117_vm9, %v8116_v26  ;;  %6660 = vmatprep.mubr.msk.bf16.mxu1 %vm8117_vm9, %v8116_v26 }
 0x31b   : > { %6651 = vmatpush3.bf16.msra.mxu0 %v7343_v34  ;;  %6659 = vmatpush3.bf16.msra.mxu1 %v7344_v35 }
 0x31c   : > { %6664 = vmatprep.subr.bf16.mxu0 %v8116_v26  ;;  %6672 = vmatprep.subr.bf16.mxu1 %v8116_v26 }
 0x31e   : > { %6653 = vmatmul.mubr.msk.bf16.vlgmr.msra.gmra.mrb[12].mxu0 %vm655_vm0, %v1057_v31  ;;  %6661 = vmatmul.mubr.msk.bf16.vlgmr.msra.gmra.mrb[12].mxu1 %vm655_vm0, %v1057_v31 }
 0x31f   : > { %6665 = vmatpush3.bf16.msra.mxu0 %v7345_v36  ;;  %6673 = vmatpush3.bf16.msra.mxu1 %v7346_v37 }
 0x320   : > { %6666 = vmatprep.subr.bf16.mxu0 %v8116_v26  ;;  %6674 = vmatprep.subr.bf16.mxu1 %v8116_v26 }
 0x321   : > { %6668 = vmatprep.mubr.msk.bf16.mxu0 %vm8117_vm9, %v8116_v26  ;;  %6676 = vmatprep.mubr.msk.bf16.mxu1 %vm8117_vm9, %v8116_v26 }
 0x323   : > { %6667 = vmatpush3.bf16.msra.mxu0 %v7347_v38  ;;  %6675 = vmatpush3.bf16.msra.mxu1 %v7348_v39 }
 0x324   : > { %6680 = vmatprep.subr.bf16.mxu0 %v8116_v26  ;;  %6688 = vmatprep.subr.bf16.mxu1 %v8116_v26 }
 0x326   : > { %6669 = vmatmul.mubr.msk.bf16.vlgmr.msra.gmra.mrb[16].mxu0 %vm655_vm0, %v1299_v41  ;;  %6677 = vmatmul.mubr.msk.bf16.vlgmr.msra.gmra.mrb[16].mxu1 %vm655_vm0, %v1299_v41 }
 0x327   : > { %6681 = vmatpush3.bf16.msra.mxu0 %v7349_v42  ;;  %6689 = vmatpush3.bf16.msra.mxu1 %v7350_v43 }
 0x328   : > { %6682 = vmatprep.subr.bf16.mxu0 %v8116_v26  ;;  %6690 = vmatprep.subr.bf16.mxu1 %v8116_v26 }
 0x329   : > { %6684 = vmatprep.mubr.msk.bf16.mxu0 %vm8117_vm9, %v8116_v26  ;;  %6692 = vmatprep.mubr.msk.bf16.mxu1 %vm8117_vm9, %v8116_v26 }
 0x32b   : > { %6683 = vmatpush3.bf16.msra.mxu0 %v7351_v44  ;;  %6691 = vmatpush3.bf16.msra.mxu1 %v7352_v45 }
 0x32e   : > { %6685 = vmatmul.mubr.msk.bf16.vlgmr.msra.gmra.mrb[20].mxu0 %vm655_vm0, %v1299_v41  ;;  %6693 = vmatmul.mubr.msk.bf16.vlgmr.msra.gmra.mrb[20].mxu1 %vm655_vm0, %v1299_v41 }
 0x3d9   : > { %v6606_v46 = vpop.f32.mrb[0].mxu0  ;;  %v6614_v47 = vpop.f32.mrb[0].mxu1 }
 0x3da   : > { %v823_v48 = vpop.f32.mrb[1].mxu0  ;;  %v884_v49 = vpop.f32.mrb[1].mxu1 }
 0x3db   : > { %v6607_v50 = vpop.f32.mrb[2].mxu0  ;;  %v6615_v51 = vpop.f32.mrb[2].mxu1 }
 0x3dc   : > { %v1022_v52 = vpack.c.bf16 %v6607_v50, %v6606_v46  ;;  %v1024_v53 = vpack.c.bf16 %v6615_v51, %v6614_v47  ;;  %v826_v54 = vpop.f32.mrb[3].mxu0  ;;  %v887_v55 = vpop.f32.mrb[3].mxu1 }
 0x3dd   : > { %v1021_v56 = vpack.c.bf16 %v826_v54, %v823_v48  ;;  %v1023_v57 = vpack.c.bf16 %v887_v55, %v884_v49 }
 0x3de   : > { %1031 = vst.msk [vmem:[#allocation2 + $0x8] sm:$0xff] %vm1029_vm10, %v1022_v52  ;;  %1033 = vst.msk [vmem:[#allocation2 + $0x18] sm:$0xff] %vm1029_vm10, %v1024_v53 }
 0x3df   : > { %1030 = vst.msk [vmem:[#allocation2] sm:$0xff] %vm1029_vm10, %v1021_v56  ;;  %1032 = vst.msk [vmem:[#allocation2 + $0x10] sm:$0xff] %vm1029_vm10, %v1023_v57 }
 0x3e1   : > { %v6622_v58 = vpop.f32.mrb[4].mxu0  ;;  %v6630_v59 = vpop.f32.mrb[4].mxu1 }
 0x3e2   : > { %v945_v60 = vpop.f32.mrb[5].mxu0  ;;  %v1006_v61 = vpop.f32.mrb[5].mxu1 }
 0x3e3   : > { %v6623_v62 = vpop.f32.mrb[6].mxu0  ;;  %v6631_v63 = vpop.f32.mrb[6].mxu1 }
 0x3e4   : > { %v1026_v0 = vpack.c.bf16 %v6623_v62, %v6622_v58  ;;  %v1028_v1 = vpack.c.bf16 %v6631_v63, %v6630_v59  ;;  %v948_v2 = vpop.f32.mrb[7].mxu0  ;;  %v1009_v3 = vpop.f32.mrb[7].mxu1 }
 0x3e5   : > { %v1025_v4 = vpack.c.bf16 %v948_v2, %v945_v60  ;;  %v1027_v5 = vpack.c.bf16 %v1009_v3, %v1006_v61 }
 0x3e6   : > { %1035 = vst.msk [vmem:[#allocation2 + $0x28] sm:$0xff] %vm1029_vm10, %v1026_v0  ;;  %1037 = vst.msk [vmem:[#allocation2 + $0x38] sm:$0xff] %vm1029_vm10, %v1028_v1 }
 0x3e7   : > { %1034 = vst.msk [vmem:[#allocation2 + $0x20] sm:$0xff] %vm1029_vm10, %v1025_v4  ;;  %1036 = vst.msk [vmem:[#allocation2 + $0x30] sm:$0xff] %vm1029_vm10, %v1027_v5 }
 0x3e9   : > { %v1107_v6 = vpop.f32.mrb[8].mxu0  ;;  %v1160_v7 = vpop.f32.mrb[8].mxu1 }
 0x3ea   : > { %v6638_v8 = vpop.f32.mrb[9].mxu0  ;;  %v6646_v9 = vpop.f32.mrb[9].mxu1 }
 0x3eb   : > { %v1110_v10 = vpop.f32.mrb[10].mxu0  ;;  %v1163_v11 = vpop.f32.mrb[10].mxu1 }
 0x3ec   : > { %v1273_v14 = vpack.c.bf16 %v1110_v10, %v1107_v6  ;;  %v1274_v15 = vpack.c.bf16 %v1163_v11, %v1160_v7  ;;  %v6639_v16 = vpop.f32.mrb[11].mxu0  ;;  %v6647_v17 = vpop.f32.mrb[11].mxu1 }
 0x3ee   : > { %1277 = vst.msk [vmem:[#allocation3] sm:$0xff] %vm1029_vm10, %v1273_v14  ;;  %1278 = vst.msk [vmem:[#allocation3 + $0x8] sm:$0xff] %vm1029_vm10, %v1274_v15 }
 0x3f1   : > { %v1213_v18 = vpop.f32.mrb[12].mxu0  ;;  %v1266_v19 = vpop.f32.mrb[12].mxu1 }
 0x3f2   : > { %v6654_v22 = vpop.f32.mrb[13].mxu0  ;;  %v6662_v12 = vpop.f32.mrb[13].mxu1 }
 0x3f3   : > { %v1216_v20 = vpop.f32.mrb[14].mxu0  ;;  %v1269_v23 = vpop.f32.mrb[14].mxu1 }
 0x3f4   : > { %v1275_v24 = vpack.c.bf16 %v1216_v20, %v1213_v18  ;;  %v1276_v25 = vpack.c.bf16 %v1269_v23, %v1266_v19  ;;  %v6655_v13 = vpop.f32.mrb[15].mxu0  ;;  %v6663_v21 = vpop.f32.mrb[15].mxu1 }
 0x3f6   : > { %1279 = vst.msk [vmem:[#allocation3 + $0x10] sm:$0xff] %vm1029_vm10, %v1275_v24  ;;  %1280 = vst.msk [vmem:[#allocation3 + $0x18] sm:$0xff] %vm1029_vm10, %v1276_v25 }
 0x3f9   : > { %v1349_v26 = vpop.f32.mrb[16].mxu0  ;;  %v1401_v27 = vpop.f32.mrb[16].mxu1 }
 0x3fa   : > { %v1511_v28 = vpack.c.bf16 %v1349_v26, %v1349_v26  ;;  %v1512_v29 = vpack.c.bf16 %v1401_v27, %v1401_v27  ;;  %v6670_v30 = vpop.f32.mrb[17].mxu0  ;;  %v6678_v31 = vpop.f32.mrb[17].mxu1 }
 0x3fb   : > { %v1352_v32 = vpop.f32.mrb[18].mxu0  ;;  %v1404_v33 = vpop.f32.mrb[18].mxu1 }
 0x3fc   : > { %1516 = vst.msk [vmem:[#allocation4] sm:$0xf] %vm1515_vm11, %v1511_v28  ;;  %1517 = vst.msk [vmem:[#allocation4 + $0x4] sm:$0xf] %vm1515_vm11, %v1512_v29  ;;  %v6671_v34 = vpop.f32.mrb[19].mxu0  ;;  %v6679_v35 = vpop.f32.mrb[19].mxu1 }
 0x401   : > { %v1453_v36 = vpop.f32.mrb[20].mxu0  ;;  %v1505_v37 = vpop.f32.mrb[20].mxu1 }
 0x402   : > { %v1513_v38 = vpack.c.bf16 %v1453_v36, %v1453_v36  ;;  %v1514_v39 = vpack.c.bf16 %v1505_v37, %v1505_v37  ;;  %v6686_v40 = vpop.f32.mrb[21].mxu0  ;;  %v6694_v41 = vpop.f32.mrb[21].mxu1 }
 0x403   : > { %v1456_v42 = vpop.f32.mrb[22].mxu0  ;;  %v1508_v43 = vpop.f32.mrb[22].mxu1 }
 0x404   : > { %1518 = vst.msk [vmem:[#allocation4 + $0x8] sm:$0xf] %vm1515_vm11, %v1513_v38  ;;  %1519 = vst.msk [vmem:[#allocation4 + $0xc] sm:$0xf] %vm1515_vm11, %v1514_v39  ;;  %v6687_v44 = vpop.f32.mrb[23].mxu0  ;;  %v6695_v45 = vpop.f32.mrb[23].mxu1 }
 0x405 PF: > { %s9733_s14 = sld [smem:[#allocation37_spill]]  ;;  %vm1546_vm12 = vcmask 261120   ;;  %vm1553_vm13 = vcmask 257024   ;;  %v7369_v3 = vld [vmem:[#allocation14] sm:$0xff]   ;;  %v7370_v4 = vld [vmem:[#allocation14 + $0x10] sm:$0xff]   ;;  %v7371_v5 = vld [vmem:[#allocation14 + $0x8] sm:$0xff]  }
 0x406   : > { %v7372_v6 = vld [vmem:[#allocation14 + $0x18] sm:$0xff]   ;;  %6696 = vmatprep.subr.bf16.mxu0 %v7369_v3  ;;  %6704 = vmatprep.subr.bf16.mxu1 %v7370_v4  ;;  %v7373_v7 = vld [vmem:[#allocation14 + $0x20] sm:$0xff]   ;;  %v8799_v8 = vld [vmem:[#allocation14 + $0x30] sm:$0xff]   ;;  %vm1907_vm4 = vcmask 64512   ;;  %s8119_s15 = smov 120   ;;  %vm2550_vm8 = vcmask 1043456  }
 0x407   : > { %6697 = vmatpush3.bf16.msra.mxu0 %v7369_v3  ;;  %6705 = vmatpush3.bf16.msra.mxu1 %v7370_v4  ;;  %v6192_v33 = vld [vmem:[#allocation11] ss:$0 sm:$0xff]  ;;  %v6193_v41 = vld [vmem:[#allocation13] ss:$0 sm:$0xff] }
 0x408   : > { %6698 = vmatprep.subr.bf16.mxu0 %v7371_v5  ;;  %6706 = vmatprep.subr.bf16.mxu1 %v7372_v6 }
 0x40b   : > { %s6190_s10 = sshll.u32 %s9733_s14, 4  ;;  %6699 = vmatpush3.bf16.msra.mxu0 %v7371_v5  ;;  %6707 = vmatpush3.bf16.msra.mxu1 %v7372_v6 }
 0x40c   : > { %s6191_s12 = sadd.s32 4294967292, %s6190_s10  ;;  %6712 = vmatprep.subr.bf16.mxu0 %v7373_v7  ;;  %6720 = vmatprep.subr.bf16.mxu1 %v8799_v8 }
 0x40d   : > { %p1522_p9 = scmp.gt.s32.totalorder %s6191_s12, 0 }
 0x40f   : > { %s9762_s12 = smov (!%p1522_p9, %s6191_s12), 0 }
 0x410   : > { %s8776_s7 = scalar_lea.vmem %s8621_s26, %s9762_s12 [#allocation5] }
 0x411   : > { %v1525_v46 = vld [vmem:[%s8776_s7] sm:$0xff]  ;;  %v1527_v47 = vld [vmem:[%s8776_s7 + $0x10] sm:$0xf]  ;;  %v1526_v48 = vld [vmem:[%s8776_s7 + $0x8] sm:$0xff] }
 0x412   : > { %v1547_v49 = vsel %vm1546_vm12, %v1525_v46, 0.0  ;;  %v1554_v50 = vsel %vm1553_vm13, %v1527_v47, 0.0  ;;  %v1550_v51 = vsel %vm1546_vm12, %v1526_v48, 0.0 }
 0x413   : > { %1548 = vadd.xlane.f32.xlu0 %v1547_v49  ;;  %1555 = vadd.xlane.f32.xlu1 %v1554_v50  ;;  %v7375_v49 = vld [vmem:[#allocation14 + $0x28] sm:$0xff]   ;;  %v7376_v50 = vld [vmem:[#allocation14 + $0x38] sm:$0xff]  }
 0x417   : > { %1551 = vadd.xlane.f32.xlu0 %v1550_v51  ;;  %v8812_v51 = vld [vmem:[#allocation2] sm:$0xff] }
 0x4a0   : > { %v1549_v52 = vpop.xlane.xlu0 %1548  ;;  %v1556_v53 = vpop.xlane.xlu1 %1555 }
 0x4a1   : > { %v1558_v54 = vmul.f32 0.03125, %v1549_v52  ;;  %v1560_v55 = vmul.f32 0.03125, %v1556_v53  ;;  %v8814_v52 = vld [vmem:[#allocation2 + $0x10] sm:$0xff]  ;;  %v1915_v53 = vsel %vm1907_vm4, %v8812_v51, 0 }
 0x4a3   : > { %v8784_v56 = vsub.f32 %v1525_v46, %v1558_v54  ;;  %v8786_v57 = vsub.f32 %v1527_v47, %v1560_v55  ;;  %v1975_v54 = vsel %vm1907_vm4, %v8814_v52, 0  ;;  %v8826_v55 = vld [vmem:[#allocation2 + $0x8] sm:$0xff] }
 0x4a4   : > { %v1552_v58 = vpop.xlane.xlu0 %1551 }
 0x4a5   : > { %v1559_v59 = vmul.f32 0.03125, %v1552_v58  ;;  %v1564_v60 = vmul.f32 %v8784_v56, %v8784_v56  ;;  %v1566_v61 = vmul.f32 %v8786_v57, %v8786_v57  ;;  %v1610_v35 = vmul.f32 %v6192_v33, %v8784_v56  ;;  %v8828_v56 = vld [vmem:[#allocation2 + $0x18] sm:$0xff] }
 0x4a6   : > { %v1612_v36 = vmul.f32 %v6192_v33, %v8786_v57  ;;  %v1918_v57 = vsel %vm1907_vm4, %v8826_v55, 0  ;;  %v1978_v58 = vsel %vm1907_vm4, %v8828_v56, 0 }
 0x4a7   : > { %v8792_v62 = vsub.f32 %v1526_v48, %v1559_v59  ;;  %v1567_v63 = vsel %vm1546_vm12, %v1564_v60, 0.0  ;;  %v1573_v0 = vsel %vm1553_vm13, %v1566_v61, 0.0  ;;  %v8838_v59 = vld [vmem:[#allocation2 + $0x20] sm:$0xff]  ;;  %v8840_v60 = vld [vmem:[#allocation2 + $0x30] sm:$0xff] }
 0x4a8   : > { %1568 = vadd.xlane.f32.xlu1 %v1567_v63 }
 0x4a9   : > { %v1565_v1 = vmul.f32 %v8792_v62, %v8792_v62  ;;  %v1611_v38 = vmul.f32 %v6192_v33, %v8792_v62 }
 0x4ab   : > { %v1570_v2 = vsel %vm1546_vm12, %v1565_v1, 0.0 }
 0x4ac   : > { %1574 = vadd.xlane.f32.xlu1 %v1573_v0  ;;  %1571 = vadd.xlane.f32.xlu0 %v1570_v2 }
 0x535   : > { %v1569_v9 = vpop.xlane.xlu1 %1568 }
 0x536   : > { %v1576_v10 = vmul.f32 0.032258064, %v1569_v9  ;;  %v2035_v9 = vsel %vm1907_vm4, %v8838_v59, 0 }
 0x538   : > { %7415 = vrsqrt.f32 %v1576_v10  ;;  %vm1581_vm14 = vcmp.eq.f32.partialorder %v1576_v10, inf  ;;  %v1584_v19 = vand.u32 2147483648, %v1576_v10  ;;  %vm1583_vm15 = vcmp.eq.f32.partialorder %v1576_v10, 0.0 }
 0x539   : > { %v1575_v11 = vpop.xlane.xlu1 %1574  ;;  %v1572_v14 = vpop.xlane.xlu0 %1571 }
 0x53a   : > { %v1578_v15 = vmul.f32 0.032258064, %v1575_v11  ;;  %v1577_v16 = vmul.f32 0.032258064, %v1572_v14  ;;  %v8852_v11 = vld [vmem:[#allocation2 + $0x28] sm:$0xff]  ;;  %v8854_v14 = vld [vmem:[#allocation2 + $0x38] sm:$0xff] }
 0x53c   : > { %7417 = vrsqrt.f32 %v1578_v15  ;;  %vm1595_vm0 = vcmp.eq.f32.partialorder %v1578_v15, inf  ;;  %v1598_v13 = vand.u32 2147483648, %v1578_v15  ;;  %vm1597_vm1 = vcmp.eq.f32.partialorder %v1578_v15, 0.0 }
 0x53d   : > { %7419 = vrsqrt.f32 %v1577_v16  ;;  %vm1588_vm2 = vcmp.eq.f32.partialorder %v1577_v16, inf  ;;  %v1591_v27 = vand.u32 2147483648, %v1577_v16  ;;  %vm1590_vm3 = vcmp.eq.f32.partialorder %v1577_v16, 0.0 }
 0x542   : > { %v7416_v17 = vpop.eup %7415 }
 0x543   : > { %v1580_v18 = vmul.f32 %v7416_v17, %v1576_v10 }
 0x545   : > { %v1582_v22 = vsel %vm1581_vm14, %v1576_v10, %v1580_v18  ;;  %v2095_v10 = vsel %vm1907_vm4, %v8840_v60, 0 }
 0x546   : > { %v7418_v12 = vpop.eup %7417  ;;  %v1585_v20 = vsel %vm1583_vm15, %v1584_v19, %v1582_v22 }
 0x547   : > { %v7420_v23 = vpop.eup %7419  ;;  %v1600_v24 = vadd.f32 1e-06, %v1585_v20  ;;  %v1594_v25 = vmul.f32 %v7418_v12, %v1578_v15 }
 0x548   : > { %v1587_v21 = vmul.f32 %v7420_v23, %v1577_v16 }
 0x549   : > { %v1596_v26 = vsel %vm1595_vm0, %v1578_v15, %v1594_v25  ;;  %7421 = vrcp.f32 %v1600_v24  ;;  %v2038_v25 = vsel %vm1907_vm4, %v8852_v11, 0 }
 0x54a   : > { %v1589_v28 = vsel %vm1588_vm2, %v1577_v16, %v1587_v21  ;;  %v1599_v29 = vsel %vm1597_vm1, %v1598_v13, %v1596_v26  ;;  %v2098_v13 = vsel %vm1907_vm4, %v8854_v14, 0  ;;  %vm3390_vm1 = vcmask 125952  }
 0x54b   : > { %v1592_v30 = vsel %vm1590_vm3, %v1591_v27, %v1589_v28  ;;  %v1602_v31 = vadd.f32 1e-06, %v1599_v29  ;;  %v1528_v27 = vlaneseq  ;;  %vm3383_vm2 = vcmask 130048  }
 0x54c   : > { %v1601_v32 = vadd.f32 1e-06, %v1592_v30  ;;  %v1532_v30 = vstv %s9762_s12 }
 0x54d   : > { %7423 = vrcp.f32 %v1602_v31  ;;  %v1529_v28 = vshrl.u32 %v1528_v27, 7  ;;  %v1537_v33 = vand.u32 127, %v1528_v27 }
 0x54e   : > { %7425 = vrcp.f32 %v1601_v32 }
 0x54f   : > { %v1531_v29 = vadd.s32 16, %v1529_v28  ;;  %v1530_v31 = vadd.s32 8, %v1529_v28 }
 0x551   : > { %v1535_v32 = vadd.s32 %v1532_v30, %v1531_v29 }
 0x553   : > { %v7422_v34 = vpop.eup %7421  ;;  %vm1540_vm5 = vcmp.gt.s32.totalorder %v1537_v33, %v1535_v32 }
 0x554   : > { %v1613_v39 = vmul.f32 %v7422_v34, %v1610_v35  ;;  %v1533_v34 = vadd.s32 %v1532_v30, %v1529_v28  ;;  %v1534_v35 = vadd.s32 %v1532_v30, %v1530_v31 }
 0x556   : > { %v1620_v45 = vadd.f32 %v6193_v41, %v1613_v39  ;;  %vm1538_vm6 = vcmp.gt.s32.totalorder %v1537_v33, %v1533_v34  ;;  %vm1539_vm7 = vcmp.gt.s32.totalorder %v1537_v33, %v1534_v35 }
 0x557   : > { %v7424_v37 = vpop.eup %7423 }
 0x558   : > { %v7426_v40 = vpop.eup %7425  ;;  %v1615_v42 = vmul.f32 %v7424_v37, %v1612_v36  ;;  %v8118_v36 = vmov 0.0  }
 0x559   : > { %v1614_v43 = vmul.f32 %v7426_v40, %v1611_v38  ;;  %v1543_v37 = vsel %vm1540_vm5, -1e+09, %v8118_v36  ;;  %v1541_v38 = vsel %vm1538_vm6, -1e+09, %v8118_v36 }
 0x55a   : > { %v1622_v44 = vadd.f32 %v6193_v41, %v1615_v42 }
 0x55b   : > { %v1621_v46 = vadd.f32 %v6193_v41, %v1614_v43 }
 0x55c   : > { %v1652_v47 = vpack.c.bf16 %v1622_v44, %v1622_v44 }
 0x55d   : > { %v1651_v48 = vpack.c.bf16 %v1621_v46, %v1620_v45  ;;  %v1542_v45 = vsel %vm1539_vm7, -1e+09, %v8118_v36 }
 0x55f   : > { %6700 = vmatprep.mubr.msk.bf16.mxu0 %vm1546_vm12, %v1651_v48  ;;  %6708 = vmatprep.mubr.msk.bf16.mxu1 %vm1546_vm12, %v1651_v48 }
 0x560   : > { %6701 = vmatmul.mubr.msk.bf16.vlgmr.msra.gmra.mrb[0].mxu0 %vm1546_vm12, %v1652_v47  ;;  %6709 = vmatmul.mubr.msk.bf16.vlgmr.msra.gmra.mrb[0].mxu1 %vm1546_vm12, %v1652_v47 }
 0x561   : > { %6713 = vmatpush3.bf16.msra.mxu0 %v7373_v7  ;;  %6716 = vmatprep.mubr.msk.bf16.mxu0 %vm1546_vm12, %v1651_v48 }
 0x562   : > { %6721 = vmatpush3.bf16.msra.mxu1 %v8799_v8  ;;  %6724 = vmatprep.mubr.msk.bf16.mxu1 %vm1546_vm12, %v1651_v48 }
 0x563   : > { %6714 = vmatprep.subr.bf16.mxu0 %v7375_v49  ;;  %6722 = vmatprep.subr.bf16.mxu1 %v7376_v50 }
 0x565   : > { %6715 = vmatpush3.bf16.msra.mxu0 %v7375_v49 }
 0x566   : > { %6723 = vmatpush3.bf16.msra.mxu1 %v7376_v50  ;;  %7084 = vmatprep.subr.msk.bf16.mxu0 %vm1907_vm4, %v8812_v51 }
 0x567   : > { %7086 = vmatprep.subr.msk.bf16.mxu1 %vm1907_vm4, %v8814_v52 }
 0x568   : > { %6717 = vmatmul.mubr.msk.bf16.vlgmr.msra.gmra.mrb[4].mxu0 %vm1546_vm12, %v1652_v47 }
 0x569   : > { %6725 = vmatmul.mubr.msk.bf16.vlgmr.msra.gmra.mrb[4].mxu1 %vm1546_vm12, %v1652_v47 }
 0x56e   : > { %6729 = vmatpush3.bf16.xpose.msra.mxu0 %v1915_v53 }
 0x56f   : > { %6737 = vmatpush3.bf16.xpose.msra.mxu1 %v1975_v54  ;;  %7085 = vmatprep.subr.msk.bf16.mxu0 %vm1907_vm4, %v8826_v55 }
 0x570   : > { %7087 = vmatprep.subr.msk.bf16.mxu1 %vm1907_vm4, %v8828_v56 }
 0x576   : > { %6731 = vmatpush3.bf16.xpose.msra.mxu0 %v1918_v57 }
 0x577   : > { %6739 = vmatpush3.bf16.xpose.msra.mxu1 %v1978_v58  ;;  %7088 = vmatprep.subr.msk.bf16.mxu0 %vm1907_vm4, %v8838_v59 }
 0x578   : > { %7090 = vmatprep.subr.msk.bf16.mxu1 %vm1907_vm4, %v8840_v60 }
 0x633   : > { %v6702_v61 = vpop.f32.mrb[0].mxu0  ;;  %v6710_v62 = vpop.f32.mrb[0].mxu1 }
 0x634   : > { %v1705_v63 = vpop.f32.mrb[1].mxu0  ;;  %v1765_v0 = vpop.f32.mrb[1].mxu1  ;;  %v1900_v7 = vpack.c.bf16 %v6702_v61, %v6702_v61  ;;  %v1902_v8 = vpack.c.bf16 %v6710_v62, %v6710_v62 }
 0x635   : > { %v6703_v1 = vpop.f32.mrb[2].mxu0  ;;  %v6711_v2 = vpop.f32.mrb[2].mxu1 }
 0x636   : > { %v1708_v3 = vpop.f32.mrb[3].mxu0  ;;  %v1768_v4 = vpop.f32.mrb[3].mxu1 }
 0x637   : > { %v1899_v5 = vpack.c.bf16 %v1708_v3, %v1705_v63  ;;  %v1901_v6 = vpack.c.bf16 %v1768_v4, %v1765_v0 }
 0x639   : > { %6732 = vmatprep.mubr.msk.bf16.mxu0 %vm1907_vm4, %v1899_v5  ;;  %6740 = vmatprep.mubr.msk.bf16.mxu1 %vm1907_vm4, %v1901_v6 }
 0x63a   : > { %6733 = vmatmul.mubr.msk.bf16.vlgmr.msra.gmra.mrb[8].mxu0 %vm1907_vm4, %v1900_v7  ;;  %6741 = vmatmul.mubr.msk.bf16.vlgmr.msra.gmra.mrb[8].mxu1 %vm1907_vm4, %v1902_v8 }
 0x63b   : > { %6745 = vmatpush3.bf16.xpose.msra.mxu0 %v2035_v9  ;;  %6753 = vmatpush3.bf16.xpose.msra.mxu1 %v2095_v10  ;;  %v6718_v15 = vpop.f32.mrb[4].mxu0 }
 0x63c   : > { %v6726_v16 = vpop.f32.mrb[4].mxu1  ;;  %v1825_v17 = vpop.f32.mrb[5].mxu0  ;;  %7089 = vmatprep.subr.msk.bf16.mxu0 %vm1907_vm4, %v8852_v11  ;;  %7091 = vmatprep.subr.msk.bf16.mxu1 %vm1907_vm4, %v8854_v14  ;;  %v1904_v21 = vpack.c.bf16 %v6718_v15, %v6718_v15 }
 0x63d   : > { %v1885_v18 = vpop.f32.mrb[5].mxu1  ;;  %v6719_v19 = vpop.f32.mrb[6].mxu0  ;;  %v1906_v26 = vpack.c.bf16 %v6726_v16, %v6726_v16 }
 0x63e   : > { %v6727_v22 = vpop.f32.mrb[6].mxu1  ;;  %v1828_v12 = vpop.f32.mrb[7].mxu0 }
 0x63f   : > { %v1903_v20 = vpack.c.bf16 %v1828_v12, %v1825_v17  ;;  %v1888_v23 = vpop.f32.mrb[7].mxu1 }
 0x640   : > { %v1905_v24 = vpack.c.bf16 %v1888_v23, %v1885_v18 }
 0x641   : > { %6748 = vmatprep.mubr.msk.bf16.mxu0 %vm1907_vm4, %v1903_v20 }
 0x642   : > { %6756 = vmatprep.mubr.msk.bf16.mxu1 %vm1907_vm4, %v1905_v24 }
 0x643   : > { %6747 = vmatpush3.bf16.xpose.msra.mxu0 %v2038_v25  ;;  %6755 = vmatpush3.bf16.xpose.msra.mxu1 %v2098_v13 }
 0x64a   : > { %6749 = vmatmul.mubr.msk.bf16.vlgmr.msra.gmra.mrb[12].mxu0 %vm1907_vm4, %v1904_v21  ;;  %6757 = vmatmul.mubr.msk.bf16.vlgmr.msra.gmra.mrb[12].mxu1 %vm1907_vm4, %v1906_v26 }
 0x70d   : > { %v6734_v39 = vpop.f32.mrb[8].mxu0  ;;  %v6742_v40 = vpop.f32.mrb[8].mxu1 }
 0x70e   : > { %v8871_v41 = vadd.f32 %v6734_v39, %v1543_v37  ;;  %v2023_v42 = vadd.f32 %v6742_v40, %v1543_v37  ;;  %v1954_v43 = vpop.f32.mrb[9].mxu0  ;;  %v2014_v44 = vpop.f32.mrb[9].mxu1 }
 0x70f   : > { %v8873_v46 = vadd.f32 %v1954_v43, %v1541_v38  ;;  %v8875_v47 = vadd.f32 %v2014_v44, %v1541_v38  ;;  %v6735_v48 = vpop.f32.mrb[10].mxu0  ;;  %v6743_v49 = vpop.f32.mrb[10].mxu1 }
 0x710   : > { %v1957_v50 = vpop.f32.mrb[11].mxu0  ;;  %v2017_v53 = vpop.f32.mrb[11].mxu1  ;;  %v2163_v54 = vsel %vm1553_vm13, %v2023_v42, -inf  ;;  %v2154_v57 = vsel %vm1553_vm13, %v8871_v41, -inf }
 0x711   : > { %v8880_v58 = vadd.f32 %v1957_v50, %v1542_v45  ;;  %v8882_v61 = vadd.f32 %v2017_v53, %v1542_v45  ;;  %2164 = vmax.xlane.f32.xlu1 %v2163_v54  ;;  %2155 = vmax.xlane.f32.xlu0 %v2154_v57  ;;  %v2157_v62 = vsel %vm1546_vm12, %v8875_v47, -inf  ;;  %v2148_v63 = vsel %vm1546_vm12, %v8873_v46, -inf }
 0x713   : > { %v2151_v0 = vsel %vm1546_vm12, %v8880_v58, -inf  ;;  %v2160_v1 = vsel %vm1546_vm12, %v8882_v61, -inf }
 0x715   : > { %2158 = vmax.xlane.f32.xlu1 %v2157_v62  ;;  %2149 = vmax.xlane.f32.xlu0 %v2148_v63 }
 0x719   : > { %2152 = vmax.xlane.f32.xlu1 %v2151_v0  ;;  %2161 = vmax.xlane.f32.xlu0 %v2160_v1 }
 0x71d   : > { %v6750_v2 = vpop.f32.mrb[12].mxu0  ;;  %v6758_v3 = vpop.f32.mrb[12].mxu1 }
 0x71e   : > { %v8892_v4 = vadd.f32 %v6750_v2, %v1543_v37  ;;  %v8894_v5 = vadd.f32 %v6758_v3, %v1543_v37  ;;  %v2074_v6 = vpop.f32.mrb[13].mxu0  ;;  %v2134_v7 = vpop.f32.mrb[13].mxu1 }
 0x71f   : > { %v8896_v8 = vadd.f32 %v2074_v6, %v1541_v38  ;;  %v8898_v9 = vadd.f32 %v2134_v7, %v1541_v38  ;;  %v6751_v10 = vpop.f32.mrb[14].mxu0  ;;  %v6759_v15 = vpop.f32.mrb[14].mxu1 }
 0x720   : > { %v2077_v16 = vpop.f32.mrb[15].mxu0  ;;  %v2137_v17 = vpop.f32.mrb[15].mxu1  ;;  %v2172_v18 = vsel %vm1553_vm13, %v8892_v4, -inf  ;;  %v2181_v25 = vsel %vm1553_vm13, %v8894_v5, -inf }
 0x721   : > { %v8902_v19 = vadd.f32 %v2077_v16, %v1542_v45  ;;  %v8904_v22 = vadd.f32 %v2137_v17, %v1542_v45  ;;  %2173 = vmax.xlane.f32.xlu0 %v2172_v18  ;;  %v2175_v12 = vsel %vm1546_vm12, %v8898_v9, -inf  ;;  %v2166_v20 = vsel %vm1546_vm12, %v8896_v8, -inf }
 0x722   : > { %2176 = vmax.xlane.f32.xlu1 %v2175_v12 }
 0x723   : > { %v2169_v23 = vsel %vm1546_vm12, %v8902_v19, -inf  ;;  %v2178_v24 = vsel %vm1546_vm12, %v8904_v22, -inf }
 0x725   : > { %2167 = vmax.xlane.f32.xlu0 %v2166_v20 }
 0x726   : > { %2170 = vmax.xlane.f32.xlu1 %v2169_v23 }
 0x729   : > { %2179 = vmax.xlane.f32.xlu0 %v2178_v24 }
 0x72a   : > { %2182 = vmax.xlane.f32.xlu1 %v2181_v25 }
 0x73b   : > { %2352 = vrot.lane.b32.xlu1 %v8814_v52, %s8119_s15 }
 0x73f   : > { %2292 = vrot.lane.b32.xlu1 %v8826_v55, %s8119_s15  ;;  %2290 = vrot.lane.b32.xlu0 %v8812_v51, %s8119_s15 }
 0x743   : > { %2354 = vrot.lane.b32.xlu1 %v8828_v56, %s8119_s15  ;;  %2414 = vrot.lane.b32.xlu0 %v8838_v59, %s8119_s15 }
 0x747   : > { %2476 = vrot.lane.b32.xlu1 %v8840_v60, %s8119_s15 }
 0x79e   : > { %v2165_v13 = vpop.xlane.xlu1 %2164  ;;  %v2156_v21 = vpop.xlane.xlu0 %2155 }
 0x79f   : > { %v2189_v26 = vsub.f32 %v2023_v42, %v2165_v13  ;;  %v2186_v52 = vsub.f32 %v8871_v41, %v2156_v21 }
 0x7a1   : > { %v2206_v27 = vmul.f32 1.442695, %v2189_v26  ;;  %v2200_v28 = vmul.f32 1.442695, %v2186_v52 }
 0x7a2   : > { %v2159_v55 = vpop.xlane.xlu1 %2158  ;;  %v2150_v29 = vpop.xlane.xlu0 %2149 }
 0x7a3   : > { %7427 = vpow2.f32 %v2206_v27  ;;  %v2187_v51 = vsub.f32 %v8875_v47, %v2159_v55  ;;  %v2184_v56 = vsub.f32 %v8873_v46, %v2150_v29 }
 0x7a4   : > { %7429 = vpow2.f32 %v2200_v28 }
 0x7a5   : > { %v2202_v30 = vmul.f32 1.442695, %v2187_v51  ;;  %v2196_v59 = vmul.f32 1.442695, %v2184_v56 }
 0x7a6   : > { %v2153_v31 = vpop.xlane.xlu1 %2152  ;;  %v2162_v32 = vpop.xlane.xlu0 %2161 }
 0x7a7   : > { %7431 = vpow2.f32 %v2202_v30  ;;  %v2185_v60 = vsub.f32 %v8880_v58, %v2153_v31  ;;  %v2188_v33 = vsub.f32 %v8882_v61, %v2162_v32 }
 0x7a8   : > { %7433 = vpow2.f32 %v2196_v59 }
 0x7a9   : > { %v2198_v34 = vmul.f32 1.442695, %v2185_v60  ;;  %v2204_v35 = vmul.f32 1.442695, %v2188_v33 }
 0x7ab   : > { %7435 = vpow2.f32 %v2198_v34 }
 0x7ac   : > { %7437 = vpow2.f32 %v2204_v35 }
 0x7ad   : > { %v8933_v36 = vpop.eup %7427 }
 0x7ae   : > { %v8935_v37 = vpop.eup %7429  ;;  %v2174_v38 = vpop.xlane.xlu0 %2173  ;;  %v2235_v39 = vsel %vm1553_vm13, %v8933_v36, 0.0 }
 0x7af   : > { %v2192_v40 = vsub.f32 %v8892_v4, %v2174_v38  ;;  %v2177_v41 = vpop.xlane.xlu1 %2176  ;;  %2236 = vadd.xlane.f32.xlu1 %v2235_v39  ;;  %v2226_v42 = vsel %vm1553_vm13, %v8935_v37, 0.0 }
 0x7b0   : > { %2227 = vadd.xlane.f32.xlu0 %v2226_v42  ;;  %v2193_v58 = vsub.f32 %v8898_v9, %v2177_v41 }
 0x7b1   : > { %v8942_v43 = vpop.eup %7431  ;;  %v2212_v44 = vmul.f32 1.442695, %v2192_v40 }
 0x7b2   : > { %v8944_v45 = vpop.eup %7433  ;;  %v2168_v46 = vpop.xlane.xlu0 %2167  ;;  %v2229_v47 = vsel %vm1546_vm12, %v8942_v43, 0.0  ;;  %v2214_v4 = vmul.f32 1.442695, %v2193_v58 }
 0x7b3   : > { %7439 = vpow2.f32 %v2212_v44  ;;  %v2190_v48 = vsub.f32 %v8896_v8, %v2168_v46  ;;  %v2171_v49 = vpop.xlane.xlu1 %2170  ;;  %2230 = vadd.xlane.f32.xlu1 %v2229_v47  ;;  %v2220_v50 = vsel %vm1546_vm12, %v8944_v45, 0.0 }
 0x7b4   : > { %2221 = vadd.xlane.f32.xlu0 %v2220_v50  ;;  %v2191_v6 = vsub.f32 %v8902_v19, %v2171_v49 }
 0x7b5   : > { %v8951_v53 = vpop.eup %7435  ;;  %v2208_v54 = vmul.f32 1.442695, %v2190_v48 }
 0x7b6   : > { %v8953_v57 = vpop.eup %7437  ;;  %v2180_v61 = vpop.xlane.xlu0 %2179  ;;  %v2223_v62 = vsel %vm1546_vm12, %v8951_v53, 0.0  ;;  %v2210_v15 = vmul.f32 1.442695, %v2191_v6 }
 0x7b7   : > { %7441 = vpow2.f32 %v2208_v54  ;;  %v2194_v63 = vsub.f32 %v8904_v22, %v2180_v61  ;;  %v2183_v0 = vpop.xlane.xlu1 %2182  ;;  %2224 = vadd.xlane.f32.xlu1 %v2223_v62  ;;  %v2232_v1 = vsel %vm1546_vm12, %v8953_v57, 0.0 }
 0x7b8   : > { %v2195_v2 = vsub.f32 %v8894_v5, %v2183_v0  ;;  %2233 = vadd.xlane.f32.xlu0 %v2232_v1 }
 0x7b9   : > { %v2216_v3 = vmul.f32 1.442695, %v2194_v63 }
 0x7ba   : > { %v2218_v7 = vmul.f32 1.442695, %v2195_v2  ;;  %v2291_v8 = vpop.permute.xlu0 %2290 }
 0x7bb   : > { %7443 = vpow2.f32 %v2216_v3  ;;  %v2353_v9 = vpop.permute.xlu1 %2352  ;;  %6760 = vmatprep.subr.bf16.mxu0 %v2291_v8 }
 0x7bc   : > { %7445 = vpow2.f32 %v2218_v7  ;;  %6768 = vmatprep.subr.bf16.mxu1 %v2353_v9  ;;  %6761 = vmatpush3.bf16.msra.mxu0 %v2291_v8 }
 0x7bd   : > { %v8963_v10 = vpop.eup %7439  ;;  %6769 = vmatpush3.bf16.msra.mxu1 %v2353_v9  ;;  %7447 = vpow2.f32 %v2214_v4  ;;  %v1647_v9 = vld [vmem:[#allocation17] sm:$0xf] }
 0x7be   : > { %v2244_v5 = vsel %vm1553_vm13, %v8963_v10, 0.0  ;;  %v8967_v17 = vpop.permute.xlu0 %2414  ;;  %7449 = vpow2.f32 %v2210_v15  ;;  %v1648_v15 = vld [vmem:[#allocation17 + $0x4] sm:$0xf] }
 0x7bf   : > { %2245 = vadd.xlane.f32.xlu0 %v2244_v5  ;;  %v2293_v16 = vpop.permute.xlu1 %2292  ;;  %v2609_v5 = vsel %vm2550_vm8, %v1648_v15, 0 }
 0x7c0   : > { %6762 = vmatprep.subr.bf16.mxu0 %v2293_v16 }
 0x7c1   : > { %v8969_v18 = vpop.eup %7441  ;;  %6763 = vmatpush3.bf16.msra.mxu0 %v2293_v16  ;;  %v1650_v16 = vld [vmem:[#allocation17 + $0xc] sm:$0xf] }
 0x7c2   : > { %v2238_v19 = vsel %vm1546_vm12, %v8969_v18, 0.0  ;;  %6776 = vmatprep.subr.bf16.mxu0 %v8967_v17 }
 0x7c3   : > { %2239 = vadd.xlane.f32.xlu0 %v2238_v19  ;;  %v2355_v22 = vpop.permute.xlu1 %2354 }
 0x7c4   : > { %6770 = vmatprep.subr.bf16.mxu1 %v2355_v22 }
 0x7c5   : > { %v8974_v12 = vpop.eup %7443  ;;  %6771 = vmatpush3.bf16.msra.mxu1 %v2355_v22 }
 0x7c6   : > { %v8976_v20 = vpop.eup %7445  ;;  %v2250_v23 = vsel %vm1546_vm12, %v8974_v12, 0.0 }
 0x7c7   : > { %2251 = vadd.xlane.f32.xlu0 %v2250_v23  ;;  %v2253_v24 = vsel %vm1553_vm13, %v8976_v20, 0.0  ;;  %v2477_v25 = vpop.permute.xlu1 %2476  ;;  %v8982_v13 = vpop.eup %7447 }
 0x7c8   : > { %2254 = vadd.xlane.f32.xlu1 %v2253_v24  ;;  %6784 = vmatprep.subr.bf16.mxu1 %v2477_v25  ;;  %v2247_v21 = vsel %vm1546_vm12, %v8982_v13, 0.0  ;;  %v8986_v26 = vpop.eup %7449 }
 0x7c9   : > { %v2241_v52 = vsel %vm1546_vm12, %v8986_v26, 0.0 }
 0x7cc   : > { %2248 = vadd.xlane.f32.xlu1 %v2247_v21 }
 0x7d0   : > { %2242 = vadd.xlane.f32.xlu1 %v2241_v52 }
 0x7dd   : > { %2416 = vrot.lane.b32.xlu0 %v8852_v11, %s8119_s15 }
 0x7e1   : > { %2478 = vrot.lane.b32.xlu1 %v8854_v14, %s8119_s15 }
 0x83c   : > { %v2237_v27 = vpop.xlane.xlu1 %2236 }
 0x83d   : > { %v2228_v28 = vpop.xlane.xlu0 %2227  ;;  %7451 = vrcp.f32 %v2237_v27 }
 0x83e   : > { %7453 = vrcp.f32 %v2228_v28  ;;  %v2723_v28 = vsel %vm2550_vm8, %v1650_v16, 0 }
 0x840   : > { %v2231_v55 = vpop.xlane.xlu1 %2230 }
 0x841   : > { %v2222_v29 = vpop.xlane.xlu0 %2221 }
 0x842   : > { %7455 = vrcp.f32 %v2222_v29 }
 0x843   : > { %7457 = vrcp.f32 %v2231_v55 }
 0x844   : > { %v2225_v51 = vpop.xlane.xlu1 %2224 }
 0x845   : > { %7459 = vrcp.f32 %v2225_v51  ;;  %v2234_v56 = vpop.xlane.xlu0 %2233 }
 0x846   : > { %7461 = vrcp.f32 %v2234_v56 }
 0x847   : > { %v7452_v30 = vpop.eup %7451 }
 0x848   : > { %v7454_v59 = vpop.eup %7453  ;;  %v2273_v34 = vmul.f32 %v7452_v30, %v8933_v36 }
 0x849   : > { %v2270_v14 = vmul.f32 %v7454_v59, %v8935_v37 }
 0x84a   : > { %v2283_v48 = vpack.c.bf16 %v2273_v34, %v2273_v34 }
 0x84b   : > { %v2281_v46 = vpack.c.bf16 %v2270_v14, %v2270_v14 }
 0x84c   : > { %v2246_v31 = vpop.xlane.xlu0 %2245  ;;  %v7456_v32 = vpop.eup %7455 }
 0x84d   : > { %v7458_v11 = vpop.eup %7457  ;;  %v2268_v38 = vmul.f32 %v7456_v32, %v8944_v45 }
 0x84e   : > { %v2271_v40 = vmul.f32 %v7458_v11, %v8942_v43 }
 0x84f   : > { %v7460_v60 = vpop.eup %7459 }
 0x850   : > { %v7462_v33 = vpop.eup %7461  ;;  %v2240_v35 = vpop.xlane.xlu0 %2239  ;;  %v2269_v39 = vmul.f32 %v7460_v60, %v8951_v53 }
 0x851   : > { %v2272_v41 = vmul.f32 %v7462_v33, %v8953_v57 }
 0x852   : > { %v2280_v42 = vpack.c.bf16 %v2269_v39, %v2268_v38 }
 0x853   : > { %v2282_v44 = vpack.c.bf16 %v2272_v41, %v2271_v40 }
 0x854   : > { %v2252_v47 = vpop.xlane.xlu0 %2251  ;;  %6764 = vmatprep.mubr.msk.bf16.mxu0 %vm1546_vm12, %v2280_v42 }
 0x855   : > { %v2255_v37 = vpop.xlane.xlu1 %2254  ;;  %6772 = vmatprep.mubr.msk.bf16.mxu1 %vm1546_vm12, %v2282_v44  ;;  %6765 = vmatmul.mubr.msk.bf16.vlgmr.msra.gmra.mrb[16].mxu0 %vm1546_vm12, %v2281_v46 }
 0x856   : > { %6773 = vmatmul.mubr.msk.bf16.vlgmr.msra.gmra.mrb[16].mxu1 %vm1546_vm12, %v2283_v48  ;;  %6777 = vmatpush3.bf16.msra.mxu0 %v8967_v17  ;;  %7463 = vrcp.f32 %v2255_v37  ;;  %v1649_v17 = vld [vmem:[#allocation17 + $0x8] sm:$0xf] }
 0x857   : > { %6785 = vmatpush3.bf16.msra.mxu1 %v2477_v25  ;;  %7465 = vrcp.f32 %v2252_v47  ;;  %v2666_v52 = vsel %vm2550_vm8, %v1649_v17, 0 }
 0x858   : > { %v2417_v36 = vpop.permute.xlu0 %2416 }
 0x859   : > { %v2249_v43 = vpop.xlane.xlu1 %2248  ;;  %6778 = vmatprep.subr.bf16.mxu0 %v2417_v36 }
 0x85a   : > { %7467 = vrcp.f32 %v2249_v43  ;;  %6779 = vmatpush3.bf16.msra.mxu0 %v2417_v36 }
 0x85b   : > { %7469 = vrcp.f32 %v2246_v31  ;;  %7092 = vmatprep.subr.msk.bf16.mxu0 %vm2550_vm8, %v1647_v9 }
 0x85c   : > { %7471 = vrcp.f32 %v2240_v35 }
 0x85d   : > { %v2243_v45 = vpop.xlane.xlu1 %2242 }
 0x85e   : > { %7473 = vrcp.f32 %v2243_v45 }
 0x860   : > { %v7464_v49 = vpop.eup %7463 }
 0x861   : > { %v2479_v50 = vpop.permute.xlu1 %2478  ;;  %v7466_v53 = vpop.eup %7465  ;;  %v2279_v57 = vmul.f32 %v7464_v49, %v8976_v20 }
 0x862   : > { %6786 = vmatprep.subr.bf16.mxu1 %v2479_v50  ;;  %v2278_v62 = vmul.f32 %v7466_v53, %v8974_v12 }
 0x863   : > { %6787 = vmatpush3.bf16.msra.mxu1 %v2479_v50  ;;  %v2287_v3 = vpack.c.bf16 %v2279_v57, %v2279_v57 }
 0x864   : > { %v7468_v54 = vpop.eup %7467  ;;  %7093 = vmatprep.subr.msk.bf16.mxu1 %vm2550_vm8, %v1648_v15 }
 0x865   : > { %v7470_v58 = vpop.eup %7469  ;;  %v2277_v61 = vmul.f32 %v7468_v54, %v8982_v13 }
 0x866   : > { %v7472_v63 = vpop.eup %7471  ;;  %v2276_v2 = vmul.f32 %v7470_v58, %v8963_v10  ;;  %v2552_v10 = vsel %vm2550_vm8, %v1647_v9, 0 }
 0x867   : > { %v2286_v0 = vpack.c.bf16 %v2278_v62, %v2277_v61  ;;  %v2274_v4 = vmul.f32 %v7472_v63, %v8969_v18 }
 0x868   : > { %v7474_v1 = vpop.eup %7473  ;;  %v2285_v8 = vpack.c.bf16 %v2276_v2, %v2276_v2 }
 0x869   : > { %6788 = vmatprep.mubr.msk.bf16.mxu1 %vm1546_vm12, %v2286_v0  ;;  %v2275_v6 = vmul.f32 %v7474_v1, %v8986_v26 }
 0x86a   : > { %6789 = vmatmul.mubr.msk.bf16.vlgmr.msra.gmra.mrb[20].mxu1 %vm1546_vm12, %v2287_v3 }
 0x86b   : > { %v2284_v7 = vpack.c.bf16 %v2275_v6, %v2274_v4  ;;  %6799 = vmatpush3.bf16.msra.mxu1 %v2609_v5 }
 0x86c   : > { %7095 = vmatprep.subr.msk.bf16.mxu1 %vm2550_vm8, %v1650_v16 }
 0x86d   : > { %6780 = vmatprep.mubr.msk.bf16.mxu0 %vm1546_vm12, %v2284_v7 }
 0x86e   : > { %6781 = vmatmul.mubr.msk.bf16.vlgmr.msra.gmra.mrb[20].mxu0 %vm1546_vm12, %v2285_v8 }
 0x86f   : > { %6793 = vmatpush3.bf16.msra.mxu0 %v2552_v10 }
 0x870   : > { %7094 = vmatprep.subr.msk.bf16.mxu0 %vm2550_vm8, %v1649_v17  ;;  %v7607_v17 = vld [vmem:[%s8776_s7] sm:$0xff] }
 0x928   : > { %v6766_v18 = vpop.f32.mrb[16].mxu0 }
 0x929   : > { %v6774_v19 = vpop.f32.mrb[16].mxu1  ;;  %v2336_v22 = vpop.f32.mrb[17].mxu0  ;;  %v2537_v21 = vpack.c.bf16 %v6766_v18, %v6766_v18 }
 0x92a   : > { %v2398_v12 = vpop.f32.mrb[17].mxu1  ;;  %v6767_v20 = vpop.f32.mrb[18].mxu0  ;;  %v2539_v27 = vpack.c.bf16 %v6774_v19, %v6774_v19 }
 0x92b   : > { %v6775_v23 = vpop.f32.mrb[18].mxu1  ;;  %v2339_v24 = vpop.f32.mrb[19].mxu0  ;;  %v7609_v20 = vld [vmem:[%s8776_s7 + $0x10] sm:$0xf] }
 0x92c   : > { %v2536_v25 = vpack.c.bf16 %v2339_v24, %v2336_v22  ;;  %v2401_v13 = vpop.f32.mrb[19].mxu1  ;;  %v7608_v22 = vld [vmem:[%s8776_s7 + $0x8] sm:$0xff] }
 0x92d   : > { %v2538_v26 = vpack.c.bf16 %v2401_v13, %v2398_v12 }
 0x92e   : > { %6794 = vmatprep.mubr.msk.bf16.mxu0 %vm1907_vm4, %v2536_v25 }
 0x92f   : > { %6800 = vmatprep.mubr.msk.bf16.mxu1 %vm1907_vm4, %v2538_v26  ;;  %6795 = vmatmul.mubr.msk.bf16.vlgmr.msra.gmra.mrb[24].mxu0 %vm1907_vm4, %v2537_v21 }
 0x930   : > { %6801 = vmatmul.mubr.msk.bf16.vlgmr.msra.gmra.mrb[24].mxu1 %vm1907_vm4, %v2539_v27  ;;  %6805 = vmatpush3.bf16.msra.mxu0 %v2666_v52 }
 0x931   : > { %6811 = vmatpush3.bf16.msra.mxu1 %v2723_v28 }
 0x93d   : > { %v6790_v55 = vpop.f32.mrb[20].mxu1 }
 0x93e   : > { %v2522_v29 = vpop.f32.mrb[21].mxu1  ;;  %v2543_v31 = vpack.c.bf16 %v6790_v55, %v6790_v55 }
 0x93f   : > { %v6791_v51 = vpop.f32.mrb[22].mxu1 }
 0x940   : > { %v2525_v56 = vpop.f32.mrb[23].mxu1 }
 0x941   : > { %v2542_v30 = vpack.c.bf16 %v2525_v56, %v2522_v29  ;;  %v6782_v59 = vpop.f32.mrb[20].mxu0 }
 0x942   : > { %v2460_v32 = vpop.f32.mrb[21].mxu0  ;;  %v2541_v33 = vpack.c.bf16 %v6782_v59, %v6782_v59 }
 0x943   : > { %v6783_v11 = vpop.f32.mrb[22].mxu0  ;;  %6812 = vmatprep.mubr.msk.bf16.mxu1 %vm1907_vm4, %v2542_v30 }
 0x944   : > { %v2463_v60 = vpop.f32.mrb[23].mxu0  ;;  %6813 = vmatmul.mubr.msk.bf16.vlgmr.msra.gmra.mrb[28].mxu1 %vm1907_vm4, %v2543_v31 }
 0x945   : > { %v2540_v14 = vpack.c.bf16 %v2463_v60, %v2460_v32  ;;  %v7377_v60 = vld [vmem:[#allocation14 + $0x40] sm:$0xff]  }
 0x946   : > { %6816 = vmatprep.subr.bf16.mxu0 %v7377_v60 }
 0x947   : > { %6806 = vmatprep.mubr.msk.bf16.mxu0 %vm1907_vm4, %v2540_v14  ;;  %v7378_v14 = vld [vmem:[#allocation14 + $0x50] sm:$0xff]  }
 0x948   : > { %6807 = vmatmul.mubr.msk.bf16.vlgmr.msra.gmra.mrb[28].mxu0 %vm1907_vm4, %v2541_v33  ;;  %v7379_v33 = vld [vmem:[#allocation14 + $0x48] sm:$0xff]   ;;  %6824 = vmatprep.subr.bf16.mxu1 %v7378_v14 }
 0x949   : > { %6817 = vmatpush3.bf16.msra.mxu0 %v7377_v60  ;;  %6825 = vmatpush3.bf16.msra.mxu1 %v7378_v14 }
 0x94a   : > { %6818 = vmatprep.subr.bf16.mxu0 %v7379_v33 }
 0x94d   : > { %6819 = vmatpush3.bf16.msra.mxu0 %v7379_v33 }
 0xa02   : > { %v6796_v34 = vpop.f32.mrb[24].mxu0 }
 0xa03   : > { %v2787_v35 = vsel %vm1553_vm13, %v6796_v34, 0.0  ;;  %v6802_v38 = vpop.f32.mrb[24].mxu1  ;;  %v2588_v39 = vpop.f32.mrb[25].mxu0  ;;  %v7380_v34 = vld [vmem:[#allocation14 + $0x58] sm:$0xff]  }
 0xa04   : > { %v2788_v40 = vsel %vm1553_vm13, %v6802_v38, 0.0  ;;  %v2773_v41 = vsel %vm1546_vm12, %v2588_v39, 0.0  ;;  %v2645_v42 = vpop.f32.mrb[25].mxu1  ;;  %v6797_v44 = vpop.f32.mrb[26].mxu0  ;;  %6826 = vmatprep.subr.bf16.mxu1 %v7380_v34  ;;  %v9076_v38 = vld [vmem:[#allocation14 + $0x70] sm:$0xff]  }
 0xa05   : > { %v2789_v46 = vadd.f32 %v2788_v40, %v2787_v35  ;;  %v2774_v47 = vsel %vm1546_vm12, %v2645_v42, 0.0  ;;  %v6803_v48 = vpop.f32.mrb[26].mxu1  ;;  %v2591_v37 = vpop.f32.mrb[27].mxu0  ;;  %6827 = vmatpush3.bf16.msra.mxu1 %v7380_v34  ;;  %v7381_v35 = vld [vmem:[#allocation14 + $0x60] sm:$0xff]  }
 0xa06   : > { %v2775_v36 = vadd.f32 %v2774_v47, %v2773_v41  ;;  %v2780_v43 = vsel %vm1546_vm12, %v2591_v37, 0.0  ;;  %v2648_v45 = vpop.f32.mrb[27].mxu1  ;;  %6832 = vmatprep.subr.bf16.mxu0 %v7381_v35  ;;  %6840 = vmatprep.subr.bf16.mxu1 %v9076_v38 }
 0xa07   : > { %v2781_v49 = vsel %vm1546_vm12, %v2648_v45, 0.0 }
 0xa08   : > { %v2782_v50 = vadd.f32 %v2781_v49, %v2780_v43 }
 0xa17   : > { %v6814_v53 = vpop.f32.mrb[28].mxu1 }
 0xa18   : > { %v2759_v54 = vpop.f32.mrb[29].mxu1  ;;  %v2792_v3 = vsel %vm1553_vm13, %v6814_v53, 0.0 }
 0xa19   : > { %v6815_v57 = vpop.f32.mrb[30].mxu1  ;;  %v2778_v7 = vsel %vm1546_vm12, %v2759_v54, 0.0 }
 0xa1a   : > { %v2762_v58 = vpop.f32.mrb[31].mxu1 }
 0xa1b   : > { %v6808_v61 = vpop.f32.mrb[28].mxu0  ;;  %v2785_v5 = vsel %vm1546_vm12, %v2762_v58, 0.0 }
 0xa1c   : > { %v2790_v62 = vsel %vm1553_vm13, %v6808_v61, 0.0  ;;  %v2702_v63 = vpop.f32.mrb[29].mxu0 }
 0xa1d   : > { %v2791_v0 = vadd.f32 %v2790_v62, %v2789_v46  ;;  %v2776_v1 = vsel %vm1546_vm12, %v2702_v63, 0.0  ;;  %v6809_v2 = vpop.f32.mrb[30].mxu0 }
 0xa1e   : > { %v2777_v4 = vadd.f32 %v2776_v1, %v2775_v36  ;;  %v2705_v6 = vpop.f32.mrb[31].mxu0 }
 0xa1f   : > { %v2793_v8 = vadd.f32 %v2792_v3, %v2791_v0  ;;  %v2783_v9 = vsel %vm1546_vm12, %v2705_v6, 0.0  ;;  %v6234_v3 = vld [vmem:[#allocation11 + $0x1] ss:$0 sm:$0xff] }
 0xa20   : > { %v2779_v15 = vadd.f32 %v2778_v7, %v2777_v4  ;;  %v2784_v10 = vadd.f32 %v2783_v9, %v2782_v50 }
 0xa21   : > { %v9052_v23 = vadd.f32 %v7609_v20, %v2793_v8 }
 0xa22   : > { %v2786_v16 = vadd.f32 %v2785_v5, %v2784_v10  ;;  %v9044_v18 = vadd.f32 %v7607_v17, %v2779_v15  ;;  %v6235_v10 = vld [vmem:[#allocation13 + $0x1] ss:$0 sm:$0xff] }
 0xa23   : > { %v2805_v25 = vsel %vm1553_vm13, %v9052_v23, 0.0 }
 0xa24   : > { %v2799_v19 = vsel %vm1546_vm12, %v9044_v18, 0.0  ;;  %v9049_v12 = vadd.f32 %v7608_v22, %v2786_v16 }
 0xa25   : > { %2800 = vadd.xlane.f32.xlu0 %v2799_v19 }
 0xa26   : > { %v2802_v24 = vsel %vm1546_vm12, %v9049_v12, 0.0 }
 0xa27   : > { %2803 = vadd.xlane.f32.xlu1 %v2802_v24 }
 0xa29   : > { %2806 = vadd.xlane.f32.xlu0 %v2805_v25 }
 0xab2   : > { %v2801_v13 = vpop.xlane.xlu0 %2800 }
 0xab3   : > { %v2808_v21 = vmul.f32 0.03125, %v2801_v13  ;;  %v7383_v13 = vld [vmem:[#allocation14 + $0x68] sm:$0xff]  }
 0xab4   : > { %v2804_v26 = vpop.xlane.xlu1 %2803 }
 0xab5   : > { %v9059_v52 = vsub.f32 %v9044_v18, %v2808_v21  ;;  %v2809_v27 = vmul.f32 0.03125, %v2804_v26  ;;  %v7384_v21 = vld [vmem:[#allocation14 + $0x78] sm:$0xff]  }
 0xab6   : > { %v2807_v28 = vpop.xlane.xlu0 %2806  ;;  %v9089_v26 = vld [vmem:[#allocation3] sm:$0xff] }
 0xab7   : > { %v9062_v55 = vsub.f32 %v9049_v12, %v2809_v27  ;;  %v2810_v29 = vmul.f32 0.03125, %v2807_v28  ;;  %v2814_v51 = vmul.f32 %v9059_v52, %v9059_v52  ;;  %v2860_v6 = vmul.f32 %v6234_v3, %v9059_v52  ;;  %v9091_v52 = vld [vmem:[#allocation3 + $0x8] sm:$0xff] }
 0xab8   : > { %v3162_v27 = vsel %vm1907_vm4, %v9089_v26, 0  ;;  %v3219_v28 = vsel %vm1907_vm4, %v9091_v52, 0 }
 0xab9   : > { %v9067_v56 = vsub.f32 %v9052_v23, %v2810_v29  ;;  %v2817_v30 = vsel %vm1546_vm12, %v2814_v51, 0.0  ;;  %v2815_v59 = vmul.f32 %v9062_v55, %v9062_v55  ;;  %v2861_v7 = vmul.f32 %v6234_v3, %v9062_v55  ;;  %v9103_v55 = vld [vmem:[#allocation3 + $0x10] sm:$0xff]  ;;  %v9105_v29 = vld [vmem:[#allocation3 + $0x18] sm:$0xff] }
 0xaba   : > { %2818 = vadd.xlane.f32.xlu0 %v2817_v30 }
 0xabb   : > { %v2816_v31 = vmul.f32 %v9067_v56, %v9067_v56  ;;  %v2820_v11 = vsel %vm1546_vm12, %v2815_v59, 0.0  ;;  %v2862_v15 = vmul.f32 %v6234_v3, %v9067_v56 }
 0xabd   : > { %v2823_v32 = vsel %vm1553_vm13, %v2816_v31, 0.0 }
 0xabe   : > { %2824 = vadd.xlane.f32.xlu1 %v2823_v32  ;;  %2821 = vadd.xlane.f32.xlu0 %v2820_v11 }
 0xb47   : > { %v2819_v39 = vpop.xlane.xlu0 %2818 }
 0xb48   : > { %v2826_v40 = vmul.f32 0.032258064, %v2819_v39  ;;  %v3333_v39 = vsel %vm1907_vm4, %v9105_v29, 0 }
 0xb4a   : > { %7475 = vrsqrt.f32 %v2826_v40  ;;  %vm2831_vm9 = vcmp.eq.f32.partialorder %v2826_v40, inf  ;;  %v2834_v37 = vand.u32 2147483648, %v2826_v40  ;;  %vm2833_vm10 = vcmp.eq.f32.partialorder %v2826_v40, 0.0 }
 0xb4b   : > { %v2822_v41 = vpop.xlane.xlu0 %2821  ;;  %v2825_v42 = vpop.xlane.xlu1 %2824 }
 0xb4c   : > { %v2827_v44 = vmul.f32 0.032258064, %v2822_v41  ;;  %v2828_v46 = vmul.f32 0.032258064, %v2825_v42 }
 0xb4e   : > { %7477 = vrsqrt.f32 %v2827_v44  ;;  %vm2838_vm11 = vcmp.eq.f32.partialorder %v2827_v44, inf  ;;  %vm2840_vm14 = vcmp.eq.f32.partialorder %v2827_v44, 0.0  ;;  %v2841_v54 = vand.u32 2147483648, %v2827_v44 }
 0xb4f   : > { %7479 = vrsqrt.f32 %v2828_v46  ;;  %vm2845_vm15 = vcmp.eq.f32.partialorder %v2828_v46, inf  ;;  %v2848_v61 = vand.u32 2147483648, %v2828_v46  ;;  %vm2847_vm0 = vcmp.eq.f32.partialorder %v2828_v46, 0.0 }
 0xb54   : > { %v7476_v47 = vpop.eup %7475 }
 0xb55   : > { %v2830_v48 = vmul.f32 %v7476_v47, %v2826_v40 }
 0xb57   : > { %v2832_v36 = vsel %vm2831_vm9, %v2826_v40, %v2830_v48 }
 0xb58   : > { %v7478_v43 = vpop.eup %7477  ;;  %v2835_v45 = vsel %vm2833_vm10, %v2834_v37, %v2832_v36 }
 0xb59   : > { %v7480_v49 = vpop.eup %7479  ;;  %v2850_v50 = vadd.f32 1e-06, %v2835_v45  ;;  %v2837_v53 = vmul.f32 %v7478_v43, %v2827_v44 }
 0xb5a   : > { %v2844_v57 = vmul.f32 %v7480_v49, %v2828_v46 }
 0xb5b   : > { %7481 = vrcp.f32 %v2850_v50  ;;  %v2839_v58 = vsel %vm2838_vm11, %v2827_v44, %v2837_v53  ;;  %vm4609_vm11 = vcmask 60416  }
 0xb5c   : > { %v2842_v62 = vsel %vm2840_vm14, %v2841_v54, %v2839_v58  ;;  %v2846_v63 = vsel %vm2845_vm15, %v2828_v46, %v2844_v57 }
 0xb5d   : > { %v2851_v0 = vadd.f32 1e-06, %v2842_v62  ;;  %v2849_v1 = vsel %vm2847_vm0, %v2848_v61, %v2846_v63 }
 0xb5e   : > { %v2852_v2 = vadd.f32 1e-06, %v2849_v1 }
 0xb5f   : > { %7483 = vrcp.f32 %v2851_v0 }
 0xb60   : > { %7485 = vrcp.f32 %v2852_v2 }
 0xb65   : > { %v7482_v4 = vpop.eup %7481 }
 0xb66   : > { %v2863_v8 = vmul.f32 %v7482_v4, %v2860_v6 }
 0xb68   : > { %v2870_v19 = vadd.f32 %v6235_v10, %v2863_v8 }
 0xb69   : > { %v7484_v9 = vpop.eup %7483 }
 0xb6a   : > { %v7486_v5 = vpop.eup %7485  ;;  %v2864_v16 = vmul.f32 %v7484_v9, %v2861_v7 }
 0xb6b   : > { %v2865_v17 = vmul.f32 %v7486_v5, %v2862_v15 }
 0xb6c   : > { %v2871_v22 = vadd.f32 %v6235_v10, %v2864_v16 }
 0xb6d   : > { %v2872_v20 = vadd.f32 %v6235_v10, %v2865_v17 }
 0xb6e   : > { %v2899_v24 = vpack.c.bf16 %v2871_v22, %v2870_v19 }
 0xb6f   : > { %v2900_v25 = vpack.c.bf16 %v2872_v20, %v2872_v20 }
 0xb70   : > { %6820 = vmatprep.mubr.msk.bf16.mxu0 %vm1546_vm12, %v2899_v24  ;;  %6828 = vmatprep.mubr.msk.bf16.mxu1 %vm1546_vm12, %v2899_v24 }
 0xb71   : > { %6821 = vmatmul.mubr.msk.bf16.vlgmr.msra.gmra.mrb[32].mxu0 %vm1546_vm12, %v2900_v25  ;;  %6829 = vmatmul.mubr.msk.bf16.vlgmr.msra.gmra.mrb[32].mxu1 %vm1546_vm12, %v2900_v25 }
 0xb72   : > { %6833 = vmatpush3.bf16.msra.mxu0 %v7381_v35  ;;  %6836 = vmatprep.mubr.msk.bf16.mxu0 %vm1546_vm12, %v2899_v24 }
 0xb73   : > { %6841 = vmatpush3.bf16.msra.mxu1 %v9076_v38  ;;  %6844 = vmatprep.mubr.msk.bf16.mxu1 %vm1546_vm12, %v2899_v24  ;;  %v3276_v38 = vsel %vm1907_vm4, %v9103_v55, 0 }
 0xb74   : > { %6834 = vmatprep.subr.bf16.mxu0 %v7383_v13  ;;  %6842 = vmatprep.subr.bf16.mxu1 %v7384_v21 }
 0xb76   : > { %6835 = vmatpush3.bf16.msra.mxu0 %v7383_v13 }
 0xb77   : > { %6843 = vmatpush3.bf16.msra.mxu1 %v7384_v21  ;;  %7096 = vmatprep.subr.msk.bf16.mxu0 %vm1907_vm4, %v9089_v26 }
 0xb78   : > { %7097 = vmatprep.subr.msk.bf16.mxu1 %vm1907_vm4, %v9091_v52 }
 0xb79   : > { %6837 = vmatmul.mubr.msk.bf16.vlgmr.msra.gmra.mrb[36].mxu0 %vm1546_vm12, %v2900_v25 }
 0xb7a   : > { %6845 = vmatmul.mubr.msk.bf16.vlgmr.msra.gmra.mrb[36].mxu1 %vm1546_vm12, %v2900_v25 }
 0xb7f   : > { %6849 = vmatpush3.bf16.xpose.msra.mxu0 %v3162_v27 }
 0xb80   : > { %6855 = vmatpush3.bf16.xpose.msra.mxu1 %v3219_v28  ;;  %7098 = vmatprep.subr.msk.bf16.mxu0 %vm1907_vm4, %v9103_v55 }
 0xb81   : > { %7099 = vmatprep.subr.msk.bf16.mxu1 %vm1907_vm4, %v9105_v29 }
 0xc44   : > { %v6822_v51 = vpop.f32.mrb[32].mxu0  ;;  %v6830_v56 = vpop.f32.mrb[32].mxu1 }
 0xc45   : > { %v2953_v30 = vpop.f32.mrb[33].mxu0  ;;  %v3013_v59 = vpop.f32.mrb[33].mxu1  ;;  %v3148_v34 = vpack.c.bf16 %v6822_v51, %v6822_v51  ;;  %v3150_v35 = vpack.c.bf16 %v6830_v56, %v6830_v56 }
 0xc46   : > { %v6823_v31 = vpop.f32.mrb[34].mxu0  ;;  %v6831_v32 = vpop.f32.mrb[34].mxu1 }
 0xc47   : > { %v2956_v11 = vpop.f32.mrb[35].mxu0  ;;  %v3016_v60 = vpop.f32.mrb[35].mxu1 }
 0xc48   : > { %v3147_v14 = vpack.c.bf16 %v2956_v11, %v2953_v30  ;;  %v3149_v33 = vpack.c.bf16 %v3016_v60, %v3013_v59 }
 0xc4a   : > { %6850 = vmatprep.mubr.msk.bf16.mxu0 %vm1907_vm4, %v3147_v14  ;;  %6856 = vmatprep.mubr.msk.bf16.mxu1 %vm1907_vm4, %v3149_v33 }
 0xc4b   : > { %6851 = vmatmul.mubr.msk.bf16.vlgmr.msra.gmra.mrb[40].mxu0 %vm1907_vm4, %v3148_v34  ;;  %6857 = vmatmul.mubr.msk.bf16.vlgmr.msra.gmra.mrb[40].mxu1 %vm1907_vm4, %v3150_v35 }
 0xc4c   : > { %v6838_v40 = vpop.f32.mrb[36].mxu0  ;;  %6861 = vmatpush3.bf16.xpose.msra.mxu0 %v3276_v38  ;;  %6867 = vmatpush3.bf16.xpose.msra.mxu1 %v3333_v39 }
 0xc4d   : > { %v6846_v41 = vpop.f32.mrb[36].mxu1  ;;  %v3073_v42 = vpop.f32.mrb[37].mxu0  ;;  %v3152_v43 = vpack.c.bf16 %v6838_v40, %v6838_v40 }
 0xc4e   : > { %v3133_v44 = vpop.f32.mrb[37].mxu1  ;;  %v6839_v46 = vpop.f32.mrb[38].mxu0  ;;  %v3154_v49 = vpack.c.bf16 %v6846_v41, %v6846_v41 }
 0xc4f   : > { %v6847_v47 = vpop.f32.mrb[38].mxu1  ;;  %v3076_v48 = vpop.f32.mrb[39].mxu0 }
 0xc50   : > { %v3151_v37 = vpack.c.bf16 %v3076_v48, %v3073_v42  ;;  %v3136_v36 = vpop.f32.mrb[39].mxu1 }
 0xc51   : > { %v3153_v45 = vpack.c.bf16 %v3136_v36, %v3133_v44 }
 0xc52   : > { %6862 = vmatprep.mubr.msk.bf16.mxu0 %vm1907_vm4, %v3151_v37 }
 0xc53   : > { %6868 = vmatprep.mubr.msk.bf16.mxu1 %vm1907_vm4, %v3153_v45  ;;  %6863 = vmatmul.mubr.msk.bf16.vlgmr.msra.gmra.mrb[44].mxu0 %vm1907_vm4, %v3152_v43 }
 0xc54   : > { %6869 = vmatmul.mubr.msk.bf16.vlgmr.msra.gmra.mrb[44].mxu1 %vm1907_vm4, %v3154_v49 }
 0xd1e   : > { %v6852_v50 = vpop.f32.mrb[40].mxu0  ;;  %v6858_v53 = vpop.f32.mrb[40].mxu1 }
 0xd1f   : > { %v3198_v54 = vpop.f32.mrb[41].mxu0  ;;  %v3255_v57 = vpop.f32.mrb[41].mxu1  ;;  %v3400_v58 = vsel %vm3390_vm1, %v6858_v53, -inf  ;;  %v3391_v61 = vsel %vm3390_vm1, %v6852_v50, -inf }
 0xd20   : > { %3401 = vmax.xlane.f32.xlu1 %v3400_v58  ;;  %v6859_v62 = vpop.f32.mrb[42].mxu1  ;;  %3392 = vmax.xlane.f32.xlu0 %v3391_v61  ;;  %v6853_v63 = vpop.f32.mrb[42].mxu0  ;;  %v3394_v2 = vsel %vm3383_vm2, %v3255_v57, -inf  ;;  %v3384_v3 = vsel %vm3383_vm2, %v3198_v54, -inf }
 0xd21   : > { %v3201_v0 = vpop.f32.mrb[43].mxu0  ;;  %v3258_v1 = vpop.f32.mrb[43].mxu1 }
 0xd22   : > { %v3397_v8 = vsel %vm3383_vm2, %v3258_v1, -inf  ;;  %v3387_v9 = vsel %vm3383_vm2, %v3201_v0, -inf }
 0xd24   : > { %3395 = vmax.xlane.f32.xlu1 %v3394_v2  ;;  %3385 = vmax.xlane.f32.xlu0 %v3384_v3 }
 0xd26   : > { %v6864_v4 = vpop.f32.mrb[44].mxu0 }
 0xd27   : > { %v9127_v6 = vpop.f32.mrb[44].mxu1  ;;  %v3312_v7 = vpop.f32.mrb[45].mxu0  ;;  %v3409_v22 = vsel %vm3390_vm1, %v6864_v4, -inf }
 0xd28   : > { %v9131_v15 = vpop.f32.mrb[45].mxu1  ;;  %3398 = vmax.xlane.f32.xlu0 %v3397_v8  ;;  %3388 = vmax.xlane.f32.xlu1 %v3387_v9  ;;  %v6865_v10 = vpop.f32.mrb[46].mxu0  ;;  %v3403_v20 = vsel %vm3383_vm2, %v3312_v7, -inf  ;;  %v3418_v13 = vsel %vm3390_vm1, %v9127_v6, -inf }
 0xd29   : > { %v6871_v5 = vpop.f32.mrb[46].mxu1  ;;  %v9133_v16 = vpop.f32.mrb[47].mxu0  ;;  %v3412_v19 = vsel %vm3383_vm2, %v9131_v15, -inf }
 0xd2a   : > { %v9135_v17 = vpop.f32.mrb[47].mxu1  ;;  %v3406_v24 = vsel %vm3383_vm2, %v9133_v16, -inf }
 0xd2b   : > { %v3415_v25 = vsel %vm3383_vm2, %v9135_v17, -inf }
 0xd2c   : > { %3413 = vmax.xlane.f32.xlu1 %v3412_v19  ;;  %3410 = vmax.xlane.f32.xlu0 %v3409_v22 }
 0xd30   : > { %3404 = vmax.xlane.f32.xlu0 %v3403_v20  ;;  %3407 = vmax.xlane.f32.xlu1 %v3406_v24 }
 0xd34   : > { %3416 = vmax.xlane.f32.xlu0 %v3415_v25  ;;  %3419 = vmax.xlane.f32.xlu1 %v3418_v13 }
 0xdad   : > { %v3402_v21 = vpop.xlane.xlu1 %3401  ;;  %v3393_v27 = vpop.xlane.xlu0 %3392 }
 0xdae   : > { %v3426_v28 = vsub.f32 %v6858_v53, %v3402_v21  ;;  %v3423_v51 = vsub.f32 %v6852_v50, %v3393_v27 }
 0xdb0   : > { %v3443_v56 = vmul.f32 1.442695, %v3426_v28  ;;  %v3437_v30 = vmul.f32 1.442695, %v3423_v51 }
 0xdb1   : > { %v3396_v59 = vpop.xlane.xlu1 %3395  ;;  %v3386_v31 = vpop.xlane.xlu0 %3385 }
 0xdb2   : > { %7487 = vpow2.f32 %v3443_v56  ;;  %v3424_v32 = vsub.f32 %v3255_v57, %v3396_v59  ;;  %v3421_v11 = vsub.f32 %v3198_v54, %v3386_v31 }
 0xdb3   : > { %7489 = vpow2.f32 %v3437_v30 }
 0xdb4   : > { %v3439_v60 = vmul.f32 1.442695, %v3424_v32  ;;  %v3433_v14 = vmul.f32 1.442695, %v3421_v11 }
 0xdb5   : > { %v3399_v33 = vpop.xlane.xlu0 %3398  ;;  %v3389_v34 = vpop.xlane.xlu1 %3388 }
 0xdb6   : > { %7491 = vpow2.f32 %v3439_v60  ;;  %v3425_v35 = vsub.f32 %v3258_v1, %v3399_v33  ;;  %v3422_v38 = vsub.f32 %v3201_v0, %v3389_v34 }
 0xdb7   : > { %7493 = vpow2.f32 %v3433_v14 }
 0xdb8   : > { %v3441_v39 = vmul.f32 1.442695, %v3425_v35  ;;  %v3435_v40 = vmul.f32 1.442695, %v3422_v38 }
 0xdb9   : > { %v3414_v41 = vpop.xlane.xlu1 %3413  ;;  %v3411_v42 = vpop.xlane.xlu0 %3410 }
 0xdba   : > { %7495 = vpow2.f32 %v3441_v39  ;;  %v3429_v44 = vsub.f32 %v6864_v4, %v3411_v42  ;;  %v3430_v57 = vsub.f32 %v9131_v15, %v3414_v41 }
 0xdbb   : > { %7497 = vpow2.f32 %v3435_v40 }
 0xdbc   : > { %v9147_v46 = vpop.eup %7487  ;;  %v3449_v47 = vmul.f32 1.442695, %v3429_v44  ;;  %v3451_v8 = vmul.f32 1.442695, %v3430_v57 }
 0xdbd   : > { %v9149_v48 = vpop.eup %7489  ;;  %v3405_v37 = vpop.xlane.xlu0 %3404  ;;  %v3472_v43 = vsel %vm3390_vm1, %v9147_v46, 0.0 }
 0xdbe   : > { %v3408_v36 = vpop.xlane.xlu1 %3407  ;;  %v3427_v45 = vsub.f32 %v3312_v7, %v3405_v37  ;;  %v3463_v49 = vsel %vm3390_vm1, %v9149_v48, 0.0  ;;  %3473 = vadd.xlane.f32.xlu1 %v3472_v43  ;;  %7499 = vpow2.f32 %v3449_v47 }
 0xdbf   : > { %3464 = vadd.xlane.f32.xlu0 %v3463_v49  ;;  %v3428_v9 = vsub.f32 %v9133_v16, %v3408_v36 }
 0xdc0   : > { %v9155_v50 = vpop.eup %7491  ;;  %v3445_v53 = vmul.f32 1.442695, %v3427_v45 }
 0xdc1   : > { %v9157_v54 = vpop.eup %7493  ;;  %v3417_v58 = vpop.xlane.xlu0 %3416  ;;  %v3466_v62 = vsel %vm3383_vm2, %v9155_v50, 0.0  ;;  %v3447_v5 = vmul.f32 1.442695, %v3428_v9 }
 0xdc2   : > { %v3420_v61 = vpop.xlane.xlu1 %3419  ;;  %7501 = vpow2.f32 %v3445_v53  ;;  %v3431_v63 = vsub.f32 %v9135_v17, %v3417_v58  ;;  %v3457_v1 = vsel %vm3383_vm2, %v9157_v54, 0.0  ;;  %3467 = vadd.xlane.f32.xlu1 %v3466_v62 }
 0xdc3   : > { %v3432_v0 = vsub.f32 %v9127_v6, %v3420_v61  ;;  %3458 = vadd.xlane.f32.xlu0 %v3457_v1 }
 0xdc4   : > { %v7496_v2 = vpop.eup %7495  ;;  %v3453_v3 = vmul.f32 1.442695, %v3431_v63 }
 0xdc5   : > { %v3455_v4 = vmul.f32 1.442695, %v3432_v0  ;;  %v7498_v7 = vpop.eup %7497  ;;  %v3469_v15 = vsel %vm3383_vm2, %v7496_v2, 0.0 }
 0xdc6   : > { %7503 = vpow2.f32 %v3453_v3  ;;  %v3460_v10 = vsel %vm3383_vm2, %v7498_v7, 0.0 }
 0xdc7   : > { %7505 = vpow2.f32 %v3455_v4  ;;  %3470 = vadd.xlane.f32.xlu0 %v3469_v15  ;;  %3461 = vadd.xlane.f32.xlu1 %v3460_v10 }
 0xdc8   : > { %v9169_v6 = vpop.eup %7499  ;;  %7507 = vpow2.f32 %v3451_v8 }
 0xdc9   : > { %v3481_v17 = vsel %vm3390_vm1, %v9169_v6, 0.0  ;;  %7509 = vpow2.f32 %v3447_v5 }
 0xdcb   : > { %3482 = vadd.xlane.f32.xlu0 %v3481_v17  ;;  %v2896_v17 = vld [vmem:[#allocation17 + $0x14] sm:$0xf] }
 0xdcc   : > { %v9173_v19 = vpop.eup %7501 }
 0xdcd   : > { %v3475_v16 = vsel %vm3383_vm2, %v9173_v19, 0.0 }
 0xdcf   : > { %3476 = vadd.xlane.f32.xlu0 %v3475_v16  ;;  %v2897_v16 = vld [vmem:[#allocation17 + $0x18] sm:$0xf] }
 0xdd0   : > { %v9177_v22 = vpop.eup %7503 }
 0xdd1   : > { %v9179_v20 = vpop.eup %7505  ;;  %v3487_v24 = vsel %vm3383_vm2, %v9177_v22, 0.0 }
 0xdd2   : > { %v3490_v25 = vsel %vm3390_vm1, %v9179_v20, 0.0  ;;  %v9185_v13 = vpop.eup %7507 }
 0xdd3   : > { %3488 = vadd.xlane.f32.xlu0 %v3487_v24  ;;  %3491 = vadd.xlane.f32.xlu1 %v3490_v25  ;;  %v3484_v21 = vsel %vm3383_vm2, %v9185_v13, 0.0  ;;  %v9189_v27 = vpop.eup %7509 }
 0xdd4   : > { %v3478_v28 = vsel %vm3383_vm2, %v9189_v27, 0.0 }
 0xdd7   : > { %3485 = vadd.xlane.f32.xlu1 %v3484_v21 }
 0xddb   : > { %3479 = vadd.xlane.f32.xlu1 %v3478_v28  ;;  %v3886_v28 = vsel %vm2550_vm8, %v2897_v16, 0 }
 0xde9   : > { %3526 = vrot.lane.b32.xlu0 %v9089_v26, %s8119_s15 }
 0xdec   : > { %3584 = vrot.lane.b32.xlu1 %v9091_v52, %s8119_s15 }
 0xdf0   : > { %3642 = vrot.lane.b32.xlu1 %v9103_v55, %s8119_s15 }
 0xdf4   : > { %3700 = vrot.lane.b32.xlu1 %v9105_v29, %s8119_s15 }
 0xe4b   : > { %v3474_v51 = vpop.xlane.xlu1 %3473 }
 0xe4c   : > { %v3465_v56 = vpop.xlane.xlu0 %3464 }
 0xe4d   : > { %7511 = vrcp.f32 %v3465_v56 }
 0xe4f   : > { %v3468_v30 = vpop.xlane.xlu1 %3467 }
 0xe50   : > { %v3459_v59 = vpop.xlane.xlu0 %3458  ;;  %7513 = vrcp.f32 %v3468_v30 }
 0xe51   : > { %7515 = vrcp.f32 %v3459_v59 }
 0xe54   : > { %v3471_v31 = vpop.xlane.xlu0 %3470  ;;  %v3462_v32 = vpop.xlane.xlu1 %3461 }
 0xe55   : > { %7517 = vrcp.f32 %v3471_v31 }
 0xe56   : > { %7519 = vrcp.f32 %v3462_v32 }
 0xe57   : > { %v7512_v11 = vpop.eup %7511  ;;  %7521 = vrcp.f32 %v3474_v51 }
 0xe58   : > { %v3483_v26 = vpop.xlane.xlu0 %3482  ;;  %v3507_v42 = vmul.f32 %v7512_v11, %v9149_v48 }
 0xe5a   : > { %v7514_v60 = vpop.eup %7513  ;;  %v3518_v36 = vpack.c.bf16 %v3507_v42, %v3507_v42 }
 0xe5b   : > { %v7516_v14 = vpop.eup %7515  ;;  %v3508_v35 = vmul.f32 %v7514_v60, %v9155_v50 }
 0xe5c   : > { %v3477_v52 = vpop.xlane.xlu0 %3476  ;;  %v3505_v39 = vmul.f32 %v7516_v14, %v9157_v54 }
 0xe5f   : > { %v7518_v55 = vpop.eup %7517 }
 0xe60   : > { %v7520_v33 = vpop.eup %7519  ;;  %v3489_v29 = vpop.xlane.xlu0 %3488  ;;  %v3509_v38 = vmul.f32 %v7518_v55, %v7496_v2 }
 0xe61   : > { %v3492_v34 = vpop.xlane.xlu1 %3491  ;;  %v3506_v40 = vmul.f32 %v7520_v33, %v7498_v7  ;;  %7523 = vrcp.f32 %v3489_v29  ;;  %v7522_v43 = vpop.eup %7521 }
 0xe62   : > { %v3519_v41 = vpack.c.bf16 %v3509_v38, %v3508_v35  ;;  %7525 = vrcp.f32 %v3483_v26  ;;  %v3510_v48 = vmul.f32 %v7522_v43, %v9147_v46 }
 0xe63   : > { %v3517_v44 = vpack.c.bf16 %v3506_v40, %v3505_v39 }
 0xe64   : > { %v3527_v47 = vpop.permute.xlu0 %3526  ;;  %6880 = vmatprep.mubr.msk.bf16.mxu1 %vm3383_vm2, %v3519_v41  ;;  %v3520_v57 = vpack.c.bf16 %v3510_v48, %v3510_v48 }
 0xe65   : > { %v3486_v37 = vpop.xlane.xlu1 %3485  ;;  %6874 = vmatprep.mubr.msk.bf16.mxu0 %vm3383_vm2, %v3517_v44  ;;  %6872 = vmatprep.subr.bf16.mxu0 %v3527_v47 }
 0xe66   : > { %7527 = vrcp.f32 %v3486_v37  ;;  %6873 = vmatpush3.bf16.msra.mxu0 %v3527_v47 }
 0xe67   : > { %7529 = vrcp.f32 %v3492_v34 }
 0xe68   : > { %7531 = vrcp.f32 %v3477_v52 }
 0xe69   : > { %v3480_v45 = vpop.xlane.xlu1 %3479  ;;  %6875 = vmatmul.mubr.msk.bf16.vlgmr.msra.gmra.mrb[48].mxu0 %vm3383_vm2, %v3518_v36 }
 0xe6a   : > { %7533 = vrcp.f32 %v3480_v45 }
 0xe6b   : > { %v7524_v50 = vpop.eup %7523 }
 0xe6c   : > { %v7526_v53 = vpop.eup %7525  ;;  %v3515_v63 = vmul.f32 %v7524_v50, %v9177_v22  ;;  %v2898_v22 = vld [vmem:[#allocation17 + $0x1c] sm:$0xf] }
 0xe6d   : > { %v3585_v49 = vpop.permute.xlu1 %3584  ;;  %v3513_v2 = vmul.f32 %v7526_v53, %v9169_v6  ;;  %v2895_v6 = vld [vmem:[#allocation17 + $0x10] sm:$0xf]  ;;  %v3943_v26 = vsel %vm2550_vm8, %v2898_v22, 0 }
 0xe6e   : > { %6878 = vmatprep.subr.bf16.mxu1 %v3585_v49  ;;  %v3772_v5 = vsel %vm2550_vm8, %v2895_v6, 0 }
 0xe6f   : > { %6879 = vmatpush3.bf16.msra.mxu1 %v3585_v49  ;;  %v3522_v15 = vpack.c.bf16 %v3513_v2, %v3513_v2 }
 0xe70   : > { %v7528_v54 = vpop.eup %7527 }
 0xe71   : > { %v7530_v58 = vpop.eup %7529  ;;  %v3643_v61 = vpop.permute.xlu1 %3642  ;;  %v3514_v62 = vmul.f32 %v7528_v54, %v9185_v13 }
 0xe72   : > { %v7532_v0 = vpop.eup %7531  ;;  %6881 = vmatmul.mubr.msk.bf16.vlgmr.msra.gmra.mrb[48].mxu1 %vm3383_vm2, %v3520_v57  ;;  %6884 = vmatprep.subr.bf16.mxu0 %v3643_v61  ;;  %v3516_v3 = vmul.f32 %v7530_v58, %v9179_v20 }
 0xe73   : > { %6885 = vmatpush3.bf16.msra.mxu0 %v3643_v61  ;;  %v3523_v1 = vpack.c.bf16 %v3515_v63, %v3514_v62  ;;  %v3511_v7 = vmul.f32 %v7532_v0, %v9173_v19  ;;  %v3829_v19 = vsel %vm2550_vm8, %v2896_v17, 0 }
 0xe74   : > { %v7534_v46 = vpop.eup %7533  ;;  %v3524_v10 = vpack.c.bf16 %v3516_v3, %v3516_v3  ;;  %7100 = vmatprep.subr.msk.bf16.mxu0 %vm2550_vm8, %v2895_v6 }
 0xe75   : > { %6892 = vmatprep.mubr.msk.bf16.mxu1 %vm3383_vm2, %v3523_v1  ;;  %v3701_v4 = vpop.permute.xlu1 %3700  ;;  %v3512_v8 = vmul.f32 %v7534_v46, %v9189_v27 }
 0xe76   : > { %6890 = vmatprep.subr.bf16.mxu1 %v3701_v4 }
 0xe77   : > { %6891 = vmatpush3.bf16.msra.mxu1 %v3701_v4  ;;  %v3521_v9 = vpack.c.bf16 %v3512_v8, %v3511_v7 }
 0xe78   : > { %7101 = vmatprep.subr.msk.bf16.mxu1 %vm2550_vm8, %v2896_v17 }
 0xe79   : > { %6886 = vmatprep.mubr.msk.bf16.mxu0 %vm3383_vm2, %v3521_v9 }
 0xe7a   : > { %6887 = vmatmul.mubr.msk.bf16.vlgmr.msra.gmra.mrb[52].mxu0 %vm3383_vm2, %v3522_v15  ;;  %6893 = vmatmul.mubr.msk.bf16.vlgmr.msra.gmra.mrb[52].mxu1 %vm3383_vm2, %v3524_v10  ;;  %vm5547_vm2 = vcmask 1041408  }
 0xe7b   : > { %6897 = vmatpush3.bf16.msra.mxu0 %v3772_v5  ;;  %6903 = vmatpush3.bf16.msra.mxu1 %v3829_v19 }
 0xe7c   : > { %7102 = vmatprep.subr.msk.bf16.mxu0 %vm2550_vm8, %v2897_v16  ;;  %7103 = vmatprep.subr.msk.bf16.mxu1 %vm2550_vm8, %v2898_v22 }
 0xf3c   : > { %v6876_v20 = vpop.f32.mrb[48].mxu0 }
 0xf3d   : > { %v3569_v24 = vpop.f32.mrb[49].mxu0  ;;  %v3758_v27 = vpack.c.bf16 %v6876_v20, %v6876_v20 }
 0xf3e   : > { %v6877_v25 = vpop.f32.mrb[50].mxu0 }
 0xf3f   : > { %v3572_v13 = vpop.f32.mrb[51].mxu0 }
 0xf40   : > { %v3757_v21 = vpack.c.bf16 %v3572_v13, %v3569_v24 }
 0xf42   : > { %6898 = vmatprep.mubr.msk.bf16.mxu0 %vm1907_vm4, %v3757_v21 }
 0xf43   : > { %6899 = vmatmul.mubr.msk.bf16.vlgmr.msra.gmra.mrb[56].mxu0 %vm1907_vm4, %v3758_v27 }
 0xf44   : > { %6909 = vmatpush3.bf16.msra.mxu0 %v3886_v28 }
 0xf45   : > { %v6882_v51 = vpop.f32.mrb[48].mxu1 }
 0xf46   : > { %v3627_v56 = vpop.f32.mrb[49].mxu1  ;;  %v3760_v32 = vpack.c.bf16 %v6882_v51, %v6882_v51 }
 0xf47   : > { %v6883_v30 = vpop.f32.mrb[50].mxu1 }
 0xf48   : > { %v3630_v59 = vpop.f32.mrb[51].mxu1 }
 0xf49   : > { %v3759_v31 = vpack.c.bf16 %v3630_v59, %v3627_v56 }
 0xf4b   : > { %6904 = vmatprep.mubr.msk.bf16.mxu1 %vm1907_vm4, %v3759_v31 }
 0xf4c   : > { %6905 = vmatmul.mubr.msk.bf16.vlgmr.msra.gmra.mrb[56].mxu1 %vm1907_vm4, %v3760_v32 }
 0xf4d   : > { %v6888_v11 = vpop.f32.mrb[52].mxu0  ;;  %v6894_v52 = vpop.f32.mrb[52].mxu1  ;;  %6915 = vmatpush3.bf16.msra.mxu1 %v3943_v26 }
 0xf4e   : > { %v3685_v60 = vpop.f32.mrb[53].mxu0  ;;  %v3743_v14 = vpop.f32.mrb[53].mxu1  ;;  %v3762_v39 = vpack.c.bf16 %v6888_v11, %v6888_v11  ;;  %v3764_v40 = vpack.c.bf16 %v6894_v52, %v6894_v52 }
 0xf4f   : > { %v6889_v55 = vpop.f32.mrb[54].mxu0  ;;  %v6895_v33 = vpop.f32.mrb[54].mxu1 }
 0xf50   : > { %v3688_v29 = vpop.f32.mrb[55].mxu0  ;;  %v3746_v34 = vpop.f32.mrb[55].mxu1 }
 0xf51   : > { %v3761_v35 = vpack.c.bf16 %v3688_v29, %v3685_v60  ;;  %v3763_v38 = vpack.c.bf16 %v3746_v34, %v3743_v14  ;;  %v7385_v29 = vld [vmem:[#allocation14 + $0x80] sm:$0xff]   ;;  %v7386_v34 = vld [vmem:[#allocation14 + $0x90] sm:$0xff]  }
 0xf52   : > { %6920 = vmatprep.subr.bf16.mxu0 %v7385_v29  ;;  %6928 = vmatprep.subr.bf16.mxu1 %v7386_v34 }
 0xf53   : > { %6910 = vmatprep.mubr.msk.bf16.mxu0 %vm1907_vm4, %v3761_v35  ;;  %6916 = vmatprep.mubr.msk.bf16.mxu1 %vm1907_vm4, %v3763_v38  ;;  %v7387_v35 = vld [vmem:[#allocation14 + $0x88] sm:$0xff]   ;;  %v7388_v38 = vld [vmem:[#allocation14 + $0x98] sm:$0xff]  }
 0xf54   : > { %6911 = vmatmul.mubr.msk.bf16.vlgmr.msra.gmra.mrb[60].mxu0 %vm1907_vm4, %v3762_v39  ;;  %6917 = vmatmul.mubr.msk.bf16.vlgmr.msra.gmra.mrb[60].mxu1 %vm1907_vm4, %v3764_v40  ;;  %v7389_v39 = vld [vmem:[#allocation14 + $0xa0] sm:$0xff]   ;;  %v9280_v40 = vld [vmem:[#allocation14 + $0xb0] sm:$0xff]  }
 0xf55   : > { %6921 = vmatpush3.bf16.msra.mxu0 %v7385_v29  ;;  %6929 = vmatpush3.bf16.msra.mxu1 %v7386_v34 }
 0xf56   : > { %6922 = vmatprep.subr.bf16.mxu0 %v7387_v35  ;;  %6930 = vmatprep.subr.bf16.mxu1 %v7388_v38 }
 0xf59   : > { %6923 = vmatpush3.bf16.msra.mxu0 %v7387_v35  ;;  %6931 = vmatpush3.bf16.msra.mxu1 %v7388_v38 }
 0xf5a   : > { %6936 = vmatprep.subr.bf16.mxu0 %v7389_v39  ;;  %6944 = vmatprep.subr.bf16.mxu1 %v9280_v40 }
0x1016   : > { %v6900_v41 = vpop.f32.mrb[56].mxu0 }
0x1017   : > { %v3808_v42 = vpop.f32.mrb[57].mxu0  ;;  %v4007_v36 = vsel %vm1553_vm13, %v6900_v41, 0.0 }
0x1018   : > { %v6901_v44 = vpop.f32.mrb[58].mxu0  ;;  %v3993_v48 = vsel %vm1546_vm12, %v3808_v42, 0.0 }
0x1019   : > { %v3811_v47 = vpop.f32.mrb[59].mxu0 }
0x101a   : > { %v4000_v58 = vsel %vm1546_vm12, %v3811_v47, 0.0 }
0x101f   : > { %v6906_v37 = vpop.f32.mrb[56].mxu1 }
0x1020   : > { %v4008_v43 = vsel %vm1553_vm13, %v6906_v37, 0.0  ;;  %v3865_v45 = vpop.f32.mrb[57].mxu1 }
0x1021   : > { %v4009_v49 = vadd.f32 %v4008_v43, %v4007_v36  ;;  %v3994_v50 = vsel %vm1546_vm12, %v3865_v45, 0.0  ;;  %v6907_v53 = vpop.f32.mrb[58].mxu1 }
0x1022   : > { %v3995_v54 = vadd.f32 %v3994_v50, %v3993_v48  ;;  %v3868_v57 = vpop.f32.mrb[59].mxu1 }
0x1023   : > { %v4001_v61 = vsel %vm1546_vm12, %v3868_v57, 0.0 }
0x1024   : > { %v4002_v62 = vadd.f32 %v4001_v61, %v4000_v58 }
0x1027   : > { %v6912_v63 = vpop.f32.mrb[60].mxu0  ;;  %v6918_v0 = vpop.f32.mrb[60].mxu1 }
0x1028   : > { %v4010_v1 = vsel %vm1553_vm13, %v6912_v63, 0.0  ;;  %v3922_v46 = vpop.f32.mrb[61].mxu0  ;;  %v3979_v2 = vpop.f32.mrb[61].mxu1  ;;  %v4012_v9 = vsel %vm1553_vm13, %v6918_v0, 0.0 }
0x1029   : > { %v4011_v3 = vadd.f32 %v4010_v1, %v4009_v49  ;;  %v3996_v4 = vsel %vm1546_vm12, %v3922_v46, 0.0  ;;  %v6913_v7 = vpop.f32.mrb[62].mxu0  ;;  %v6919_v8 = vpop.f32.mrb[62].mxu1  ;;  %v3998_v17 = vsel %vm1546_vm12, %v3979_v2, 0.0 }
0x102a   : > { %v3997_v15 = vadd.f32 %v3996_v4, %v3995_v54  ;;  %v3925_v10 = vpop.f32.mrb[63].mxu0  ;;  %v3982_v6 = vpop.f32.mrb[63].mxu1  ;;  %v6276_v7 = vld [vmem:[#allocation11 + $0x2] ss:$0 sm:$0xff] }
0x102b   : > { %v4013_v5 = vadd.f32 %v4012_v9, %v4011_v3  ;;  %v4003_v19 = vsel %vm1546_vm12, %v3925_v10, 0.0  ;;  %v4005_v20 = vsel %vm1546_vm12, %v3982_v6, 0.0 }
0x102c   : > { %v3999_v16 = vadd.f32 %v3998_v17, %v3997_v15  ;;  %v4004_v22 = vadd.f32 %v4003_v19, %v4002_v62  ;;  %v6277_v17 = vld [vmem:[#allocation13 + $0x2] ss:$0 sm:$0xff] }
0x102d   : > { %v9251_v13 = vadd.f32 %v4013_v5, %v9052_v23 }
0x102e   : > { %v9248_v24 = vadd.f32 %v3999_v16, %v9044_v18  ;;  %v4006_v25 = vadd.f32 %v4005_v20, %v4004_v22 }
0x102f   : > { %v4025_v51 = vsel %vm1553_vm13, %v9251_v13, 0.0 }
0x1030   : > { %v9254_v21 = vadd.f32 %v4006_v25, %v9049_v12  ;;  %v4019_v27 = vsel %vm1546_vm12, %v9248_v24, 0.0 }
0x1031   : > { %4020 = vadd.xlane.f32.xlu0 %v4019_v27 }
0x1032   : > { %v4022_v28 = vsel %vm1546_vm12, %v9254_v21, 0.0 }
0x1033   : > { %4023 = vadd.xlane.f32.xlu1 %v4022_v28 }
0x1035   : > { %4026 = vadd.xlane.f32.xlu0 %v4025_v51 }
0x10be   : > { %v4021_v18 = vpop.xlane.xlu0 %4020 }
0x10bf   : > { %v4028_v56 = vmul.f32 0.03125, %v4021_v18  ;;  %v7391_v18 = vld [vmem:[#allocation14 + $0xa8] sm:$0xff]  }
0x10c0   : > { %v4024_v30 = vpop.xlane.xlu1 %4023 }
0x10c1   : > { %v9263_v23 = vsub.f32 %v9248_v24, %v4028_v56  ;;  %v4029_v12 = vmul.f32 0.03125, %v4024_v30  ;;  %v7392_v56 = vld [vmem:[#allocation14 + $0xb8] sm:$0xff]  }
0x10c2   : > { %v4027_v59 = vpop.xlane.xlu0 %4026  ;;  %v9293_v30 = vld [vmem:[#allocation4] sm:$0xf] }
0x10c3   : > { %v9266_v31 = vsub.f32 %v9254_v21, %v4029_v12  ;;  %v4030_v32 = vmul.f32 0.03125, %v4027_v59  ;;  %v4034_v26 = vmul.f32 %v9263_v23, %v9263_v23  ;;  %v4080_v9 = vmul.f32 %v6276_v7, %v9263_v23  ;;  %v9295_v23 = vld [vmem:[#allocation4 + $0x4] sm:$0xf] }
0x10c4   : > { %v4382_v12 = vsel %vm1907_vm4, %v9293_v30, 0  ;;  %v4439_v59 = vsel %vm1907_vm4, %v9295_v23, 0 }
0x10c5   : > { %v9271_v11 = vsub.f32 %v9251_v13, %v4030_v32  ;;  %v4037_v52 = vsel %vm1546_vm12, %v4034_v26, 0.0  ;;  %v4035_v60 = vmul.f32 %v9266_v31, %v9266_v31  ;;  %v4081_v15 = vmul.f32 %v6276_v7, %v9266_v31  ;;  %v9307_v31 = vld [vmem:[#allocation4 + $0x8] sm:$0xf]  ;;  %v9309_v32 = vld [vmem:[#allocation4 + $0xc] sm:$0xf] }
0x10c6   : > { %4038 = vadd.xlane.f32.xlu0 %v4037_v52 }
0x10c7   : > { %v4036_v14 = vmul.f32 %v9271_v11, %v9271_v11  ;;  %v4040_v33 = vsel %vm1546_vm12, %v4035_v60, 0.0  ;;  %v4082_v5 = vmul.f32 %v6276_v7, %v9271_v11 }
0x10c9   : > { %v4043_v55 = vsel %vm1553_vm13, %v4036_v14, 0.0 }
0x10ca   : > { %4044 = vadd.xlane.f32.xlu1 %v4043_v55  ;;  %4041 = vadd.xlane.f32.xlu0 %v4040_v33 }
0x1153   : > { %v4039_v41 = vpop.xlane.xlu0 %4038 }
0x1154   : > { %v4046_v42 = vmul.f32 0.032258064, %v4039_v41  ;;  %v4553_v41 = vsel %vm1907_vm4, %v9309_v32, 0 }
0x1156   : > { %7535 = vrsqrt.f32 %v4046_v42  ;;  %vm4051_vm3 = vcmp.eq.f32.partialorder %v4046_v42, inf  ;;  %v4054_v48 = vand.u32 2147483648, %v4046_v42  ;;  %vm4053_vm5 = vcmp.eq.f32.partialorder %v4046_v42, 0.0 }
0x1157   : > { %v4042_v44 = vpop.xlane.xlu0 %4041  ;;  %v4045_v47 = vpop.xlane.xlu1 %4044 }
0x1158   : > { %v4047_v37 = vmul.f32 0.032258064, %v4042_v44  ;;  %v4048_v36 = vmul.f32 0.032258064, %v4045_v47 }
0x115a   : > { %7537 = vrsqrt.f32 %v4047_v37  ;;  %vm4058_vm6 = vcmp.eq.f32.partialorder %v4047_v37, inf  ;;  %vm4060_vm7 = vcmp.eq.f32.partialorder %v4047_v37, 0.0  ;;  %v4061_v61 = vand.u32 2147483648, %v4047_v37 }
0x115b   : > { %7539 = vrsqrt.f32 %v4048_v36  ;;  %vm4065_vm9 = vcmp.eq.f32.partialorder %v4048_v36, inf  ;;  %v4068_v0 = vand.u32 2147483648, %v4048_v36  ;;  %vm4067_vm10 = vcmp.eq.f32.partialorder %v4048_v36, 0.0 }
0x1160   : > { %v7536_v43 = vpop.eup %7535 }
0x1161   : > { %v4050_v45 = vmul.f32 %v7536_v43, %v4046_v42 }
0x1163   : > { %v4052_v49 = vsel %vm4051_vm3, %v4046_v42, %v4050_v45  ;;  %vm5474_vm3 = vcmask 1040384  }
0x1164   : > { %v7538_v50 = vpop.eup %7537  ;;  %v4055_v53 = vsel %vm4053_vm5, %v4054_v48, %v4052_v49  ;;  %vm5617_vm5 = vcmask 523264  }
0x1165   : > { %v7540_v54 = vpop.eup %7539  ;;  %v4070_v57 = vadd.f32 1e-06, %v4055_v53  ;;  %v4057_v58 = vmul.f32 %v7538_v50, %v4047_v37 }
0x1166   : > { %v4064_v62 = vmul.f32 %v7540_v54, %v4048_v36 }
0x1167   : > { %7541 = vrcp.f32 %v4070_v57  ;;  %v4059_v63 = vsel %vm4058_vm6, %v4047_v37, %v4057_v58 }
0x1168   : > { %v4062_v1 = vsel %vm4060_vm7, %v4061_v61, %v4059_v63  ;;  %v4066_v46 = vsel %vm4065_vm9, %v4048_v36, %v4064_v62 }
0x1169   : > { %v4071_v2 = vadd.f32 1e-06, %v4062_v1  ;;  %v4069_v3 = vsel %vm4067_vm10, %v4068_v0, %v4066_v46 }
0x116a   : > { %v4072_v4 = vadd.f32 1e-06, %v4069_v3 }
0x116b   : > { %7543 = vrcp.f32 %v4071_v2 }
0x116c   : > { %7545 = vrcp.f32 %v4072_v4 }
0x1171   : > { %v7542_v8 = vpop.eup %7541 }
0x1172   : > { %v4083_v10 = vmul.f32 %v7542_v8, %v4080_v9 }
0x1174   : > { %v4090_v20 = vadd.f32 %v6277_v17, %v4083_v10 }
0x1175   : > { %v7544_v6 = vpop.eup %7543 }
0x1176   : > { %v7546_v19 = vpop.eup %7545  ;;  %v4084_v16 = vmul.f32 %v7544_v6, %v4081_v15 }
0x1177   : > { %v4085_v22 = vmul.f32 %v7546_v19, %v4082_v5 }
0x1178   : > { %v4091_v25 = vadd.f32 %v6277_v17, %v4084_v16 }
0x1179   : > { %v4092_v27 = vadd.f32 %v6277_v17, %v4085_v22 }
0x117a   : > { %v4119_v28 = vpack.c.bf16 %v4091_v25, %v4090_v20 }
0x117b   : > { %v4120_v51 = vpack.c.bf16 %v4092_v27, %v4092_v27 }
0x117c   : > { %6924 = vmatprep.mubr.msk.bf16.mxu0 %vm1546_vm12, %v4119_v28  ;;  %6932 = vmatprep.mubr.msk.bf16.mxu1 %vm1546_vm12, %v4119_v28 }
0x117d   : > { %6925 = vmatmul.mubr.msk.bf16.vlgmr.msra.gmra.mrb[64].mxu0 %vm1546_vm12, %v4120_v51  ;;  %6933 = vmatmul.mubr.msk.bf16.vlgmr.msra.gmra.mrb[64].mxu1 %vm1546_vm12, %v4120_v51 }
0x117e   : > { %6937 = vmatpush3.bf16.msra.mxu0 %v7389_v39  ;;  %6940 = vmatprep.mubr.msk.bf16.mxu0 %vm1546_vm12, %v4119_v28 }
0x117f   : > { %6945 = vmatpush3.bf16.msra.mxu1 %v9280_v40  ;;  %6948 = vmatprep.mubr.msk.bf16.mxu1 %vm1546_vm12, %v4119_v28  ;;  %v4496_v40 = vsel %vm1907_vm4, %v9307_v31, 0 }
0x1180   : > { %6938 = vmatprep.subr.bf16.mxu0 %v7391_v18  ;;  %6946 = vmatprep.subr.bf16.mxu1 %v7392_v56 }
0x1182   : > { %6939 = vmatpush3.bf16.msra.mxu0 %v7391_v18 }
0x1183   : > { %6947 = vmatpush3.bf16.msra.mxu1 %v7392_v56  ;;  %7104 = vmatprep.subr.msk.bf16.mxu0 %vm1907_vm4, %v9293_v30 }
0x1184   : > { %7105 = vmatprep.subr.msk.bf16.mxu1 %vm1907_vm4, %v9295_v23 }
0x1185   : > { %6941 = vmatmul.mubr.msk.bf16.vlgmr.msra.gmra.mrb[68].mxu0 %vm1546_vm12, %v4120_v51 }
0x1186   : > { %6949 = vmatmul.mubr.msk.bf16.vlgmr.msra.gmra.mrb[68].mxu1 %vm1546_vm12, %v4120_v51 }
0x118b   : > { %6953 = vmatpush3.bf16.xpose.msra.mxu0 %v4382_v12 }
0x118c   : > { %6959 = vmatpush3.bf16.xpose.msra.mxu1 %v4439_v59  ;;  %7106 = vmatprep.subr.msk.bf16.mxu0 %vm1907_vm4, %v9307_v31 }
0x118d   : > { %7107 = vmatprep.subr.msk.bf16.mxu1 %vm1907_vm4, %v9309_v32 }
0x1250   : > { %v6926_v26 = vpop.f32.mrb[64].mxu0  ;;  %v6934_v11 = vpop.f32.mrb[64].mxu1 }
0x1251   : > { %v4173_v52 = vpop.f32.mrb[65].mxu0  ;;  %v4233_v60 = vpop.f32.mrb[65].mxu1  ;;  %v4368_v38 = vpack.c.bf16 %v6926_v26, %v6926_v26  ;;  %v4370_v39 = vpack.c.bf16 %v6934_v11, %v6934_v11 }
0x1252   : > { %v6927_v14 = vpop.f32.mrb[66].mxu0  ;;  %v6935_v55 = vpop.f32.mrb[66].mxu1 }
0x1253   : > { %v4176_v33 = vpop.f32.mrb[67].mxu0  ;;  %v4236_v29 = vpop.f32.mrb[67].mxu1 }
0x1254   : > { %v4367_v34 = vpack.c.bf16 %v4176_v33, %v4173_v52  ;;  %v4369_v35 = vpack.c.bf16 %v4236_v29, %v4233_v60 }
0x1256   : > { %6954 = vmatprep.mubr.msk.bf16.mxu0 %vm1907_vm4, %v4367_v34  ;;  %6960 = vmatprep.mubr.msk.bf16.mxu1 %vm1907_vm4, %v4369_v35 }
0x1257   : > { %6955 = vmatmul.mubr.msk.bf16.vlgmr.msra.gmra.mrb[72].mxu0 %vm1907_vm4, %v4368_v38  ;;  %6961 = vmatmul.mubr.msk.bf16.vlgmr.msra.gmra.mrb[72].mxu1 %vm1907_vm4, %v4370_v39 }
0x1258   : > { %v6942_v42 = vpop.f32.mrb[68].mxu0  ;;  %6965 = vmatpush3.bf16.xpose.msra.mxu0 %v4496_v40  ;;  %6971 = vmatpush3.bf16.xpose.msra.mxu1 %v4553_v41 }
0x1259   : > { %v6950_v44 = vpop.f32.mrb[68].mxu1  ;;  %v4293_v47 = vpop.f32.mrb[69].mxu0  ;;  %v4372_v50 = vpack.c.bf16 %v6942_v42, %v6942_v42 }
0x125a   : > { %v4353_v37 = vpop.f32.mrb[69].mxu1  ;;  %v6943_v36 = vpop.f32.mrb[70].mxu0  ;;  %v4374_v54 = vpack.c.bf16 %v6950_v44, %v6950_v44 }
0x125b   : > { %v6951_v43 = vpop.f32.mrb[70].mxu1  ;;  %v4296_v45 = vpop.f32.mrb[71].mxu0 }
0x125c   : > { %v4371_v48 = vpack.c.bf16 %v4296_v45, %v4293_v47  ;;  %v4356_v49 = vpop.f32.mrb[71].mxu1 }
0x125d   : > { %v4373_v53 = vpack.c.bf16 %v4356_v49, %v4353_v37 }
0x125e   : > { %6966 = vmatprep.mubr.msk.bf16.mxu0 %vm1907_vm4, %v4371_v48 }
0x125f   : > { %6972 = vmatprep.mubr.msk.bf16.mxu1 %vm1907_vm4, %v4373_v53  ;;  %6967 = vmatmul.mubr.msk.bf16.vlgmr.msra.gmra.mrb[76].mxu0 %vm1907_vm4, %v4372_v50 }
0x1260   : > { %6973 = vmatmul.mubr.msk.bf16.vlgmr.msra.gmra.mrb[76].mxu1 %vm1907_vm4, %v4374_v54 }
0x132a   : > { %v6956_v57 = vpop.f32.mrb[72].mxu0  ;;  %v6962_v58 = vpop.f32.mrb[72].mxu1 }
0x132b   : > { %v4418_v61 = vpop.f32.mrb[73].mxu0  ;;  %v4475_v62 = vpop.f32.mrb[73].mxu1  ;;  %v4619_v63 = vsel %vm4609_vm11, %v6962_v58, -inf  ;;  %v4610_v0 = vsel %vm4609_vm11, %v6956_v57, -inf }
0x132c   : > { %4620 = vmax.xlane.f32.xlu1 %v4619_v63  ;;  %v6963_v1 = vpop.f32.mrb[74].mxu1  ;;  %4611 = vmax.xlane.f32.xlu0 %v4610_v0  ;;  %v6957_v46 = vpop.f32.mrb[74].mxu0  ;;  %v4613_v4 = vsel %vm1907_vm4, %v4475_v62, -inf  ;;  %v4603_v7 = vsel %vm1907_vm4, %v4418_v61, -inf }
0x132d   : > { %v4421_v2 = vpop.f32.mrb[75].mxu0  ;;  %v4478_v3 = vpop.f32.mrb[75].mxu1 }
0x132e   : > { %v4616_v10 = vsel %vm1907_vm4, %v4478_v3, -inf  ;;  %v4606_v6 = vsel %vm1907_vm4, %v4421_v2, -inf }
0x1330   : > { %4614 = vmax.xlane.f32.xlu1 %v4613_v4  ;;  %4604 = vmax.xlane.f32.xlu0 %v4603_v7 }
0x1332   : > { %v6968_v8 = vpop.f32.mrb[76].mxu0 }
0x1333   : > { %v9331_v9 = vpop.f32.mrb[76].mxu1  ;;  %v4532_v15 = vpop.f32.mrb[77].mxu0  ;;  %v4628_v25 = vsel %vm4609_vm11, %v6968_v8, -inf }
0x1334   : > { %v9335_v5 = vpop.f32.mrb[77].mxu1  ;;  %4617 = vmax.xlane.f32.xlu0 %v4616_v10  ;;  %4607 = vmax.xlane.f32.xlu1 %v4606_v6  ;;  %v6969_v17 = vpop.f32.mrb[78].mxu0  ;;  %v4622_v27 = vsel %vm1907_vm4, %v4532_v15, -inf  ;;  %v4637_v18 = vsel %vm4609_vm11, %v9331_v9, -inf }
0x1335   : > { %v6975_v19 = vpop.f32.mrb[78].mxu1  ;;  %v9337_v16 = vpop.f32.mrb[79].mxu0  ;;  %v4631_v20 = vsel %vm1907_vm4, %v9335_v5, -inf }
0x1336   : > { %v9339_v22 = vpop.f32.mrb[79].mxu1  ;;  %v4625_v28 = vsel %vm1907_vm4, %v9337_v16, -inf }
0x1337   : > { %v4634_v51 = vsel %vm1907_vm4, %v9339_v22, -inf }
0x1338   : > { %4632 = vmax.xlane.f32.xlu1 %v4631_v20  ;;  %4629 = vmax.xlane.f32.xlu0 %v4628_v25 }
0x133c   : > { %4623 = vmax.xlane.f32.xlu0 %v4622_v27  ;;  %4626 = vmax.xlane.f32.xlu1 %v4625_v28 }
0x1340   : > { %4635 = vmax.xlane.f32.xlu0 %v4634_v51  ;;  %4638 = vmax.xlane.f32.xlu1 %v4637_v18 }
0x13b9   : > { %v4621_v56 = vpop.xlane.xlu1 %4620  ;;  %v4612_v12 = vpop.xlane.xlu0 %4611 }
0x13ba   : > { %v4645_v59 = vsub.f32 %v6962_v58, %v4621_v56  ;;  %v4642_v26 = vsub.f32 %v6956_v57, %v4612_v12 }
0x13bc   : > { %v4662_v11 = vmul.f32 1.442695, %v4645_v59  ;;  %v4656_v52 = vmul.f32 1.442695, %v4642_v26  ;;  %v6302_v26 = vcombine.low %v9293_v30, %v9293_v30 }
0x13bd   : > { %v4615_v60 = vpop.xlane.xlu1 %4614  ;;  %v4605_v14 = vpop.xlane.xlu0 %4604 }
0x13be   : > { %7547 = vpow2.f32 %v4662_v11  ;;  %v4643_v55 = vsub.f32 %v4475_v62, %v4615_v60  ;;  %v4640_v33 = vsub.f32 %v4418_v61, %v4605_v14  ;;  %v6305_v11 = vcombine.low %v9295_v23, %v9295_v23 }
0x13bf   : > { %7549 = vpow2.f32 %v4656_v52  ;;  %v6308_v52 = vcombine.low %v9307_v31, %v9307_v31  ;;  %v6311_v60 = vcombine.low %v9309_v32, %v9309_v32 }
0x13c0   : > { %v4658_v29 = vmul.f32 1.442695, %v4643_v55  ;;  %v4652_v34 = vmul.f32 1.442695, %v4640_v33 }
0x13c1   : > { %v4618_v35 = vpop.xlane.xlu0 %4617  ;;  %v4608_v38 = vpop.xlane.xlu1 %4607 }
0x13c2   : > { %7551 = vpow2.f32 %v4658_v29  ;;  %v4644_v39 = vsub.f32 %v4478_v3, %v4618_v35  ;;  %v4641_v40 = vsub.f32 %v4421_v2, %v4608_v38 }
0x13c3   : > { %7553 = vpow2.f32 %v4652_v34 }
0x13c4   : > { %v4660_v41 = vmul.f32 1.442695, %v4644_v39  ;;  %v4654_v42 = vmul.f32 1.442695, %v4641_v40 }
0x13c5   : > { %v4633_v44 = vpop.xlane.xlu1 %4632  ;;  %v4630_v47 = vpop.xlane.xlu0 %4629 }
0x13c6   : > { %7555 = vpow2.f32 %v4660_v41  ;;  %v4648_v37 = vsub.f32 %v6968_v8, %v4630_v47  ;;  %v4649_v62 = vsub.f32 %v9335_v5, %v4633_v44 }
0x13c7   : > { %7557 = vpow2.f32 %v4654_v42 }
0x13c8   : > { %v9351_v36 = vpop.eup %7547  ;;  %v4668_v43 = vmul.f32 1.442695, %v4648_v37  ;;  %v4670_v10 = vmul.f32 1.442695, %v4649_v62 }
0x13c9   : > { %v9353_v45 = vpop.eup %7549  ;;  %v4624_v48 = vpop.xlane.xlu0 %4623  ;;  %v4691_v50 = vsel %vm4609_vm11, %v9351_v36, 0.0 }
0x13ca   : > { %v4627_v49 = vpop.xlane.xlu1 %4626  ;;  %v4646_v53 = vsub.f32 %v4532_v15, %v4624_v48  ;;  %v4682_v54 = vsel %vm4609_vm11, %v9353_v45, 0.0  ;;  %4692 = vadd.xlane.f32.xlu1 %v4691_v50  ;;  %7559 = vpow2.f32 %v4668_v43 }
0x13cb   : > { %4683 = vadd.xlane.f32.xlu0 %v4682_v54  ;;  %v4647_v6 = vsub.f32 %v9337_v16, %v4627_v49 }
0x13cc   : > { %v9359_v57 = vpop.eup %7551  ;;  %v4664_v58 = vmul.f32 1.442695, %v4646_v53 }
0x13cd   : > { %v9361_v61 = vpop.eup %7553  ;;  %v4636_v63 = vpop.xlane.xlu0 %4635  ;;  %v4685_v1 = vsel %vm1907_vm4, %v9359_v57, 0.0  ;;  %v4666_v19 = vmul.f32 1.442695, %v4647_v6 }
0x13ce   : > { %v4639_v0 = vpop.xlane.xlu1 %4638  ;;  %7561 = vpow2.f32 %v4664_v58  ;;  %v4650_v46 = vsub.f32 %v9339_v22, %v4636_v63  ;;  %v4676_v3 = vsel %vm1907_vm4, %v9361_v61, 0.0  ;;  %4686 = vadd.xlane.f32.xlu1 %v4685_v1 }
0x13cf   : > { %v4651_v2 = vsub.f32 %v9331_v9, %v4639_v0  ;;  %4677 = vadd.xlane.f32.xlu0 %v4676_v3 }
0x13d0   : > { %v9370_v4 = vpop.eup %7555  ;;  %v4672_v7 = vmul.f32 1.442695, %v4650_v46 }
0x13d1   : > { %v4674_v8 = vmul.f32 1.442695, %v4651_v2  ;;  %v7558_v15 = vpop.eup %7557  ;;  %v4688_v5 = vsel %vm1907_vm4, %v9370_v4, 0.0 }
0x13d2   : > { %7563 = vpow2.f32 %v4672_v7  ;;  %v4679_v17 = vsel %vm1907_vm4, %v7558_v15, 0.0 }
0x13d3   : > { %7565 = vpow2.f32 %v4674_v8  ;;  %4689 = vadd.xlane.f32.xlu0 %v4688_v5  ;;  %4680 = vadd.xlane.f32.xlu1 %v4679_v17 }
0x13d4   : > { %v9376_v9 = vpop.eup %7559  ;;  %7567 = vpow2.f32 %v4670_v10 }
0x13d5   : > { %v4700_v22 = vsel %vm4609_vm11, %v9376_v9, 0.0  ;;  %7569 = vpow2.f32 %v4666_v19 }
0x13d7   : > { %4701 = vadd.xlane.f32.xlu0 %v4700_v22 }
0x13d8   : > { %v9380_v20 = vpop.eup %7561 }
0x13d9   : > { %v4694_v16 = vsel %vm1907_vm4, %v9380_v20, 0.0 }
0x13db   : > { %4695 = vadd.xlane.f32.xlu0 %v4694_v16 }
0x13dc   : > { %v9384_v25 = vpop.eup %7563 }
0x13dd   : > { %v9386_v27 = vpop.eup %7565  ;;  %v4706_v28 = vsel %vm1907_vm4, %v9384_v25, 0.0 }
0x13de   : > { %v4709_v51 = vsel %vm4609_vm11, %v9386_v27, 0.0  ;;  %v9392_v18 = vpop.eup %7567 }
0x13df   : > { %4707 = vadd.xlane.f32.xlu0 %v4706_v28  ;;  %4710 = vadd.xlane.f32.xlu1 %v4709_v51  ;;  %v4703_v56 = vsel %vm1907_vm4, %v9392_v18, 0.0  ;;  %v9396_v12 = vpop.eup %7569 }
0x13e0   : > { %v4697_v59 = vsel %vm1907_vm4, %v9396_v12, 0.0 }
0x13e3   : > { %4704 = vadd.xlane.f32.xlu1 %v4703_v56 }
0x13e7   : > { %4698 = vadd.xlane.f32.xlu1 %v4697_v59  ;;  %v4117_v59 = vld [vmem:[#allocation17 + $0x28] sm:$0xf] }
0x13f5   : > { %4747 = vrot.lane.b32.xlu0 %v6302_v26, %s8119_s15  ;;  %v4118_v26 = vld [vmem:[#allocation17 + $0x2c] sm:$0xf] }
0x13f8   : > { %4809 = vrot.lane.b32.xlu1 %v6305_v11, %s8119_s15 }
0x13fc   : > { %4871 = vrot.lane.b32.xlu1 %v6308_v52, %s8119_s15 }
0x1400   : > { %4933 = vrot.lane.b32.xlu1 %v6311_v60, %s8119_s15 }
0x1457   : > { %v4693_v14 = vpop.xlane.xlu1 %4692 }
0x1458   : > { %v4684_v55 = vpop.xlane.xlu0 %4683 }
0x1459   : > { %7571 = vrcp.f32 %v4684_v55 }
0x145b   : > { %v4687_v30 = vpop.xlane.xlu1 %4686 }
0x145c   : > { %v4678_v33 = vpop.xlane.xlu0 %4677  ;;  %7573 = vrcp.f32 %v4687_v30 }
0x145d   : > { %7575 = vrcp.f32 %v4678_v33  ;;  %v5121_v33 = vsel %vm2550_vm8, %v4117_v59, 0 }
0x1460   : > { %v4690_v23 = vpop.xlane.xlu0 %4689  ;;  %v4681_v29 = vpop.xlane.xlu1 %4680 }
0x1461   : > { %7577 = vrcp.f32 %v4690_v23 }
0x1462   : > { %7579 = vrcp.f32 %v4681_v29 }
0x1463   : > { %v7572_v34 = vpop.eup %7571  ;;  %7581 = vrcp.f32 %v4693_v14 }
0x1464   : > { %v4702_v31 = vpop.xlane.xlu0 %4701  ;;  %v4726_v49 = vmul.f32 %v7572_v34, %v9353_v45 }
0x1466   : > { %v7574_v38 = vpop.eup %7573 }
0x1467   : > { %v7576_v32 = vpop.eup %7575  ;;  %v4727_v44 = vmul.f32 %v7574_v38, %v9359_v57  ;;  %v4737_v57 = vpack.c.bf16 %v4726_v49, %v4726_v49 }
0x1468   : > { %v4696_v35 = vpop.xlane.xlu0 %4695  ;;  %v4724_v37 = vmul.f32 %v7576_v32, %v9361_v61  ;;  %v5178_v32 = vsel %vm2550_vm8, %v4118_v26, 0 }
0x146b   : > { %v7578_v39 = vpop.eup %7577 }
0x146c   : > { %v7580_v40 = vpop.eup %7579  ;;  %v4708_v41 = vpop.xlane.xlu0 %4707  ;;  %v4728_v47 = vmul.f32 %v7578_v39, %v9370_v4 }
0x146d   : > { %v4711_v42 = vpop.xlane.xlu1 %4710  ;;  %v4725_v43 = vmul.f32 %v7580_v40, %v7558_v15  ;;  %7583 = vrcp.f32 %v4708_v41  ;;  %v7582_v61 = vpop.eup %7581 }
0x146e   : > { %v4738_v48 = vpack.c.bf16 %v4728_v47, %v4727_v44  ;;  %7585 = vrcp.f32 %v4702_v31  ;;  %v4729_v62 = vmul.f32 %v7582_v61, %v9351_v36 }
0x146f   : > { %v4736_v50 = vpack.c.bf16 %v4725_v43, %v4724_v37 }
0x1470   : > { %v4748_v53 = vpop.permute.xlu0 %4747  ;;  %6984 = vmatprep.mubr.msk.bf16.mxu1 %vm1907_vm4, %v4738_v48  ;;  %v4739_v3 = vpack.c.bf16 %v4729_v62, %v4729_v62 }
0x1471   : > { %v4705_v54 = vpop.xlane.xlu1 %4704  ;;  %v4756_v58 = vsel %vm2550_vm8, %v4748_v53, 0  ;;  %6978 = vmatprep.mubr.msk.bf16.mxu0 %vm1907_vm4, %v4736_v50  ;;  %7108 = vmatprep.subr.msk.bf16.mxu0 %vm2550_vm8, %v4748_v53 }
0x1472   : > { %7587 = vrcp.f32 %v4705_v54  ;;  %6977 = vmatpush3.bf16.msra.mxu0 %v4756_v58 }
0x1473   : > { %7589 = vrcp.f32 %v4711_v42 }
0x1474   : > { %7591 = vrcp.f32 %v4696_v35 }
0x1475   : > { %v4699_v45 = vpop.xlane.xlu1 %4698  ;;  %6979 = vmatmul.mubr.msk.bf16.vlgmr.msra.gmra.mrb[80].mxu0 %vm1907_vm4, %v4737_v57 }
0x1476   : > { %7593 = vrcp.f32 %v4699_v45 }
0x1477   : > { %v7584_v0 = vpop.eup %7583 }
0x1478   : > { %v7586_v46 = vpop.eup %7585  ;;  %v4734_v15 = vmul.f32 %v7584_v0, %v9384_v25 }
0x1479   : > { %v4810_v63 = vpop.permute.xlu1 %4809  ;;  %v4732_v17 = vmul.f32 %v7586_v46, %v9376_v9  ;;  %v4115_v9 = vld [vmem:[#allocation17 + $0x20] sm:$0xf] }
0x147a   : > { %v4818_v1 = vsel %vm2550_vm8, %v4810_v63, 0  ;;  %7109 = vmatprep.subr.msk.bf16.mxu1 %vm2550_vm8, %v4810_v63 }
0x147b   : > { %6983 = vmatpush3.bf16.msra.mxu1 %v4818_v1 }
0x147c   : > { %v7588_v2 = vpop.eup %7587 }
0x147d   : > { %v7590_v4 = vpop.eup %7589  ;;  %v4872_v7 = vpop.permute.xlu1 %4871  ;;  %v4733_v8 = vmul.f32 %v7588_v2, %v9392_v18  ;;  %v4741_v18 = vpack.c.bf16 %v4732_v17, %v4732_v17 }
0x147e   : > { %v7592_v10 = vpop.eup %7591  ;;  %v4880_v6 = vsel %vm2550_vm8, %v4872_v7, 0  ;;  %6985 = vmatmul.mubr.msk.bf16.vlgmr.msra.gmra.mrb[80].mxu1 %vm1907_vm4, %v4739_v3  ;;  %7110 = vmatprep.subr.msk.bf16.mxu0 %vm2550_vm8, %v4872_v7  ;;  %v4735_v19 = vmul.f32 %v7590_v4, %v9386_v27  ;;  %v4116_v27 = vld [vmem:[#allocation17 + $0x24] sm:$0xf] }
0x147f   : > { %6989 = vmatpush3.bf16.msra.mxu0 %v4880_v6  ;;  %v4742_v36 = vpack.c.bf16 %v4734_v15, %v4733_v8  ;;  %v4730_v16 = vmul.f32 %v7592_v10, %v9380_v20  ;;  %v5007_v20 = vsel %vm2550_vm8, %v4115_v9, 0 }
0x1480   : > { %v7594_v5 = vpop.eup %7593  ;;  %v4743_v56 = vpack.c.bf16 %v4735_v19, %v4735_v19  ;;  %7112 = vmatprep.subr.msk.bf16.mxu0 %vm2550_vm8, %v4115_v9 }
0x1481   : > { %6996 = vmatprep.mubr.msk.bf16.mxu1 %vm1907_vm4, %v4742_v36  ;;  %v4934_v22 = vpop.permute.xlu1 %4933  ;;  %v4731_v25 = vmul.f32 %v7594_v5, %v9396_v12  ;;  %v5064_v12 = vsel %vm2550_vm8, %v4116_v27, 0 }
0x1482   : > { %v4942_v28 = vsel %vm2550_vm8, %v4934_v22, 0  ;;  %7111 = vmatprep.subr.msk.bf16.mxu1 %vm2550_vm8, %v4934_v22 }
0x1483   : > { %6995 = vmatpush3.bf16.msra.mxu1 %v4942_v28  ;;  %v4740_v51 = vpack.c.bf16 %v4731_v25, %v4730_v16 }
0x1484   : > { %7113 = vmatprep.subr.msk.bf16.mxu1 %vm2550_vm8, %v4116_v27 }
0x1485   : > { %6990 = vmatprep.mubr.msk.bf16.mxu0 %vm1907_vm4, %v4740_v51 }
0x1486   : > { %6991 = vmatmul.mubr.msk.bf16.vlgmr.msra.gmra.mrb[84].mxu0 %vm1907_vm4, %v4741_v18  ;;  %6997 = vmatmul.mubr.msk.bf16.vlgmr.msra.gmra.mrb[84].mxu1 %vm1907_vm4, %v4743_v56 }
0x1487   : > { %7001 = vmatpush3.bf16.msra.mxu0 %v5007_v20  ;;  %7007 = vmatpush3.bf16.msra.mxu1 %v5064_v12 }
0x1488   : > { %7114 = vmatprep.subr.msk.bf16.mxu0 %vm2550_vm8, %v4117_v59  ;;  %7115 = vmatprep.subr.msk.bf16.mxu1 %vm2550_vm8, %v4118_v26 }
0x1548   : > { %v6980_v11 = vpop.f32.mrb[80].mxu0 }
0x1549   : > { %v4792_v52 = vpop.f32.mrb[81].mxu0  ;;  %v4993_v30 = vpack.c.bf16 %v6980_v11, %v6980_v11 }
0x154a   : > { %v6981_v60 = vpop.f32.mrb[82].mxu0 }
0x154b   : > { %v4795_v14 = vpop.f32.mrb[83].mxu0 }
0x154c   : > { %v4992_v55 = vpack.c.bf16 %v4795_v14, %v4792_v52 }
0x154e   : > { %7002 = vmatprep.mubr.msk.bf16.mxu0 %vm1907_vm4, %v4992_v55 }
0x154f   : > { %7003 = vmatmul.mubr.msk.bf16.vlgmr.msra.gmra.mrb[88].mxu0 %vm1907_vm4, %v4993_v30 }
0x1550   : > { %7013 = vmatpush3.bf16.msra.mxu0 %v5121_v33 }
0x1551   : > { %v6986_v23 = vpop.f32.mrb[80].mxu1 }
0x1552   : > { %v4854_v29 = vpop.f32.mrb[81].mxu1  ;;  %v4995_v38 = vpack.c.bf16 %v6986_v23, %v6986_v23 }
0x1553   : > { %v6987_v31 = vpop.f32.mrb[82].mxu1 }
0x1554   : > { %v4857_v34 = vpop.f32.mrb[83].mxu1 }
0x1555   : > { %v4994_v35 = vpack.c.bf16 %v4857_v34, %v4854_v29 }
0x1557   : > { %7008 = vmatprep.mubr.msk.bf16.mxu1 %vm1907_vm4, %v4994_v35 }
0x1558   : > { %7009 = vmatmul.mubr.msk.bf16.vlgmr.msra.gmra.mrb[88].mxu1 %vm1907_vm4, %v4995_v38 }
0x1559   : > { %v6992_v39 = vpop.f32.mrb[84].mxu0  ;;  %v6998_v40 = vpop.f32.mrb[84].mxu1  ;;  %7019 = vmatpush3.bf16.msra.mxu1 %v5178_v32 }
0x155a   : > { %v4916_v41 = vpop.f32.mrb[85].mxu0  ;;  %v4978_v42 = vpop.f32.mrb[85].mxu1  ;;  %v4997_v50 = vpack.c.bf16 %v6992_v39, %v6992_v39  ;;  %v4999_v53 = vpack.c.bf16 %v6998_v40, %v6998_v40 }
0x155b   : > { %v6993_v44 = vpop.f32.mrb[86].mxu0  ;;  %v6999_v47 = vpop.f32.mrb[86].mxu1 }
0x155c   : > { %v4919_v37 = vpop.f32.mrb[87].mxu0  ;;  %v4981_v43 = vpop.f32.mrb[87].mxu1 }
0x155d   : > { %v4996_v48 = vpack.c.bf16 %v4919_v37, %v4916_v41  ;;  %v4998_v49 = vpack.c.bf16 %v4981_v43, %v4978_v42  ;;  %v7397_v37 = vld [vmem:[#allocation19 + $0x10] sm:$0xff]   ;;  %v7398_v43 = vld [vmem:[#allocation19] sm:$0xff]  }
0x155e   : > { %7024 = vmatprep.subr.bf16.mxu0 %v7397_v37  ;;  %7032 = vmatprep.subr.bf16.mxu1 %v7398_v43 }
0x155f   : > { %7014 = vmatprep.mubr.msk.bf16.mxu0 %vm1907_vm4, %v4996_v48  ;;  %7020 = vmatprep.mubr.msk.bf16.mxu1 %vm1907_vm4, %v4998_v49  ;;  %v7399_v48 = vld [vmem:[#allocation19 + $0x18] sm:$0xff]   ;;  %v7400_v49 = vld [vmem:[#allocation19 + $0x8] sm:$0xff]  }
0x1560   : > { %7015 = vmatmul.mubr.msk.bf16.vlgmr.msra.gmra.mrb[92].mxu0 %vm1907_vm4, %v4997_v50  ;;  %7021 = vmatmul.mubr.msk.bf16.vlgmr.msra.gmra.mrb[92].mxu1 %vm1907_vm4, %v4999_v53  ;;  %v7401_v50 = vld [vmem:[#allocation19 + $0x20] sm:$0xff]  }
0x1561   : > { %7025 = vmatpush3.bf16.msra.mxu0 %v7397_v37  ;;  %7033 = vmatpush3.bf16.msra.mxu1 %v7398_v43 }
0x1562   : > { %7026 = vmatprep.subr.bf16.mxu0 %v7399_v48  ;;  %7034 = vmatprep.subr.bf16.mxu1 %v7400_v49 }
0x1565   : > { %7027 = vmatpush3.bf16.msra.mxu0 %v7399_v48  ;;  %7035 = vmatpush3.bf16.msra.mxu1 %v7400_v49 }
0x1566   : > { %7040 = vmatprep.subr.bf16.mxu0 %v7401_v50 }
0x1622   : > { %v7004_v54 = vpop.f32.mrb[88].mxu0 }
0x1623   : > { %v5043_v58 = vpop.f32.mrb[89].mxu0  ;;  %v5242_v62 = vsel %vm1553_vm13, %v7004_v54, 0.0 }
0x1624   : > { %v7005_v57 = vpop.f32.mrb[90].mxu0  ;;  %v5228_v1 = vsel %vm1546_vm12, %v5043_v58, 0.0 }
0x1625   : > { %v5046_v61 = vpop.f32.mrb[91].mxu0 }
0x1626   : > { %v5235_v8 = vsel %vm1546_vm12, %v5046_v61, 0.0 }
0x162b   : > { %v7010_v45 = vpop.f32.mrb[88].mxu1 }
0x162c   : > { %v5243_v63 = vsel %vm1553_vm13, %v7010_v45, 0.0  ;;  %v5100_v0 = vpop.f32.mrb[89].mxu1 }
0x162d   : > { %v5244_v46 = vadd.f32 %v5243_v63, %v5242_v62  ;;  %v5229_v2 = vsel %vm1546_vm12, %v5100_v0, 0.0  ;;  %v7011_v3 = vpop.f32.mrb[90].mxu1 }
0x162e   : > { %v5230_v4 = vadd.f32 %v5229_v2, %v5228_v1  ;;  %v5103_v7 = vpop.f32.mrb[91].mxu1 }
0x162f   : > { %v5236_v15 = vsel %vm1546_vm12, %v5103_v7, 0.0 }
0x1630   : > { %v5237_v10 = vadd.f32 %v5236_v15, %v5235_v8 }
0x1633   : > { %v7016_v6 = vpop.f32.mrb[92].mxu0  ;;  %v7022_v36 = vpop.f32.mrb[92].mxu1 }
0x1634   : > { %v5245_v5 = vsel %vm1553_vm13, %v7016_v6, 0.0  ;;  %v5157_v17 = vpop.f32.mrb[93].mxu0  ;;  %v5214_v19 = vpop.f32.mrb[93].mxu1  ;;  %v5247_v51 = vsel %vm1553_vm13, %v7022_v36, 0.0 }
0x1635   : > { %v5246_v22 = vadd.f32 %v5245_v5, %v5244_v46  ;;  %v5231_v16 = vsel %vm1546_vm12, %v5157_v17, 0.0  ;;  %v7017_v25 = vpop.f32.mrb[94].mxu0  ;;  %v7023_v28 = vpop.f32.mrb[94].mxu1  ;;  %v5233_v27 = vsel %vm1546_vm12, %v5214_v19, 0.0 }
0x1636   : > { %v5232_v18 = vadd.f32 %v5231_v16, %v5230_v4  ;;  %v5160_v56 = vpop.f32.mrb[95].mxu0  ;;  %v5217_v9 = vpop.f32.mrb[95].mxu1  ;;  %v6322_v16 = vld [vmem:[#allocation11 + $0x3] ss:$0 sm:$0xff] }
0x1637   : > { %v5248_v20 = vadd.f32 %v5247_v51, %v5246_v22  ;;  %v5238_v12 = vsel %vm1546_vm12, %v5160_v56, 0.0  ;;  %v5240_v11 = vsel %vm1546_vm12, %v5217_v9, 0.0 }
0x1638   : > { %v5234_v59 = vadd.f32 %v5233_v27, %v5232_v18  ;;  %v5239_v26 = vadd.f32 %v5238_v12, %v5237_v10 }
0x1639   : > { %v9471_v14 = vadd.f32 %v5248_v20, %v9251_v13  ;;  %v6323_v20 = vld [vmem:[#allocation13 + $0x3] ss:$0 sm:$0xff] }
0x163a   : > { %v9468_v52 = vadd.f32 %v5234_v59, %v9248_v24  ;;  %v5241_v60 = vadd.f32 %v5240_v11, %v5239_v26 }
0x163b   : > { %v5260_v23 = vsel %vm1553_vm13, %v9471_v14, 0.0 }
0x163c   : > { %v9474_v55 = vadd.f32 %v5241_v60, %v9254_v21  ;;  %v5254_v30 = vsel %vm1546_vm12, %v9468_v52, 0.0 }
0x163d   : > { %5255 = vadd.xlane.f32.xlu0 %v5254_v30 }
0x163e   : > { %v5257_v33 = vsel %vm1546_vm12, %v9474_v55, 0.0 }
0x163f   : > { %5258 = vadd.xlane.f32.xlu1 %v5257_v33 }
0x1641   : > { %5261 = vadd.xlane.f32.xlu0 %v5260_v23  ;;  %v7402_v23 = vld [vmem:[#allocation19 + $0x28] sm:$0xff]  }
0x16ca   : > { %v5256_v24 = vpop.xlane.xlu0 %5255 }
0x16cb   : > { %v5263_v29 = vmul.f32 0.03125, %v5256_v24  ;;  %v7403_v24 = vld [vmem:[#allocation22 + $0x20] sm:$0xff]  }
0x16cc   : > { %v5259_v31 = vpop.xlane.xlu1 %5258  ;;  %7048 = vmatprep.subr.bf16.mxu1 %v7403_v24 }
0x16cd   : > { %v9483_v13 = vsub.f32 %v9468_v52, %v5263_v29  ;;  %v5264_v21 = vmul.f32 0.03125, %v5259_v31  ;;  %v7404_v29 = vld [vmem:[#allocation22] sm:$0xff]   ;;  %v7405_v31 = vld [vmem:[#allocation22 + $0x28] sm:$0xff]  }
0x16ce   : > { %v5262_v34 = vpop.xlane.xlu0 %5261 }
0x16cf   : > { %v9486_v35 = vsub.f32 %v9474_v55, %v5264_v21  ;;  %v5265_v38 = vmul.f32 0.03125, %v5262_v34  ;;  %v5269_v32 = vmul.f32 %v9483_v13, %v9483_v13  ;;  %v5315_v28 = vmul.f32 %v6322_v16, %v9483_v13  ;;  %v7406_v13 = vld [vmem:[#allocation22 + $0x8] sm:$0xff]   ;;  %v7407_v21 = vld [vmem:[#allocation22 + $0x30] sm:$0xff]  }
0x16d0   : > { %v7408_v34 = vld [vmem:[#allocation22 + $0x10] sm:$0xff]  }
0x16d1   : > { %v9491_v39 = vsub.f32 %v9471_v14, %v5265_v38  ;;  %v5272_v40 = vsel %vm1546_vm12, %v5269_v32, 0.0  ;;  %v5270_v41 = vmul.f32 %v9486_v35, %v9486_v35  ;;  %v5316_v51 = vmul.f32 %v6322_v16, %v9486_v35  ;;  %v7409_v35 = vld [vmem:[#allocation22 + $0x38] sm:$0xff]   ;;  %v7411_v32 = vld [vmem:[#allocation22 + $0x40] sm:$0xff]  }
0x16d2   : > { %5273 = vadd.xlane.f32.xlu0 %v5272_v40  ;;  %v7410_v38 = vld [vmem:[#allocation22 + $0x18] sm:$0xff]  }
0x16d3   : > { %v5271_v42 = vmul.f32 %v9491_v39, %v9491_v39  ;;  %v5275_v47 = vsel %vm1546_vm12, %v5270_v41, 0.0  ;;  %v5317_v9 = vmul.f32 %v6322_v16, %v9491_v39 }
0x16d5   : > { %v5278_v44 = vsel %vm1553_vm13, %v5271_v42, 0.0 }
0x16d6   : > { %5279 = vadd.xlane.f32.xlu1 %v5278_v44  ;;  %5276 = vadd.xlane.f32.xlu0 %v5275_v47 }
0x175f   : > { %v5274_v53 = vpop.xlane.xlu0 %5273 }
0x1760   : > { %v5281_v54 = vmul.f32 0.032258064, %v5274_v53 }
0x1762   : > { %7595 = vrsqrt.f32 %v5281_v54  ;;  %vm5286_vm4 = vcmp.eq.f32.partialorder %v5281_v54, inf  ;;  %v5289_v0 = vand.u32 2147483648, %v5281_v54  ;;  %vm5288_vm8 = vcmp.eq.f32.partialorder %v5281_v54, 0.0 }
0x1763   : > { %v5277_v58 = vpop.xlane.xlu0 %5276  ;;  %v5280_v57 = vpop.xlane.xlu1 %5279 }
0x1764   : > { %v5282_v61 = vmul.f32 0.032258064, %v5277_v58  ;;  %v5283_v45 = vmul.f32 0.032258064, %v5280_v57 }
0x1766   : > { %7597 = vrsqrt.f32 %v5282_v61  ;;  %vm5293_vm14 = vcmp.eq.f32.partialorder %v5282_v61, inf  ;;  %vm5295_vm15 = vcmp.eq.f32.partialorder %v5282_v61, 0.0  ;;  %v5296_v8 = vand.u32 2147483648, %v5282_v61 }
0x1767   : > { %7599 = vrsqrt.f32 %v5283_v45  ;;  %vm5300_vm0 = vcmp.eq.f32.partialorder %v5283_v45, inf  ;;  %v5303_v6 = vand.u32 2147483648, %v5283_v45  ;;  %vm5302_vm1 = vcmp.eq.f32.partialorder %v5283_v45, 0.0 }
0x176c   : > { %v7596_v62 = vpop.eup %7595 }
0x176d   : > { %v5285_v63 = vmul.f32 %v7596_v62, %v5281_v54 }
0x176f   : > { %v5287_v1 = vsel %vm5286_vm4, %v5281_v54, %v5285_v63 }
0x1770   : > { %v7598_v46 = vpop.eup %7597  ;;  %v5290_v2 = vsel %vm5288_vm8, %v5289_v0, %v5287_v1 }
0x1771   : > { %v7600_v3 = vpop.eup %7599  ;;  %v5305_v4 = vadd.f32 1e-06, %v5290_v2  ;;  %v5292_v7 = vmul.f32 %v7598_v46, %v5282_v61  ;;  %v6336_v2 = vld [vmem:[#allocation20] ss:$0 sm:$0xff] }
0x1772   : > { %v5299_v15 = vmul.f32 %v7600_v3, %v5283_v45 }
0x1773   : > { %7601 = vrcp.f32 %v5305_v4  ;;  %v5294_v10 = vsel %vm5293_vm14, %v5282_v61, %v5292_v7 }
0x1774   : > { %v5297_v36 = vsel %vm5295_vm15, %v5296_v8, %v5294_v10  ;;  %v5301_v5 = vsel %vm5300_vm0, %v5283_v45, %v5299_v15 }
0x1775   : > { %v5306_v17 = vadd.f32 1e-06, %v5297_v36  ;;  %v5304_v19 = vsel %vm5302_vm1, %v5303_v6, %v5301_v5 }
0x1776   : > { %v5307_v22 = vadd.f32 1e-06, %v5304_v19 }
0x1777   : > { %7603 = vrcp.f32 %v5306_v17 }
0x1778   : > { %7605 = vrcp.f32 %v5307_v22 }
0x177d   : > { %v7602_v25 = vpop.eup %7601 }
0x177e   : > { %v5318_v18 = vmul.f32 %v7602_v25, %v5315_v28 }
0x1780   : > { %v5325_v26 = vadd.f32 %v6323_v20, %v5318_v18  ;;  %v7412_v18 = vld [vmem:[#allocation22 + $0x48] sm:$0xff]  }
0x1781   : > { %v7604_v56 = vpop.eup %7603 }
0x1782   : > { %v7606_v27 = vpop.eup %7605  ;;  %v5319_v12 = vmul.f32 %v7604_v56, %v5316_v51  ;;  %v7413_v56 = vld [vmem:[#allocation22 + $0x50] sm:$0xff]  }
0x1783   : > { %v5320_v59 = vmul.f32 %v7606_v27, %v5317_v9  ;;  %v7414_v9 = vld [vmem:[#allocation22 + $0x58] sm:$0xff]  }
0x1784   : > { %v5326_v11 = vadd.f32 %v6323_v20, %v5319_v12 }
0x1785   : > { %v5327_v60 = vadd.f32 %v6323_v20, %v5320_v59 }
0x1786   : > { %v5329_v30 = vpack.c.bf16 %v5326_v11, %v5325_v26 }
0x1787   : > { %v5330_v33 = vpack.c.bf16 %v5327_v60, %v5327_v60 }
0x1788   : > { %7028 = vmatprep.mubr.msk.bf16.mxu0 %vm1546_vm12, %v5329_v30  ;;  %7036 = vmatprep.mubr.msk.bf16.mxu1 %vm1546_vm12, %v5329_v30 }
0x1789   : > { %7029 = vmatmul.mubr.msk.bf16.vlgmr.msra.gmra.mrb[96].mxu0 %vm1546_vm12, %v5330_v33  ;;  %7037 = vmatmul.mubr.msk.bf16.vlgmr.msra.gmra.mrb[96].mxu1 %vm1546_vm12, %v5330_v33 }
0x178a   : > { %7041 = vmatpush3.bf16.msra.mxu0 %v7401_v50  ;;  %7044 = vmatprep.mubr.msk.bf16.mxu0 %vm1546_vm12, %v5329_v30 }
0x178b   : > { %7042 = vmatprep.subr.bf16.mxu0 %v7402_v23  ;;  %7049 = vmatpush3.bf16.msra.mxu1 %v7403_v24 }
0x178c   : > { %7050 = vmatprep.subr.bf16.mxu1 %v7405_v31 }
0x178e   : > { %7043 = vmatpush3.bf16.msra.mxu0 %v7402_v23 }
0x178f   : > { %7060 = vmatprep.subr.bf16.mxu0 %v7404_v29  ;;  %7051 = vmatpush3.bf16.msra.mxu1 %v7405_v31 }
0x1790   : > { %7052 = vmatprep.subr.bf16.mxu1 %v7407_v21 }
0x1791   : > { %7045 = vmatmul.mubr.msk.bf16.vlgmr.msra.gmra.mrb[100].mxu0 %vm1546_vm12, %v5330_v33 }
0x1792   : > { %7061 = vmatpush3.bf16.msra.mxu0 %v7404_v29 }
0x1793   : > { %7062 = vmatprep.subr.bf16.mxu0 %v7406_v13  ;;  %7053 = vmatpush3.bf16.msra.mxu1 %v7407_v21 }
0x1794   : > { %7054 = vmatprep.subr.bf16.mxu1 %v7409_v35 }
0x1796   : > { %7063 = vmatpush3.bf16.msra.mxu0 %v7406_v13 }
0x1797   : > { %7064 = vmatprep.subr.bf16.mxu0 %v7408_v34  ;;  %7055 = vmatpush3.bf16.msra.mxu1 %v7409_v35 }
0x1798   : > { %7072 = vmatprep.subr.bf16.mxu1 %v7411_v32 }
0x179a   : > { %7065 = vmatpush3.bf16.msra.mxu0 %v7408_v34 }
0x179b   : > { %7066 = vmatprep.subr.bf16.mxu0 %v7410_v38 }
0x179e   : > { %7067 = vmatpush3.bf16.msra.mxu0 %v7410_v38 }
0x185c   : > { %v7030_v39 = vpop.f32.mrb[96].mxu0  ;;  %v7038_v40 = vpop.f32.mrb[96].mxu1 }
0x185d   : > { %v5393_v41 = vpop.f32.mrb[97].mxu0  ;;  %v5457_v42 = vpop.f32.mrb[97].mxu1  ;;  %v5478_v37 = vrot.slane %v7030_v39, 7  ;;  %v5551_v43 = vrot.slane %v7038_v40, 6 }
0x185e   : > { %v7031_v44 = vpop.f32.mrb[98].mxu0  ;;  %v7039_v47 = vpop.f32.mrb[98].mxu1  ;;  %v5475_v50 = vrot.slane %v5393_v41, 7  ;;  %v5548_v53 = vrot.slane %v5457_v42, 6  ;;  %v6355_v42 = vld [vmem:[#allocation23] ss:$0 sm:$0xff] }
0x185f   : > { %v5396_v48 = vpop.f32.mrb[99].mxu0  ;;  %v5460_v49 = vpop.f32.mrb[99].mxu1 }
0x1860   : > { %v5476_v54 = vrot.slane %v5396_v48, 7  ;;  %v5549_v58 = vrot.slane %v5460_v49, 6  ;;  %v5483_v1 = vsel %vm5474_vm3, 0.0, %v5475_v50  ;;  %v5556_v7 = vsel %vm5547_vm2, 0.0, %v5548_v53 }
0x1862   : > { %v5479_v57 = vsel %vm5474_vm3, %v5476_v54, %v5478_v37  ;;  %v5552_v61 = vsel %vm5547_vm2, %v5549_v58, %v5551_v43  ;;  %v5477_v45 = vsel %vm5474_vm3, %v5475_v50, %v5476_v54  ;;  %v5550_v62 = vsel %vm5547_vm2, %v5548_v53, %v5549_v58 }
0x1864   : > { %v7046_v63 = vpop.f32.mrb[100].mxu0 }
0x1865   : > { %v5539_v0 = vadd.f32 %v7046_v63, %v5479_v57  ;;  %v5530_v46 = vpop.f32.mrb[101].mxu0 }
0x1866   : > { %v5531_v3 = vadd.f32 %v5530_v46, %v5483_v1  ;;  %v7047_v4 = vpop.f32.mrb[102].mxu0 }
0x1867   : > { %v5559_v8 = vadd.f32 %v5552_v61, %v5539_v0  ;;  %v5533_v15 = vpop.f32.mrb[103].mxu0 }
0x1868   : > { %v5557_v10 = vadd.f32 %v5556_v7, %v5531_v3  ;;  %v5534_v6 = vadd.f32 %v5533_v15, %v5477_v45 }
0x1869   : > { %v5568_v36 = vadd.f32 %v6336_v2, %v5559_v8 }
0x186a   : > { %v5566_v5 = vadd.f32 %v6336_v2, %v5557_v10  ;;  %v5558_v17 = vadd.f32 %v5550_v62, %v5534_v6 }
0x186b   : > { %v5571_v22 = vmax.f32 %v5568_v36, 0.0 }
0x186c   : > { %v5567_v19 = vadd.f32 %v6336_v2, %v5558_v17  ;;  %v5569_v16 = vmax.f32 %v5566_v5, 0.0 }
0x186d   : > { %v5574_v51 = vpack.c.bf16 %v5571_v22, %v5571_v22 }
0x186e   : > { %v5570_v25 = vmax.f32 %v5567_v19, 0.0 }
0x1870   : > { %v5573_v28 = vpack.c.bf16 %v5570_v25, %v5569_v16 }
0x1872   : > { %7056 = vmatprep.mubr.msk.bf16.mxu1 %vm5617_vm5, %v5573_v28  ;;  %7068 = vmatprep.mubr.msk.bf16.mxu0 %vm5617_vm5, %v5573_v28 }
0x1873   : > { %7057 = vmatmul.mubr.msk.bf16.vlgmr.msra.gmra.mrb[100].mxu1 %vm5617_vm5, %v5574_v51  ;;  %7069 = vmatmul.mubr.msk.bf16.vlgmr.msra.gmra.mrb[104].mxu0 %vm5617_vm5, %v5574_v51 }
0x1874   : > { %7073 = vmatpush3.bf16.msra.mxu1 %v7411_v32  ;;  %7080 = vmatprep.mubr.msk.bf16.mxu1 %vm5617_vm5, %v5573_v28 }
0x1875   : > { %7074 = vmatprep.subr.bf16.mxu1 %v7412_v18 }
0x1878   : > { %7075 = vmatpush3.bf16.msra.mxu1 %v7412_v18 }
0x1879   : > { %7076 = vmatprep.subr.bf16.mxu1 %v7413_v56 }
0x187c   : > { %7077 = vmatpush3.bf16.msra.mxu1 %v7413_v56 }
0x187d   : > { %7078 = vmatprep.subr.bf16.mxu1 %v7414_v9 }
0x1880   : > { %7079 = vmatpush3.bf16.msra.mxu1 %v7414_v9 }
0x1883   : > { %7081 = vmatmul.mubr.msk.bf16.vlgmr.msra.gmra.mrb[104].mxu1 %vm5617_vm5, %v5574_v51 }
0x1946   : > { %v7058_v20 = vpop.f32.mrb[100].mxu1  ;;  %v7070_v27 = vpop.f32.mrb[104].mxu0 }
0x1947   : > { %v5658_v12 = vpop.f32.mrb[101].mxu1  ;;  %v5738_v59 = vpop.f32.mrb[105].mxu0  ;;  %v5758_v60 = vrot.slane %v7058_v20, 7  ;;  %v5842_v30 = vrot.slane %v7070_v27, 6 }
0x1948   : > { %v7059_v26 = vpop.f32.mrb[102].mxu1  ;;  %v7071_v11 = vpop.f32.mrb[106].mxu0  ;;  %v5755_v24 = vrot.slane %v5658_v12, 7  ;;  %v5839_v29 = vrot.slane %v5738_v59, 6 }
0x1949   : > { %v5661_v33 = vpop.f32.mrb[103].mxu1  ;;  %v5741_v23 = vpop.f32.mrb[107].mxu0 }
0x194a   : > { %v5756_v31 = vrot.slane %v5661_v33, 7  ;;  %v5840_v13 = vrot.slane %v5741_v23, 6  ;;  %v5763_v40 = vsel %vm5474_vm3, 0.0, %v5755_v24  ;;  %v5847_v37 = vsel %vm5547_vm2, 0.0, %v5839_v29 }
0x194c   : > { %v5759_v21 = vsel %vm5474_vm3, %v5756_v31, %v5758_v60  ;;  %v5843_v34 = vsel %vm5547_vm2, %v5840_v13, %v5842_v30  ;;  %v5757_v35 = vsel %vm5474_vm3, %v5755_v24, %v5756_v31  ;;  %v5841_v38 = vsel %vm5547_vm2, %v5839_v29, %v5840_v13 }
0x1956   : > { %v7082_v32 = vpop.f32.mrb[104].mxu1 }
0x1957   : > { %v5831_v39 = vadd.f32 %v7082_v32, %v5759_v21  ;;  %v5822_v41 = vpop.f32.mrb[105].mxu1 }
0x1958   : > { %v5823_v44 = vadd.f32 %v5822_v41, %v5763_v40  ;;  %v7083_v47 = vpop.f32.mrb[106].mxu1 }
0x1959   : > { %v5850_v43 = vadd.f32 %v5843_v34, %v5831_v39  ;;  %v5825_v48 = vpop.f32.mrb[107].mxu1 }
0x195a   : > { %v5848_v49 = vadd.f32 %v5847_v37, %v5823_v44  ;;  %v5826_v50 = vadd.f32 %v5825_v48, %v5757_v35 }
0x195b   : > { %v5859_v53 = vadd.f32 %v6355_v42, %v5850_v43 }
0x195c   : > { %v5857_v54 = vadd.f32 %v6355_v42, %v5848_v49  ;;  %v5849_v58 = vadd.f32 %v5841_v38, %v5826_v50  ;;  %5868 = sbr.rel (%p6147_p1) target bundleno = 6501 (0x1965), region = 124 }
0x195d   : > { %v5862_v57 = vmax.f32 %v5859_v53, 0.0 }
0x195e   : > { %v5860_v61 = vmax.f32 %v5857_v54, 0.0  ;;  %v5858_v45 = vadd.f32 %v6355_v42, %v5849_v58 }
0x195f   : > { %v5865_v62 = vadd.f32 %v5862_v57, %v9471_v14 }
0x1960   : > { %v5863_v63 = vadd.f32 %v5860_v61, %v9468_v52  ;;  %v5861_v0 = vmax.f32 %v5858_v45, 0.0 }
0x1962   : > { %v5864_v1 = vadd.f32 %v5861_v0, %v9474_v55  ;;  %5869 = vst.msk [vmem:[%s8659_s23] sm:$0xff] (!%p6147_p1), %vm1546_vm12, %v5863_v63 }
0x1964   : > { %5870 = vst.msk [vmem:[%s8659_s23 + $0x8] sm:$0xff] %vm1546_vm12, %v5864_v1 }
0x1965 PF: > { %s9734_s16 = sld [smem:[#allocation37_spill]] }
0x196b   : > { %p6357_p2 = scmp.le.s32.totalorder %s9734_s16, 0 }
0x196c   : > { %vm5875_vm6 = vcmask (!%p6357_p2), 261124   ;;  %5877 = vst.msk [vmem:[%s8659_s23 + $0x4] sm:$0xff] (!%p6357_p2), %vm1546_vm12, %v5864_v1 }
0x196d   : > { %5874 = sbr.rel (%p6357_p2) target bundleno = 6516 (0x1974), region = 128  ;;  %5878 = vst.msk [vmem:[%s8659_s23 + $0xc] sm:$0xf] (!%p6357_p2), %vm1553_vm13, %v5865_v62 }
0x196e   : > { %5876 = vst.msk [vmem:[%s8659_s23 - $0x4] sm:$0xf0] (!%p6357_p2), %vm5875_vm6, %v5863_v63 }
0x1974 PF: > { %s9735_s29 = sld [smem:[#allocation37_spill]]  ;;  %s9736_s27 = sld [smem:[#allocation38_spill]] }
0x1975   : > { %s5895_s11 = sshll.u32 %s8659_s23, 4  ;;  %s9737_s20 = sld [smem:[#allocation57_spill]]  ;;  %s9545_s11 = int_to_ptr.vmem [resolvable:$true] %s5895_s11 }
0x1976   : > { %s9554_s24 = scalar_lea.sflag [#allocation7], %s640_s17  ;;  %s7952_s14 = scalar_lea.vmem %s9545_s11, 256 }
0x1977   : > { %p7953_p13 = scmp.ne.s32.totalorder %s9545_s11, %s7952_s14  ;;  %p9738_p12 = scmp.ne.s32.totalorder %s9693_s3, 0 }
0x1978   : > { %s8120_s23 = smov [#allocation25]  }
0x1979   : > { %p7954_p10 = pnand %p7953_p13, %p9738_p12  ;;  %s7956_s10 = sshll.u32 %s8120_s23, 4  ;;  %s7957_s10 = int_to_ptr.vmem [resolvable:$false] %s7956_s10 }
0x197a   : > { %s6359_s0 = sshll.u32 %s9735_s29, 1  ;;  %s6360_s26 = sshll.u32 %s9736_s27, 2 }
0x197b   : > { %s5892_s28 = sadd.s32 %s6360_s26, %s6359_s0  ;;  %p7955_p0 = pneg %p7954_p10 }
0x197c   : > { %s6361_s2 = sshll.u32 %s5892_s28, 7  ;;  %s7958_s12 = scalar_lea.vmem %s7957_s10, 512 }
0x197d   : > { %s9550_s8 = scalar_lea.hbm %s9737_s20, %s6361_s2  ;;  %p7959_p4 = scmp.lt.s32.totalorder %s9545_s11, %s7957_s10 }
0x197e   : > { %p7960_p8 = scmp.lt.s32.totalorder %s7958_s12, %s7952_s14 }
0x1980   : > { %p7961_p7 = por %p7960_p8, %p7959_p4 }
0x1982   : > { %p7962_p5 = pnand %p7961_p7, %p7955_p0 }
0x1984   : > { %7965 = shalt.err (!%p7962_p5)
}
0x1985   : > { %s7966_s17 = scalar_lea.hbm %s9550_s8, 256  ;;  %s7970_s16 = scalar_lea.hbm %s9737_s20, 1024 }
0x1986   : > { %p7967_p6 = scmp.ne.s32.totalorder %s9550_s8, %s7966_s17  ;;  %p7971_p1 = scmp.lt.u32.totalorder %s9550_s8, %s9737_s20 }
0x1987   : > { %p7972_p9 = scmp.lt.u32.totalorder %s7970_s16, %s7966_s17  ;;  %p7974_p13 = scmp.lt.u32.totalorder %s7966_s17, %s9550_s8 }
0x1988   : > { %p7968_p3 = pnand %p7967_p6, %p9738_p12 }
0x1989   : > { %p7973_p2 = por %p7972_p9, %p7971_p1 }
0x198a   : > { %p7969_p11 = pneg %p7968_p3 }
0x198b   : > { %p7975_p10 = por %p7974_p13, %p7973_p2 }
0x198d   : > { %p7976_p0 = pnand %p7975_p10, %p7969_p11 }
0x198f   : > { %7979 = shalt.err (!%p7976_p0)
}
0x1990   : > { %s8121_s0 = smov 128   ;;  %s8122_s26 = smov 8  }
0x1991   : > { %7158 = dma.vmem_to_hbm [thread:$0]  (%p9738_p12), %s9545_s11, 256, %s9550_s8, %s9554_s24, %s8121_s0, %s8121_s0, %s8122_s26  }
0x1992 PF: > { %s9739_s28 = sld [smem:[#allocation34_spill]]  ;;  %s9740_s2 = sld [smem:[#allocation45_spill]] }
0x1993   : > { %p7221_p4 = scmp.ge.s32.totalorder %s8098_s13, 2 }
0x1998   : > { %s5910_s21 = sand.u32 1, %s9739_s28   ;;  %p9741_p8 = scmp.ne.s32.totalorder %s9740_s2, 0 }
0x1999   : > { %s5911_s18 = scalar_lea.sflag [#allocation7], %s5910_s21 }
0x199a   : > { %p7199_p7 = pnand %p7221_p4, %p9741_p8 }
0x199c   : > { %8053 = dma.done.wait (!%p7199_p7), %s5911_s18, 256  }
0x199d   : > { %8055 = vsyncadd (!%p7199_p7), %s5911_s18, 4294967040  ;;  %s36_s13 = sadd.s32 1, %s8098_s13   ;;  %s9742_s14 = sld [smem:[#allocation35_spill]] }
0x199e   : > { %p33_p5 = scmp.ge.s32.totalorder %s36_s13, 6   ;;  %s9743_s23 = sld [smem:[#allocation44_spill]] }
0x199f   : > { %s9744_s3 = sld [smem:[#allocation36_spill]]  ;;  %s9745_s26 = sld [smem:[#allocation43_spill]] }
0x19a0   : > { %s9746_s27 = sld [smem:[#allocation39_spill]]  ;;  %s9747_s29 = sld [smem:[#allocation41_spill]] }
0x19a1   : > { %s9748_s11 = sld [smem:[#allocation42_spill]]  ;;  %s9749_s21 = smov %s8062_s22 }
0x19a2   : > { %s9751_s24 = smov %s8074_s25  ;;  %s9753_s28 = smov %s8094_s30 }
0x19a3   : > { %s9750_s22 = smov %s9742_s14  ;;  %35 = sbr.rel (!%p33_p5) target bundleno = 29 (0x1d), region = 196 }
0x19a5   : > { %s9752_s25 = smov %s9744_s3 }
0x19a7   : > { %s9754_s30 = smov %s9748_s11 }
0x19aa   :  { %5916 = vsyncpa [#allocation6], 1 }
0x19ab   :  { %5918 = vsyncpa [#allocation6 + $0x1], 1 }
0x19ac   :  { %5919 = vsyncpa [#allocation9], 1 }
0x19ad   :  { %5921 = vsyncpa [#allocation9 + $0x1], 1 }
0x19ae   :  { %5922 = vsyncpa [#allocation12], 1 }
0x19af   :  { %5923 = vsyncpa [#allocation15], 1 }
0x19b0   :  { %5924 = vsyncpa [#allocation18], 1 }
0x19b1   :  { %5925 = vsyncpa [#allocation21], 1 }
0x19b2   :  { %5926 = vsyncpa [#allocation24], 1 }
0x19b3   :  { %5927 = vsyncpa [#allocation7], 1 }
0x19b4   :  { %5929 = vsyncpa [#allocation7 + $0x1], 1 }

</bundles_post_ra>
